<compile_context>
chip_gen: v7x
topology: tpu7x:2x2x1
jax: 0.10.0
libtpu: 0.0.40
codegen_flags: <defaults>
</compile_context>

<pallas_src>
import functools

import numpy as np
import jax
import jax.numpy as jnp
from jax import lax
from jax.experimental import pallas as pl
from jax.experimental.pallas import tpu as pltpu


def _round_up(v, m):
    return (v + m - 1) // m * m


# ---------------------------------------------------------------------------
# Kernel A: tiled per-segment sum.
#   grid = (2, n_half): leading "parallel" axis splits the point range across
#   TensorCores (v7x megacore); inner "arbitrary" axis is the reduction over
#   point tiles, accumulating into this half's resident output block.
# ---------------------------------------------------------------------------
def seg_sum_kernel(x_ref, start_ref, end_ref, part_ref, *, n_points, n_half):
    p = pl.program_id(0)          # which half (megacore split)
    k = pl.program_id(1)          # tile index within the half

    @pl.when(k == 0)
    def _():
        part_ref[...] = jnp.zeros_like(part_ref)

    tile_n = x_ref.shape[0]
    s_pad = start_ref.shape[0]
    t = p * n_half + k                                   # logical tile index
    row0 = t * tile_n

    # Segment membership, lane-dense orientation [Sp, tile_n].
    rows = row0 + lax.broadcasted_iota(jnp.int32, (s_pad, tile_n), 1)
    member_t = jnp.logical_and(rows >= start_ref[...], rows < end_ref[...])
    member_t = member_t.astype(jnp.float32)

    # Zero rows beyond N (ragged tail / duplicated clamped tile) so that
    # unspecified out-of-bounds input data cannot contaminate the sum.
    row_ids = row0 + lax.broadcasted_iota(jnp.int32, (tile_n, 1), 0)
    x_in = jnp.where(row_ids < n_points, x_ref[...], 0.0)

    part_ref[...] += jnp.dot(member_t, x_in,
                             preferred_element_type=jnp.float32)[None]


# ---------------------------------------------------------------------------
# Kernel B: fused linear1 (+folded BN) + ReLU, tiled over points.
#   y = ReLU(x @ W1x + member @ h2w)   with  h2w = h2 @ W1h + bias  (prefolded)
# ---------------------------------------------------------------------------
def transition_up_kernel(x_ref, start_ref, end_ref, h2w_ref, w1x_ref, o_ref):
    tile_n = x_ref.shape[0]
    s_pad = h2w_ref.shape[0]
    row0 = pl.program_id(0) * tile_n

    rows = row0 + lax.broadcasted_iota(jnp.int32, (tile_n, s_pad), 0)
    member = jnp.logical_and(rows >= start_ref[...], rows < end_ref[...])
    member = member.astype(jnp.float32)                  # [tile_n, Sp]

    gathered = jnp.dot(member, h2w_ref[...],
                       preferred_element_type=jnp.float32)   # [tile_n, C]
    y = jnp.dot(x_ref[...], w1x_ref[...],
                preferred_element_type=jnp.float32) + gathered
    o_ref[...] = jnp.maximum(y, 0.0)


# ---------------------------------------------------------------------------
# Wrapper
# ---------------------------------------------------------------------------
def transition_up(x, o, params, *, tile_n=1024):
    """TransitionUp forward (pxo2=None branch, eval-mode BN).

    x: [N, C] float32 point features.
    o: [S] int32 cumulative segment offsets (o[-1] == N).
    params: w1 [2C, C], b1 [C], w2 [C, C], b2 [C],
            bn_weight / bn_bias / bn_mean / bn_var [C], bn_eps (float).
    (Linear weights are in math layout [in, out].)
    """
    N, C = x.shape
    S = o.shape[0]
    assert tile_n % 8 == 0, "tile_n must be a multiple of 8"
    Sp = _round_up(S, 8)                   # sublane-friendly segment count
    n_tiles = pl.cdiv(N, tile_n)           # python int (static shapes)
    n_half = -(-n_tiles // 2)              # tiles per megacore half

    x = x.astype(jnp.float32)

    # ---- segment bookkeeping (jnp only -> jit-able with traced offsets)
    o = o.astype(jnp.int32)
    ends = o
    starts = jnp.concatenate([jnp.zeros((1,), jnp.int32), o[:-1]])
    counts = (ends - starts).astype(jnp.float32)
    inv_cnt = jnp.where(counts > 0, 1.0 / jnp.maximum(counts, 1.0), 0.0)
    starts_p = jnp.pad(starts, (0, Sp - S))        # pads: start=end=0 -> empty
    ends_p = jnp.pad(ends, (0, Sp - S))
    inv_p = jnp.pad(inv_cnt, (0, Sp - S))
    seg_start_r = starts_p.reshape(Sp, 1)
    seg_end_r = ends_p.reshape(Sp, 1)
    seg_start_c = starts_p.reshape(1, Sp)
    seg_end_c = ends_p.reshape(1, Sp)

    # ---- Kernel A: tiled per-segment sums, split across two halves
    kernel_a = functools.partial(seg_sum_kernel, n_points=N, n_half=n_half)
    partial = pl.pallas_call(
        kernel_a,
        out_shape=jax.ShapeDtypeStruct((2, Sp, C), jnp.float32),
        grid=(2, n_half),
        in_specs=[
            # clamp duplicated tail tile; its rows are masked off in-kernel
            pl.BlockSpec((tile_n, C),
                         lambda p, k: (jnp.minimum(p * n_half + k,
                                                   n_tiles - 1), 0)),
            pl.BlockSpec((Sp, 1), lambda p, k: (0, 0)),    # segment starts
            pl.BlockSpec((Sp, 1), lambda p, k: (0, 0)),    # segment ends
        ],
        out_specs=pl.BlockSpec((1, Sp, C), lambda p, k: (p, 0, 0)),
        compiler_params=pltpu.CompilerParams(
            dimension_semantics=("parallel", "arbitrary")),
    )(x, seg_start_r, seg_end_r)

    # ---- tiny [S, C] epilogue in plain XLA: mean -> linear2 -> ReLU, then
    #      fold eval-mode BN into linear1 and pre-multiply the h2 half of W1.
    seg_sum = partial[0] + partial[1]                       # [Sp, C]
    mean = seg_sum * inv_p[:, None]
    h2 = jnp.maximum(mean @ params["w2"] + params["b2"], 0.0)

    scale = params["bn_weight"] / jnp.sqrt(params["bn_var"] + params["bn_eps"])
    shift = params["bn_bias"] - params["bn_mean"] * scale
    w1 = params["w1"] * scale[None, :]                      # [2C, C] BN folded
    bias1 = params["b1"] * scale + shift                    # [C]
    w1x = w1[:C].astype(jnp.float32)                        # x part   [C, C]
    w1h = w1[C:]                                            # h2 part  [C, C]
    h2w = (h2 @ w1h + bias1[None, :]).astype(jnp.float32)   # [Sp, C]

    # ---- Kernel B: fused linear1 (+folded BN) + ReLU, tiled over points
    out = pl.pallas_call(
        transition_up_kernel,
        out_shape=jax.ShapeDtypeStruct((N, C), jnp.float32),
        grid=(n_tiles,),
        in_specs=[
            pl.BlockSpec((tile_n, C), lambda i: (i, 0)),    # x tile
            pl.BlockSpec((1, Sp), lambda i: (0, 0)),        # segment starts
            pl.BlockSpec((1, Sp), lambda i: (0, 0)),        # segment ends
            pl.BlockSpec((Sp, C), lambda i: (0, 0)),        # h2 @ W1h + bias
            pl.BlockSpec((C, C), lambda i: (0, 0)),         # W1x (BN folded)
        ],
        out_specs=pl.BlockSpec((tile_n, C), lambda i: (i, 0)),
        compiler_params=pltpu.CompilerParams(
            dimension_semantics=("parallel",)),
    )(x, seg_start_c, seg_end_c, h2w, w1x)

    return out


# ---------------------------------------------------------------------------
# Pure-JAX reference (mirrors the PyTorch forward, eval-mode BN), f32
# ---------------------------------------------------------------------------
def reference(x, o, params):
    w1, b1, w2, b2 = params["w1"], params["b1"], params["w2"], params["b2"]
    scale = params["bn_weight"] / jnp.sqrt(params["bn_var"] + params["bn_eps"])
    shift = params["bn_bias"] - params["bn_mean"] * scale
    o_np = np.asarray(o)
    segs, start = [], 0
    for i in range(o_np.shape[0]):
        end = int(o_np[i])
        cnt = end - start
        xb = x[start:end]
        pooled = xb.sum(0, keepdims=True) / cnt
        h = jnp.maximum(pooled @ w2 + b2, 0.0)
        segs.append(jnp.concatenate([xb, jnp.tile(h, (cnt, 1))], axis=1))
        start = end
    xc = jnp.concatenate(segs, axis=0)           # [N, 2C]
    y = (xc @ w1 + b1) * scale + shift
    return jnp.maximum(y, 0.0)


if __name__ == "__main__":
    C = 32                                            # in_planes (out_planes=None)
    o = jnp.array([400, 401, 1000], dtype=jnp.int32)  # 3 ragged segments, N=1000
    N = int(o[-1])

    key = jax.random.PRNGKey(0)
    ks = jax.random.split(key, 9)
    x = jax.random.normal(ks[0], (N, C), dtype=jnp.float32)

    # linear1: Linear(2C, C)  (math layout [in, out])
    bound1 = 1.0 / np.sqrt(2 * C)
    w1 = jax.random.uniform(ks[1], (2 * C, C), minval=-bound1, maxval=bound1,
                            dtype=jnp.float32)
    b1 = jax.random.uniform(ks[2], (C,), minval=-bound1, maxval=bound1,
                            dtype=jnp.float32)
    # linear2: Linear(C, C)
    bound2 = 1.0 / np.sqrt(C)
    w2 = jax.random.uniform(ks[3], (C, C), minval=-bound2, maxval=bound2,
                            dtype=jnp.float32)
    b2 = jax.random.uniform(ks[4], (C,), minval=-bound2, maxval=bound2,
                            dtype=jnp.float32)
    # BatchNorm1d(C), eval mode
    gamma = 1.0 + 0.1 * jax.random.normal(ks[5], (C,), dtype=jnp.float32)
    beta = 0.1 * jax.random.normal(ks[6], (C,), dtype=jnp.float32)
    bn_mean = 0.1 * jax.random.normal(ks[7], (C,), dtype=jnp.float32)
    bn_var = 1.0 + 0.2 * jax.random.uniform(ks[8], (C,), dtype=jnp.float32)

    params = dict(w1=w1, b1=b1, w2=w2, b2=b2,
                  bn_weight=gamma, bn_bias=beta,
                  bn_mean=bn_mean, bn_var=bn_var, bn_eps=1e-5)

    fwd = jax.jit(transition_up, static_argnames=("tile_n",))
    out = jax.block_until_ready(fwd(x, o, params))

    ref = reference(x, o, params)
    assert out.shape == (N, C)
    assert np.allclose(np.asarray(out), np.asarray(ref), atol=1e-2, rtol=1e-2), \
        "Pallas output does not match reference"
    print("KERNEL_OK")
</pallas_src>

<mosaic_0001>
module attributes {stable_mosaic.version = 11 : i64} {
  func.func @seg_sum_kernel(%arg0: i32, %arg1: i32, %arg2: memref<1024x32xf32, #tpu.memory_space<vmem>>, %arg3: memref<8x1xi32, #tpu.memory_space<vmem>>, %arg4: memref<8x1xi32, #tpu.memory_space<vmem>>, %arg5: memref<1x8x32xf32, #tpu.memory_space<vmem>>) attributes {dimension_semantics = [#tpu.dimension_semantics<parallel>, #tpu.dimension_semantics<arbitrary>], iteration_bounds = array<i64: 2, 1>, scalar_prefetch = 0 : i64, scratch_operands = 0 : i64, tpu.core_type = #tpu.core_type<tc>, window_params = [{transform_indices = @transform_0, window_bounds = array<i64: 1024, 32>}, {pipeline_mode = #tpu.pipeline_mode<synchronous>, transform_indices = @transform_1, window_bounds = array<i64: 8, 1>}, {pipeline_mode = #tpu.pipeline_mode<synchronous>, transform_indices = @transform_2, window_bounds = array<i64: 8, 1>}, {transform_indices = @transform_3, window_bounds = array<i64: 1, 8, 32>}]} {
    %c0_i32 = arith.constant 0 : i32
    %0 = arith.cmpi eq, %arg1, %c0_i32 : i32
    %1 = arith.extui %0 : i1 to i32
    %c0_i32_0 = arith.constant 0 : i32
    %2 = arith.cmpi ne, %1, %c0_i32_0 : i32
    scf.if %2 {
      %cst_13 = arith.constant 0.000000e+00 : f32
      %33 = vector.broadcast %cst_13 : f32 to vector<1x8x32xf32>
      %c0_14 = arith.constant 0 : index
      %c0_15 = arith.constant 0 : index
      %c0_16 = arith.constant 0 : index
      %34 = vector.load %arg5[%c0_14, %c0_15, %c0_16] : memref<1x8x32xf32, #tpu.memory_space<vmem>>, vector<1x8x32xf32>
      tpu.vector_store %arg5[%c0_14, %c0_15, %c0_16], %33 {strides = array<i32>} : memref<1x8x32xf32, #tpu.memory_space<vmem>>, vector<1x8x32xf32>,
    } else {
    }
    %c1_i32 = arith.constant 1 : i32
    %3 = arith.muli %arg0, %c1_i32 : i32
    %4 = arith.addi %3, %arg1 : i32
    %c1024_i32 = arith.constant 1024 : i32
    %5 = arith.muli %4, %c1024_i32 : i32
    %6 = tpu.iota {dimensions = array<i32: 1>} : vector<8x1024xi32>
    %7 = vector.broadcast %5 : i32 to vector<8x1024xi32>
    %8 = arith.addi %7, %6 : vector<8x1024xi32>
    %c0 = arith.constant 0 : index
    %c0_1 = arith.constant 0 : index
    %9 = vector.load %arg3[%c0, %c0_1] : memref<8x1xi32, #tpu.memory_space<vmem>>, vector<8x1xi32>
    %10 = vector.broadcast %9 : vector<8x1xi32> to vector<8x1024xi32>
    %11 = arith.cmpi sge, %8, %10 : vector<8x1024xi32>
    %c0_2 = arith.constant 0 : index
    %c0_3 = arith.constant 0 : index
    %12 = vector.load %arg4[%c0_2, %c0_3] : memref<8x1xi32, #tpu.memory_space<vmem>>, vector<8x1xi32>
    %13 = vector.broadcast %12 : vector<8x1xi32> to vector<8x1024xi32>
    %14 = arith.cmpi slt, %8, %13 : vector<8x1024xi32>
    %15 = arith.andi %11, %14 : vector<8x1024xi1>
    %16 = arith.extui %15 : vector<8x1024xi1> to vector<8x1024xi32>
    %17 = arith.sitofp %16 : vector<8x1024xi32> to vector<8x1024xf32>
    %18 = tpu.iota {dimensions = array<i32: 0>} : vector<1024x1xi32>
    %19 = vector.broadcast %5 : i32 to vector<1024x1xi32>
    %20 = arith.addi %19, %18 : vector<1024x1xi32>
    %c1000_i32 = arith.constant 1000 : i32
    %21 = vector.broadcast %c1000_i32 : i32 to vector<1024x1xi32>
    %22 = arith.cmpi slt, %20, %21 : vector<1024x1xi32>
    %c0_4 = arith.constant 0 : index
    %c0_5 = arith.constant 0 : index
    %23 = vector.load %arg2[%c0_4, %c0_5] : memref<1024x32xf32, #tpu.memory_space<vmem>>, vector<1024x32xf32>
    %cst = arith.constant 0.000000e+00 : f32
    %24 = vector.shape_cast %22 : vector<1024x1xi1> to vector<1024x1xi1>
    %25 = vector.broadcast %24 : vector<1024x1xi1> to vector<1024x32xi1>
    %26 = vector.broadcast %cst : f32 to vector<1024x32xf32>
    %27 = arith.select %25, %23, %26 : vector<1024x32xi1>, vector<1024x32xf32>
    %c0_6 = arith.constant 0 : index
    %c0_7 = arith.constant 0 : index
    %c0_8 = arith.constant 0 : index
    %28 = vector.load %arg5[%c0_6, %c0_7, %c0_8] : memref<1x8x32xf32, #tpu.memory_space<vmem>>, vector<1x8x32xf32>
    %cst_9 = arith.constant dense<0.000000e+00> : vector<8x32xf32>
    %29 = tpu.matmul %17, %27, %cst_9 {dimension_numbers = #tpu.dot_dimension_numbers<[1], [0], [0], [1], [0, 0, 1, 1], [], []>} : vector<8x1024xf32>, vector<1024x32xf32>, vector<8x32xf32> -> vector<8x32xf32>
    %30 = vector.shape_cast %29 : vector<8x32xf32> to vector<1x8x32xf32>
    %31 = arith.addf %28, %30 : vector<1x8x32xf32>
    %c0_10 = arith.constant 0 : index
    %c0_11 = arith.constant 0 : index
    %c0_12 = arith.constant 0 : index
    %32 = vector.load %arg5[%c0_10, %c0_11, %c0_12] : memref<1x8x32xf32, #tpu.memory_space<vmem>>, vector<1x8x32xf32>
    tpu.vector_store %arg5[%c0_10, %c0_11, %c0_12], %31 {strides = array<i32>} : memref<1x8x32xf32, #tpu.memory_space<vmem>>, vector<1x8x32xf32>,
    return
  }
  func.func @transform_0(%arg0: i32, %arg1: i32) -> (i32, i32) {
    %c1_i32 = arith.constant 1 : i32
    %0 = arith.muli %arg0, %c1_i32 : i32
    %1 = arith.addi %0, %arg1 : i32
    %c0_i32 = arith.constant 0 : i32
    %2 = arith.minsi %1, %c0_i32 : i32
    %c0_i32_0 = arith.constant 0 : i32
    %c0_i32_1 = arith.constant 0 : i32
    return %2, %c0_i32_0 : i32, i32
  }
  func.func @transform_1(%arg0: i32, %arg1: i32) -> (i32, i32) {
    %c0_i32 = arith.constant 0 : i32
    %c0_i32_0 = arith.constant 0 : i32
    %c0_i32_1 = arith.constant 0 : i32
    return %c0_i32, %c0_i32_0 : i32, i32
  }
  func.func @transform_2(%arg0: i32, %arg1: i32) -> (i32, i32) {
    %c0_i32 = arith.constant 0 : i32
    %c0_i32_0 = arith.constant 0 : i32
    %c0_i32_1 = arith.constant 0 : i32
    return %c0_i32, %c0_i32_0 : i32, i32
  }
  func.func @transform_3(%arg0: i32, %arg1: i32) -> (i32, i32, i32) {
    %c0_i32 = arith.constant 0 : i32
    %c0_i32_0 = arith.constant 0 : i32
    %c0_i32_1 = arith.constant 0 : i32
    return %arg0, %c0_i32, %c0_i32_0 : i32, i32, i32
  }
}

module attributes {stable_mosaic.version = 11 : i64} {
  func.func @transition_up_kernel(%arg0: i32, %arg1: memref<1024x32xf32, #tpu.memory_space<vmem>>, %arg2: memref<1x8xi32, #tpu.memory_space<vmem>>, %arg3: memref<1x8xi32, #tpu.memory_space<vmem>>, %arg4: memref<8x32xf32, #tpu.memory_space<vmem>>, %arg5: memref<32x32xf32, #tpu.memory_space<vmem>>, %arg6: memref<1024x32xf32, #tpu.memory_space<vmem>>) attributes {dimension_semantics = [#tpu.dimension_semantics<parallel>], iteration_bounds = array<i64: 1>, scalar_prefetch = 0 : i64, scratch_operands = 0 : i64, tpu.core_type = #tpu.core_type<tc>, window_params = [{transform_indices = @transform_0, window_bounds = array<i64: 1024, 32>}, {pipeline_mode = #tpu.pipeline_mode<synchronous>, transform_indices = @transform_1, window_bounds = array<i64: 1, 8>}, {pipeline_mode = #tpu.pipeline_mode<synchronous>, transform_indices = @transform_2, window_bounds = array<i64: 1, 8>}, {pipeline_mode = #tpu.pipeline_mode<synchronous>, transform_indices = @transform_3, window_bounds = array<i64: 8, 32>}, {pipeline_mode = #tpu.pipeline_mode<synchronous>, transform_indices = @transform_4, window_bounds = array<i64: 32, 32>}, {transform_indices = @transform_5, window_bounds = array<i64: 1024, 32>}]} {
    %c1024_i32 = arith.constant 1024 : i32
    %0 = arith.muli %arg0, %c1024_i32 : i32
    %1 = tpu.iota {dimensions = array<i32: 0>} : vector<1024x8xi32>
    %2 = vector.broadcast %0 : i32 to vector<1024x8xi32>
    %3 = arith.addi %2, %1 : vector<1024x8xi32>
    %c0 = arith.constant 0 : index
    %c0_0 = arith.constant 0 : index
    %4 = vector.load %arg2[%c0, %c0_0] : memref<1x8xi32, #tpu.memory_space<vmem>>, vector<1x8xi32>
    %5 = vector.broadcast %4 : vector<1x8xi32> to vector<1024x8xi32>
    %6 = arith.cmpi sge, %3, %5 : vector<1024x8xi32>
    %c0_1 = arith.constant 0 : index
    %c0_2 = arith.constant 0 : index
    %7 = vector.load %arg3[%c0_1, %c0_2] : memref<1x8xi32, #tpu.memory_space<vmem>>, vector<1x8xi32>
    %8 = vector.broadcast %7 : vector<1x8xi32> to vector<1024x8xi32>
    %9 = arith.cmpi slt, %3, %8 : vector<1024x8xi32>
    %10 = arith.andi %6, %9 : vector<1024x8xi1>
    %11 = arith.extui %10 : vector<1024x8xi1> to vector<1024x8xi32>
    %12 = arith.sitofp %11 : vector<1024x8xi32> to vector<1024x8xf32>
    %c0_3 = arith.constant 0 : index
    %c0_4 = arith.constant 0 : index
    %13 = vector.load %arg4[%c0_3, %c0_4] : memref<8x32xf32, #tpu.memory_space<vmem>>, vector<8x32xf32>
    %cst = arith.constant dense<0.000000e+00> : vector<1024x32xf32>
    %14 = tpu.matmul %12, %13, %cst {dimension_numbers = #tpu.dot_dimension_numbers<[1], [0], [0], [1], [0, 0, 1, 1], [], []>} : vector<1024x8xf32>, vector<8x32xf32>, vector<1024x32xf32> -> vector<1024x32xf32>
    %c0_5 = arith.constant 0 : index
    %c0_6 = arith.constant 0 : index
    %15 = vector.load %arg1[%c0_5, %c0_6] : memref<1024x32xf32, #tpu.memory_space<vmem>>, vector<1024x32xf32>
    %c0_7 = arith.constant 0 : index
    %c0_8 = arith.constant 0 : index
    %16 = vector.load %arg5[%c0_7, %c0_8] : memref<32x32xf32, #tpu.memory_space<vmem>>, vector<32x32xf32>
    %cst_9 = arith.constant dense<0.000000e+00> : vector<1024x32xf32>
    %17 = tpu.matmul %15, %16, %cst_9 {dimension_numbers = #tpu.dot_dimension_numbers<[1], [0], [0], [1], [0, 0, 1, 1], [], []>} : vector<1024x32xf32>, vector<32x32xf32>, vector<1024x32xf32> -> vector<1024x32xf32>
    %18 = arith.addf %17, %14 : vector<1024x32xf32>
    %cst_10 = arith.constant 0.000000e+00 : f32
    %19 = vector.broadcast %cst_10 : f32 to vector<1024x32xf32>
    %20 = arith.maximumf %18, %19 : vector<1024x32xf32>
    %c0_11 = arith.constant 0 : index
    %c0_12 = arith.constant 0 : index
    %21 = vector.load %arg6[%c0_11, %c0_12] : memref<1024x32xf32, #tpu.memory_space<vmem>>, vector<1024x32xf32>
    tpu.vector_store %arg6[%c0_11, %c0_12], %20 {strides = array<i32>} : memref<1024x32xf32, #tpu.memory_space<vmem>>, vector<1024x32xf32>,
    return
  }
  func.func @transform_0(%arg0: i32) -> (i32, i32) {
    %c0_i32 = arith.constant 0 : i32
    %c0_i32_0 = arith.constant 0 : i32
    return %arg0, %c0_i32 : i32, i32
  }
  func.func @transform_1(%arg0: i32) -> (i32, i32) {
    %c0_i32 = arith.constant 0 : i32
    %c0_i32_0 = arith.constant 0 : i32
    %c0_i32_1 = arith.constant 0 : i32
    return %c0_i32, %c0_i32_0 : i32, i32
  }
  func.func @transform_2(%arg0: i32) -> (i32, i32) {
    %c0_i32 = arith.constant 0 : i32
    %c0_i32_0 = arith.constant 0 : i32
    %c0_i32_1 = arith.constant 0 : i32
    return %c0_i32, %c0_i32_0 : i32, i32
  }
  func.func @transform_3(%arg0: i32) -> (i32, i32) {
    %c0_i32 = arith.constant 0 : i32
    %c0_i32_0 = arith.constant 0 : i32
    %c0_i32_1 = arith.constant 0 : i32
    return %c0_i32, %c0_i32_0 : i32, i32
  }
  func.func @transform_4(%arg0: i32) -> (i32, i32) {
    %c0_i32 = arith.constant 0 : i32
    %c0_i32_0 = arith.constant 0 : i32
    %c0_i32_1 = arith.constant 0 : i32
    return %c0_i32, %c0_i32_0 : i32, i32
  }
  func.func @transform_5(%arg0: i32) -> (i32, i32) {
    %c0_i32 = arith.constant 0 : i32
    %c0_i32_0 = arith.constant 0 : i32
    return %arg0, %c0_i32 : i32, i32
  }
}

</mosaic_0001>

<bundles_post_ra>
// kernel: transition_up.2
= control target key start
LH: loop header
LB: loop body
LE: loop exit
PB: predicated region body
PF: predicated region fallthrough
CT: control target
= control target key end

     0   :  { %s2092_s12 = smov 0   ;;  %s2094_s13 = smov 0   ;;  %s3218_s0 = inlined_call_operand.vmem [shape: f32[1000,32], index: 0, kind: input, shape index: {}]   ;;  %s3219_s1 = inlined_call_operand.vmem [shape: s32[8,1], index: 1, kind: input, shape index: {}]   ;;  %s3220_s2 = inlined_call_operand.vmem [shape: s32[8,1], index: 2, kind: input, shape index: {}]   ;;  %s3221_s3 = inlined_call_operand.vmem [shape: f32[2,8,32], index: 3, kind: output, shape index: {}]  }
   0x1   :  { %s2096_s14 = smov 0  }
   0x2 LB: > { %s25_s15 = sadd.s32 1, %s2063_s13  ;;  %p1534_p0 = scmp.ge.s32.totalorder %s2067_s14, 1  ;;  %s2067_s14 = sphi %s2096_s14, %s13_s14   ;;  %s2063_s13 = sphi %s2094_s13, %s3364_s13   ;;  %s2059_s12 = sphi %s2092_s12, %s3363_s12  }
   0x3   : > { %p27_p1 = scmp.ge.s32.totalorder %s25_s15, 2  ;;  %p166_p2 = scmp.lt.s32.totalorder %s2067_s14, 3 }
   0x5   : > { %s3366_s15 = smov (%p27_p1, %s25_s15), 0  ;;  %p167_p3 = pnand %p1534_p0, %p166_p2 }
   0x7   : > { %170 = sbr.rel (%p167_p3) target bundleno = 411 (0x19b), region = 32 }
   0xe   : > { %v240_v0 = vld [vmem:[%s3219_s1] sm:$0xff]  ;;  %p195_p4 = scmp.lt.s32.totalorder %s2059_s12, 0  ;;  %s1538_s18 = sshll.u32 %s2059_s12, 10  ;;  %v222_v1 = vlaneseq  ;;  %v2069_v2 = vmov 0  }
   0xf   : > { %2044 = vset.pattern.permute.xlu0 %v2069_v2  ;;  %v2118_v3 = vstv %s1538_s18  ;;  %v252_v5 = vld [vmem:[%s3220_s2] sm:$0xff]  ;;  %p210_p6 = scmp.lt.s32.totalorder %s2059_s12, 1 }
  0x10   : > { %242 = vperm.xlu0 %2044, %v240_v0   ;;  %s196_s19 = scalar_select %p195_p4, %s2059_s12, 0  ;;  %v2121_v4 = vshrl.u32 %v222_v1, 7 }
  0x11   : > { %s3370_s12 = smov (!%p210_p6, %s2059_s12), 1 }
  0x12   : > { %s1535_s22 = sshll.u32 %s196_s19, 7  ;;  %v305_v6 = vadd.s32 128, %v2121_v4  ;;  %v306_v7 = vadd.s32 136, %v2121_v4  ;;  %v337_v8 = vadd.s32 384, %v2121_v4  ;;  %v338_v9 = vadd.s32 392, %v2121_v4  ;;  %s1537_s27 = sshll.u32 %s3370_s12, 3 }
  0x13   : > { %p200_p5 = scmp.lt.s32.totalorder %s1535_s22, 124  ;;  %v290_v10 = vadd.s32 8, %v2121_v4  ;;  %v417_v11 = vadd.s32 %v2121_v4, %v2118_v3  ;;  %v321_v12 = vadd.s32 256, %v2121_v4  ;;  %v322_v13 = vadd.s32 264, %v2121_v4  ;;  %s213_s30 = scalar_lea.vmem %s3221_s3, %s1537_s27 }
  0x14   : > { %254 = vperm.xlu0 %2044, %v252_v5   ;;  %v433_v14 = vadd.s32 %v305_v6, %v2118_v3  ;;  %v434_v15 = vadd.s32 %v306_v7, %v2118_v3  ;;  %v465_v16 = vadd.s32 %v337_v8, %v2118_v3  ;;  %v466_v17 = vadd.s32 %v338_v9, %v2118_v3 }
  0x15   : > { %s3368_s22 = smov (!%p200_p5, %s1535_s22), 124  ;;  %v418_v18 = vadd.s32 %v290_v10, %v2118_v3  ;;  %vm545_vm0 = vcmp.lt.s32.totalorder %v417_v11, 1000  ;;  %v449_v19 = vadd.s32 %v321_v12, %v2118_v3  ;;  %v450_v20 = vadd.s32 %v322_v13, %v2118_v3 }
  0x16   : > { %vm561_vm1 = vcmp.lt.s32.totalorder %v433_v14, 1000  ;;  %vm562_vm2 = vcmp.lt.s32.totalorder %v434_v15, 1000  ;;  %vm593_vm3 = vcmp.lt.s32.totalorder %v465_v16, 1000  ;;  %vm594_vm4 = vcmp.lt.s32.totalorder %v466_v17, 1000  ;;  %s1536_s23 = sshll.u32 %s3368_s22, 3 }
  0x17   : > { %vm2142_vm5 = vmpackc.low %vm562_vm2, %vm561_vm1  ;;  %vm546_vm6 = vcmp.lt.s32.totalorder %v418_v18, 1000  ;;  %vm577_vm7 = vcmp.lt.s32.totalorder %v449_v19, 1000  ;;  %vm578_vm8 = vcmp.lt.s32.totalorder %v450_v20, 1000  ;;  %v307_v22 = vadd.s32 144, %v2121_v4  ;;  %s2150_s26 = scalar_lea.vmem %s3218_s0, %s1536_s23 }
  0x18   : > { %vm2152_vm9 = vmpackc.low %vm594_vm4, %vm593_vm3  ;;  %v308_v24 = vadd.s32 152, %v2121_v4  ;;  %v339_v25 = vadd.s32 400, %v2121_v4  ;;  %v340_v26 = vadd.s32 408, %v2121_v4  ;;  %v291_v27 = vadd.s32 16, %v2121_v4  ;;  %v689_v28 = vld [vmem:[%s2150_s26 + $0x80] sm:$0xff]  ;;  %v690_v29 = vld [vmem:[%s2150_s26 + $0x88] sm:$0xff] }
  0x19   : > { %v721_v30 = vld [vmem:[%s2150_s26 + $0x180] sm:$0xff]  ;;  %v435_v31 = vadd.s32 %v307_v22, %v2118_v3  ;;  %v292_v32 = vadd.s32 24, %v2121_v4  ;;  %v323_v33 = vadd.s32 272, %v2121_v4  ;;  %v324_v34 = vadd.s32 280, %v2121_v4  ;;  %v722_v36 = vld [vmem:[%s2150_s26 + $0x188] sm:$0xff]  ;;  %vm1829_vm10 = vmpackc.low %vm546_vm6, %vm545_vm0 }
  0x1a   : > { %v1825_v35 = vpack.c.bf16 %v690_v29, %v689_v28  ;;  %v673_v37 = vld [vmem:[%s2150_s26] sm:$0xff]  ;;  %v674_v38 = vld [vmem:[%s2150_s26 + $0x8] sm:$0xff]  ;;  %v436_v39 = vadd.s32 %v308_v24, %v2118_v3  ;;  %v467_v40 = vadd.s32 %v339_v25, %v2118_v3  ;;  %v468_v41 = vadd.s32 %v340_v26, %v2118_v3  ;;  %vm1877_vm12 = vmpackc.low %vm578_vm8, %vm577_vm7 }
  0x1b   : > { %v1873_v42 = vpack.c.bf16 %v722_v36, %v721_v30  ;;  %v1828_v43 = vpack.c.bf16 %v674_v38, %v673_v37  ;;  %v705_v44 = vld [vmem:[%s2150_s26 + $0x100] sm:$0xff]  ;;  %v706_v45 = vld [vmem:[%s2150_s26 + $0x108] sm:$0xff]  ;;  %vm563_vm11 = vcmp.lt.s32.totalorder %v435_v31, 1000  ;;  %v419_v46 = vadd.s32 %v291_v27, %v2118_v3  ;;  %v691_v48 = vld [vmem:[%s2150_s26 + $0x90] sm:$0xff] }
  0x1c   : > { %1827 = vmatprep.subr.msk.bf16.mxu0 %vm2142_vm5, %v1825_v35  ;;  %v1876_v47 = vpack.c.bf16 %v706_v45, %v705_v44  ;;  %vm564_vm13 = vcmp.lt.s32.totalorder %v436_v39, 1000  ;;  %v692_v49 = vld [vmem:[%s2150_s26 + $0x98] sm:$0xff]  ;;  %vm595_vm14 = vcmp.lt.s32.totalorder %v467_v40, 1000  ;;  %vm596_vm15 = vcmp.lt.s32.totalorder %v468_v41, 1000  ;;  %v723_v51 = vld [vmem:[%s2150_s26 + $0x190] sm:$0xff]  ;;  %v693_v0 = vld [vmem:[%s2150_s26 + $0xa0] sm:$0xff] }
  0x1d   : > { %1875 = vmatprep.subr.msk.bf16.mxu1 %vm2152_vm9, %v1873_v42  ;;  %1830 = vmatpush3.bf16.msk.msra.mxu0 %vm1829_vm10, %v1828_v43  ;;  %v1831_v50 = vpack.c.bf16 %v692_v49, %v691_v48  ;;  %vm1832_vm0 = vmpackc.low %vm564_vm13, %vm563_vm11  ;;  %v724_v52 = vld [vmem:[%s2150_s26 + $0x198] sm:$0xff]  ;;  %v420_v53 = vadd.s32 %v292_v32, %v2118_v3  ;;  %vm547_vm1 = vcmp.lt.s32.totalorder %v419_v46, 1000  ;;  %v451_v54 = vadd.s32 %v323_v33, %v2118_v3  ;;  %v675_v56 = vld [vmem:[%s2150_s26 + $0x10] sm:$0xff] }
  0x1e   : > { %1878 = vmatpush3.bf16.msk.msra.mxu1 %vm1877_vm12, %v1876_v47  ;;  %v1879_v55 = vpack.c.bf16 %v724_v52, %v723_v51  ;;  %vm1880_vm2 = vmpackc.low %vm596_vm15, %vm595_vm14  ;;  %v676_v57 = vld [vmem:[%s2150_s26 + $0x18] sm:$0xff]  ;;  %v452_v58 = vadd.s32 %v324_v34, %v2118_v3  ;;  %v309_v59 = vadd.s32 160, %v2121_v4  ;;  %v310_v60 = vadd.s32 168, %v2121_v4  ;;  %v707_v62 = vld [vmem:[%s2150_s26 + $0x110] sm:$0xff] }
  0x1f   : > { %1833 = vmatprep.subr.msk.bf16.mxu0 %vm1832_vm0, %v1831_v50  ;;  %vm548_vm3 = vcmp.lt.s32.totalorder %v420_v53, 1000  ;;  %v1834_v61 = vpack.c.bf16 %v676_v57, %v675_v56  ;;  %vm579_vm4 = vcmp.lt.s32.totalorder %v451_v54, 1000  ;;  %v708_v63 = vld [vmem:[%s2150_s26 + $0x118] sm:$0xff]  ;;  %v341_v2 = vadd.s32 416, %v2121_v4  ;;  %v694_v8 = vld [vmem:[%s2150_s26 + $0xa8] sm:$0xff]  ;;  %v725_v9 = vld [vmem:[%s2150_s26 + $0x1a0] sm:$0xff] }
  0x20   : > { %1881 = vmatprep.subr.msk.bf16.mxu1 %vm1880_vm2, %v1879_v55  ;;  %vm1835_vm5 = vmpackc.low %vm548_vm3, %vm547_vm1  ;;  %vm580_vm6 = vcmp.lt.s32.totalorder %v452_v58, 1000  ;;  %v1882_v5 = vpack.c.bf16 %v708_v63, %v707_v62  ;;  %v437_v6 = vadd.s32 %v309_v59, %v2118_v3  ;;  %v438_v7 = vadd.s32 %v310_v60, %v2118_v3  ;;  %v726_v13 = vld [vmem:[%s2150_s26 + $0x1a8] sm:$0xff]  ;;  %v677_v15 = vld [vmem:[%s2150_s26 + $0x20] sm:$0xff] }
  0x21   : > { %1836 = vmatpush3.bf16.msk.msra.mxu0 %vm1835_vm5, %v1834_v61  ;;  %vm1883_vm7 = vmpackc.low %vm580_vm6, %vm579_vm4  ;;  %v1837_v10 = vpack.c.bf16 %v694_v8, %v693_v0  ;;  %v342_v11 = vadd.s32 424, %v2121_v4  ;;  %v469_v12 = vadd.s32 %v341_v2, %v2118_v3  ;;  %v293_v14 = vadd.s32 32, %v2121_v4  ;;  %v678_v18 = vld [vmem:[%s2150_s26 + $0x28] sm:$0xff]  ;;  %v709_v19 = vld [vmem:[%s2150_s26 + $0x120] sm:$0xff] }
  0x22   : > { %1884 = vmatpush3.bf16.msk.msra.mxu1 %vm1883_vm7, %v1882_v5  ;;  %vm565_vm8 = vcmp.lt.s32.totalorder %v437_v6, 1000  ;;  %vm566_vm9 = vcmp.lt.s32.totalorder %v438_v7, 1000  ;;  %v1885_v16 = vpack.c.bf16 %v726_v13, %v725_v9  ;;  %v294_v17 = vadd.s32 40, %v2121_v4  ;;  %v710_v20 = vld [vmem:[%s2150_s26 + $0x128] sm:$0xff]  ;;  %v695_v24 = vld [vmem:[%s2150_s26 + $0xb0] sm:$0xff]  ;;  %v696_v25 = vld [vmem:[%s2150_s26 + $0xb8] sm:$0xff] }
  0x23   : > { %vm1838_vm10 = vmpackc.low %vm566_vm9, %vm565_vm8  ;;  %v470_v21 = vadd.s32 %v342_v11, %v2118_v3  ;;  %vm597_vm11 = vcmp.lt.s32.totalorder %v469_v12, 1000  ;;  %v421_v22 = vadd.s32 %v293_v14, %v2118_v3  ;;  %v1840_v23 = vpack.c.bf16 %v678_v18, %v677_v15  ;;  %v727_v32 = vld [vmem:[%s2150_s26 + $0x1b0] sm:$0xff]  ;;  %v728_v33 = vld [vmem:[%s2150_s26 + $0x1b8] sm:$0xff] }
  0x24   : > { %1839 = vmatprep.subr.msk.bf16.mxu0 %vm1838_vm10, %v1837_v10  ;;  %v422_v26 = vadd.s32 %v294_v17, %v2118_v3  ;;  %v325_v27 = vadd.s32 288, %v2121_v4  ;;  %v326_v28 = vadd.s32 296, %v2121_v4  ;;  %v1888_v29 = vpack.c.bf16 %v710_v20, %v709_v19  ;;  %v679_v41 = vld [vmem:[%s2150_s26 + $0x30] sm:$0xff]  ;;  %v680_v42 = vld [vmem:[%s2150_s26 + $0x38] sm:$0xff]  ;;  %v697_v53 = vld [vmem:[%s2150_s26 + $0xc0] sm:$0xff] }
  0x25   : > { %vm598_vm12 = vcmp.lt.s32.totalorder %v470_v21, 1000  ;;  %vm549_vm13 = vcmp.lt.s32.totalorder %v421_v22, 1000  ;;  %v311_v30 = vadd.s32 176, %v2121_v4  ;;  %v312_v31 = vadd.s32 184, %v2121_v4  ;;  %v711_v45 = vld [vmem:[%s2150_s26 + $0x130] sm:$0xff]  ;;  %v712_v46 = vld [vmem:[%s2150_s26 + $0x138] sm:$0xff] }
  0x26   : > { %vm1886_vm14 = vmpackc.low %vm598_vm12, %vm597_vm11  ;;  %vm550_vm15 = vcmp.lt.s32.totalorder %v422_v26, 1000  ;;  %v453_v34 = vadd.s32 %v325_v27, %v2118_v3  ;;  %v454_v35 = vadd.s32 %v326_v28, %v2118_v3  ;;  %v1843_v36 = vpack.c.bf16 %v696_v25, %v695_v24  ;;  %v698_v54 = vld [vmem:[%s2150_s26 + $0xc8] sm:$0xff]  ;;  %v729_v60 = vld [vmem:[%s2150_s26 + $0x1c0] sm:$0xff] }
  0x27   : > { %1887 = vmatprep.subr.msk.bf16.mxu1 %vm1886_vm14, %v1885_v16  ;;  %vm1841_vm0 = vmpackc.low %vm550_vm15, %vm549_vm13  ;;  %v439_v37 = vadd.s32 %v311_v30, %v2118_v3  ;;  %v440_v38 = vadd.s32 %v312_v31, %v2118_v3  ;;  %v343_v39 = vadd.s32 432, %v2121_v4  ;;  %v344_v40 = vadd.s32 440, %v2121_v4  ;;  %v730_v61 = vld [vmem:[%s2150_s26 + $0x1c8] sm:$0xff]  ;;  %v681_v7 = vld [vmem:[%s2150_s26 + $0x40] sm:$0xff] }
  0x28   : > { %1842 = vmatpush3.bf16.msk.msra.mxu0 %vm1841_vm0, %v1840_v23  ;;  %vm581_vm1 = vcmp.lt.s32.totalorder %v453_v34, 1000  ;;  %vm582_vm2 = vcmp.lt.s32.totalorder %v454_v35, 1000  ;;  %v1891_v43 = vpack.c.bf16 %v728_v33, %v727_v32  ;;  %v295_v44 = vadd.s32 48, %v2121_v4  ;;  %v682_v8 = vld [vmem:[%s2150_s26 + $0x48] sm:$0xff]  ;;  %v713_v15 = vld [vmem:[%s2150_s26 + $0x140] sm:$0xff]  ;;  %v699_v19 = vld [vmem:[%s2150_s26 + $0xd0] sm:$0xff] }
  0x29   : > { %vm1889_vm3 = vmpackc.low %vm582_vm2, %vm581_vm1  ;;  %vm567_vm4 = vcmp.lt.s32.totalorder %v439_v37, 1000  ;;  %vm568_vm5 = vcmp.lt.s32.totalorder %v440_v38, 1000  ;;  %v471_v47 = vadd.s32 %v343_v39, %v2118_v3  ;;  %v472_v48 = vadd.s32 %v344_v40, %v2118_v3  ;;  %v714_v16 = vld [vmem:[%s2150_s26 + $0x148] sm:$0xff]  ;;  %v700_v20 = vld [vmem:[%s2150_s26 + $0xd8] sm:$0xff] }
  0x2a   : > { %1890 = vmatpush3.bf16.msk.msra.mxu1 %vm1889_vm3, %v1888_v29  ;;  %vm1844_vm6 = vmpackc.low %vm568_vm5, %vm567_vm4  ;;  %v296_v49 = vadd.s32 56, %v2121_v4  ;;  %v423_v50 = vadd.s32 %v295_v44, %v2118_v3  ;;  %v1846_v51 = vpack.c.bf16 %v680_v42, %v679_v41  ;;  %v327_v52 = vadd.s32 304, %v2121_v4  ;;  %v731_v28 = vld [vmem:[%s2150_s26 + $0x1d0] sm:$0xff]  ;;  %v732_v29 = vld [vmem:[%s2150_s26 + $0x1d8] sm:$0xff] }
  0x2b   : > { %1845 = vmatprep.subr.msk.bf16.mxu0 %vm1844_vm6, %v1843_v36  ;;  %vm599_vm7 = vcmp.lt.s32.totalorder %v471_v47, 1000  ;;  %vm600_vm8 = vcmp.lt.s32.totalorder %v472_v48, 1000  ;;  %v328_v55 = vadd.s32 312, %v2121_v4  ;;  %v1894_v56 = vpack.c.bf16 %v712_v46, %v711_v45  ;;  %v683_v35 = vld [vmem:[%s2150_s26 + $0x50] sm:$0xff]  ;;  %v684_v36 = vld [vmem:[%s2150_s26 + $0x58] sm:$0xff]  ;;  %v701_v48 = vld [vmem:[%s2150_s26 + $0xe0] sm:$0xff] }
  0x2c   : > { %vm1892_vm9 = vmpackc.low %vm600_vm8, %vm599_vm7  ;;  %v424_v57 = vadd.s32 %v296_v49, %v2118_v3  ;;  %vm551_vm10 = vcmp.lt.s32.totalorder %v423_v50, 1000  ;;  %v455_v58 = vadd.s32 %v327_v52, %v2118_v3  ;;  %v313_v59 = vadd.s32 192, %v2121_v4  ;;  %v715_v40 = vld [vmem:[%s2150_s26 + $0x150] sm:$0xff]  ;;  %v716_v41 = vld [vmem:[%s2150_s26 + $0x158] sm:$0xff] }
  0x2d   : > { %1893 = vmatprep.subr.msk.bf16.mxu1 %vm1892_vm9, %v1891_v43  ;;  %v456_v62 = vadd.s32 %v328_v55, %v2118_v3  ;;  %v314_v63 = vadd.s32 200, %v2121_v4  ;;  %v1849_v0 = vpack.c.bf16 %v698_v54, %v697_v53  ;;  %v345_v2 = vadd.s32 448, %v2121_v4  ;;  %v702_v49 = vld [vmem:[%s2150_s26 + $0xe8] sm:$0xff]  ;;  %v733_v55 = vld [vmem:[%s2150_s26 + $0x1e0] sm:$0xff] }
  0x2e   : > { %vm552_vm11 = vcmp.lt.s32.totalorder %v424_v57, 1000  ;;  %vm583_vm12 = vcmp.lt.s32.totalorder %v455_v58, 1000  ;;  %v441_v5 = vadd.s32 %v313_v59, %v2118_v3  ;;  %v346_v6 = vadd.s32 456, %v2121_v4 }
  0x2f   : > { %vm1847_vm13 = vmpackc.low %vm552_vm11, %vm551_vm10  ;;  %vm584_vm14 = vcmp.lt.s32.totalorder %v456_v62, 1000  ;;  %v442_v9 = vadd.s32 %v314_v63, %v2118_v3  ;;  %v473_v10 = vadd.s32 %v345_v2, %v2118_v3  ;;  %v1897_v11 = vpack.c.bf16 %v730_v61, %v729_v60  ;;  %v685_v63 = vld [vmem:[%s2150_s26 + $0x60] sm:$0xff] }
  0x30   : > { %1848 = vmatpush3.bf16.msk.msra.mxu0 %vm1847_vm13, %v1846_v51  ;;  %vm1895_vm15 = vmpackc.low %vm584_vm14, %vm583_vm12  ;;  %vm569_vm0 = vcmp.lt.s32.totalorder %v441_v5, 1000  ;;  %v474_v12 = vadd.s32 %v346_v6, %v2118_v3  ;;  %v297_v13 = vadd.s32 64, %v2121_v4  ;;  %v298_v14 = vadd.s32 72, %v2121_v4 }
  0x31   : > { %1896 = vmatpush3.bf16.msk.msra.mxu1 %vm1895_vm15, %v1894_v56  ;;  %vm570_vm1 = vcmp.lt.s32.totalorder %v442_v9, 1000  ;;  %vm601_vm2 = vcmp.lt.s32.totalorder %v473_v10, 1000  ;;  %v1852_v17 = vpack.c.bf16 %v682_v8, %v681_v7  ;;  %v329_v18 = vadd.s32 320, %v2121_v4  ;;  %v734_v56 = vld [vmem:[%s2150_s26 + $0x1e8] sm:$0xff]  ;;  %v717_v10 = vld [vmem:[%s2150_s26 + $0x160] sm:$0xff] }
  0x32   : > { %vm1850_vm3 = vmpackc.low %vm570_vm1, %vm569_vm0  ;;  %vm602_vm4 = vcmp.lt.s32.totalorder %v474_v12, 1000  ;;  %v425_v21 = vadd.s32 %v297_v13, %v2118_v3  ;;  %v426_v22 = vadd.s32 %v298_v14, %v2118_v3  ;;  %v330_v23 = vadd.s32 328, %v2121_v4 }
  0x33   : > { %1851 = vmatprep.subr.msk.bf16.mxu0 %vm1850_vm3, %v1849_v0  ;;  %vm1898_vm5 = vmpackc.low %vm602_vm4, %vm601_vm2  ;;  %v457_v24 = vadd.s32 %v329_v18, %v2118_v3  ;;  %v1900_v25 = vpack.c.bf16 %v714_v16, %v713_v15  ;;  %v315_v26 = vadd.s32 208, %v2121_v4  ;;  %v316_v27 = vadd.s32 216, %v2121_v4  ;;  %v686_v0 = vld [vmem:[%s2150_s26 + $0x68] sm:$0xff]  ;;  %v703_v15 = vld [vmem:[%s2150_s26 + $0xf0] sm:$0xff] }
  0x34   : > { %1899 = vmatprep.subr.msk.bf16.mxu1 %vm1898_vm5, %v1897_v11  ;;  %vm553_vm6 = vcmp.lt.s32.totalorder %v425_v21, 1000  ;;  %vm554_vm7 = vcmp.lt.s32.totalorder %v426_v22, 1000  ;;  %v458_v30 = vadd.s32 %v330_v23, %v2118_v3  ;;  %v1855_v31 = vpack.c.bf16 %v700_v20, %v699_v19  ;;  %v718_v11 = vld [vmem:[%s2150_s26 + $0x168] sm:$0xff]  ;;  %v704_v16 = vld [vmem:[%s2150_s26 + $0xf8] sm:$0xff]  ;;  %v735_v22 = vld [vmem:[%s2150_s26 + $0x1f0] sm:$0xff] }
  0x35   : > { %vm1853_vm8 = vmpackc.low %vm554_vm7, %vm553_vm6  ;;  %vm585_vm9 = vcmp.lt.s32.totalorder %v457_v24, 1000  ;;  %v443_v32 = vadd.s32 %v315_v26, %v2118_v3  ;;  %v444_v33 = vadd.s32 %v316_v27, %v2118_v3  ;;  %v347_v34 = vadd.s32 464, %v2121_v4  ;;  %v736_v23 = vld [vmem:[%s2150_s26 + $0x1f8] sm:$0xff] }
  0x36   : > { %1854 = vmatpush3.bf16.msk.msra.mxu0 %vm1853_vm8, %v1852_v17  ;;  %vm586_vm10 = vcmp.lt.s32.totalorder %v458_v30, 1000  ;;  %v348_v37 = vadd.s32 472, %v2121_v4  ;;  %v1903_v38 = vpack.c.bf16 %v732_v29, %v731_v28  ;;  %v299_v39 = vadd.s32 80, %v2121_v4  ;;  %v687_v30 = vld [vmem:[%s2150_s26 + $0x70] sm:$0xff] }
  0x37   : > { %vm1901_vm11 = vmpackc.low %vm586_vm10, %vm585_vm9  ;;  %vm571_vm12 = vcmp.lt.s32.totalorder %v443_v32, 1000  ;;  %vm572_vm13 = vcmp.lt.s32.totalorder %v444_v33, 1000  ;;  %v475_v42 = vadd.s32 %v347_v34, %v2118_v3  ;;  %v300_v43 = vadd.s32 88, %v2121_v4 }
  0x38   : > { %1902 = vmatpush3.bf16.msk.msra.mxu1 %vm1901_vm11, %v1900_v25  ;;  %vm1856_vm14 = vmpackc.low %vm572_vm13, %vm571_vm12  ;;  %v476_v44 = vadd.s32 %v348_v37, %v2118_v3  ;;  %v427_v45 = vadd.s32 %v299_v39, %v2118_v3  ;;  %v1858_v46 = vpack.c.bf16 %v684_v36, %v683_v35  ;;  %v331_v47 = vadd.s32 336, %v2121_v4 }
  0x39   : > { %1857 = vmatprep.subr.msk.bf16.mxu0 %vm1856_vm14, %v1855_v31  ;;  %vm603_vm15 = vcmp.lt.s32.totalorder %v475_v42, 1000  ;;  %v428_v50 = vadd.s32 %v300_v43, %v2118_v3  ;;  %v332_v51 = vadd.s32 344, %v2121_v4  ;;  %v1906_v52 = vpack.c.bf16 %v716_v41, %v715_v40  ;;  %v688_v31 = vld [vmem:[%s2150_s26 + $0x78] sm:$0xff]  ;;  %v719_v41 = vld [vmem:[%s2150_s26 + $0x170] sm:$0xff] }
  0x3a   : > { %vm604_vm0 = vcmp.lt.s32.totalorder %v476_v44, 1000  ;;  %vm555_vm1 = vcmp.lt.s32.totalorder %v427_v45, 1000  ;;  %v459_v53 = vadd.s32 %v331_v47, %v2118_v3  ;;  %v317_v54 = vadd.s32 224, %v2121_v4  ;;  %v720_v42 = vld [vmem:[%s2150_s26 + $0x178] sm:$0xff] }
  0x3b   : > { %vm1904_vm2 = vmpackc.low %vm604_vm0, %vm603_vm15  ;;  %vm556_vm3 = vcmp.lt.s32.totalorder %v428_v50, 1000  ;;  %v460_v57 = vadd.s32 %v332_v51, %v2118_v3  ;;  %v318_v58 = vadd.s32 232, %v2121_v4  ;;  %v1861_v59 = vpack.c.bf16 %v702_v49, %v701_v48  ;;  %v753_v48 = vld [vmem:[%s2150_s26 + $0x280] sm:$0xff]  ;;  %v754_v49 = vld [vmem:[%s2150_s26 + $0x288] sm:$0xff] }
  0x3c   : > { %1905 = vmatprep.subr.msk.bf16.mxu1 %vm1904_vm2, %v1903_v38  ;;  %vm1859_vm4 = vmpackc.low %vm556_vm3, %vm555_vm1  ;;  %vm587_vm5 = vcmp.lt.s32.totalorder %v459_v53, 1000  ;;  %v445_v60 = vadd.s32 %v317_v54, %v2118_v3  ;;  %v349_v61 = vadd.s32 480, %v2121_v4  ;;  %v350_v62 = vadd.s32 488, %v2121_v4  ;;  %v785_v53 = vld [vmem:[%s2150_s26 + $0x380] sm:$0xff]  ;;  %v786_v54 = vld [vmem:[%s2150_s26 + $0x388] sm:$0xff] }
  0x3d   : > { %1860 = vmatpush3.bf16.msk.msra.mxu0 %vm1859_vm4, %v1858_v46  ;;  %vm588_vm6 = vcmp.lt.s32.totalorder %v460_v57, 1000  ;;  %v446_v2 = vadd.s32 %v318_v58, %v2118_v3  ;;  %v1909_v5 = vpack.c.bf16 %v734_v56, %v733_v55  ;;  %v301_v6 = vadd.s32 96, %v2121_v4 }
  0x3e   : > { %vm1907_vm7 = vmpackc.low %vm588_vm6, %vm587_vm5  ;;  %vm573_vm8 = vcmp.lt.s32.totalorder %v445_v60, 1000  ;;  %v477_v7 = vadd.s32 %v349_v61, %v2118_v3  ;;  %v478_v8 = vadd.s32 %v350_v62, %v2118_v3  ;;  %v302_v9 = vadd.s32 104, %v2121_v4 }
  0x3f   : > { %1908 = vmatpush3.bf16.msk.msra.mxu1 %vm1907_vm7, %v1906_v52  ;;  %vm574_vm9 = vcmp.lt.s32.totalorder %v446_v2, 1000  ;;  %v429_v12 = vadd.s32 %v301_v6, %v2118_v3  ;;  %v1864_v13 = vpack.c.bf16 %v686_v0, %v685_v63  ;;  %v333_v14 = vadd.s32 352, %v2121_v4 }
  0x40   : > { %vm1862_vm10 = vmpackc.low %vm574_vm9, %vm573_vm8  ;;  %vm605_vm11 = vcmp.lt.s32.totalorder %v477_v7, 1000  ;;  %vm606_vm12 = vcmp.lt.s32.totalorder %v478_v8, 1000  ;;  %v430_v17 = vadd.s32 %v302_v9, %v2118_v3  ;;  %v334_v18 = vadd.s32 360, %v2121_v4 }
  0x41   : > { %1863 = vmatprep.subr.msk.bf16.mxu0 %vm1862_vm10, %v1861_v59  ;;  %vm1910_vm13 = vmpackc.low %vm606_vm12, %vm605_vm11  ;;  %vm557_vm14 = vcmp.lt.s32.totalorder %v429_v12, 1000  ;;  %v461_v19 = vadd.s32 %v333_v14, %v2118_v3  ;;  %v1912_v20 = vpack.c.bf16 %v718_v11, %v717_v10  ;;  %v319_v21 = vadd.s32 240, %v2121_v4  ;;  %v2378_v12 = vld [vmem:[%s2150_s26 + $0x200] sm:$0xff] }
  0x42   : > { %1911 = vmatprep.subr.msk.bf16.mxu1 %vm1910_vm13, %v1909_v5  ;;  %vm558_vm15 = vcmp.lt.s32.totalorder %v430_v17, 1000  ;;  %v462_v24 = vadd.s32 %v334_v18, %v2118_v3  ;;  %v320_v25 = vadd.s32 248, %v2121_v4  ;;  %v1867_v26 = vpack.c.bf16 %v704_v16, %v703_v15  ;;  %v2386_v16 = vld [vmem:[%s2150_s26 + $0x300] sm:$0xff]  ;;  %v2389_v17 = vld [vmem:[%s2150_s26 + $0x308] sm:$0xff] }
  0x43   : > { %vm1865_vm0 = vmpackc.low %vm558_vm15, %vm557_vm14  ;;  %vm589_vm1 = vcmp.lt.s32.totalorder %v461_v19, 1000  ;;  %v447_v27 = vadd.s32 %v319_v21, %v2118_v3  ;;  %v351_v28 = vadd.s32 496, %v2121_v4  ;;  %v352_v29 = vadd.s32 504, %v2121_v4 }
  0x44   : > { %1866 = vmatpush3.bf16.msk.msra.mxu0 %vm1865_vm0, %v1864_v13  ;;  %vm590_vm2 = vcmp.lt.s32.totalorder %v462_v24, 1000  ;;  %v448_v32 = vadd.s32 %v320_v25, %v2118_v3  ;;  %v1915_v33 = vpack.c.bf16 %v736_v23, %v735_v22  ;;  %v303_v34 = vadd.s32 112, %v2121_v4  ;;  %v2381_v13 = vld [vmem:[%s2150_s26 + $0x208] sm:$0xff]  ;;  %v2402_v24 = vld [vmem:[%s2150_s26 + $0x290] sm:$0xff] }
  0x45   : > { %vm1913_vm3 = vmpackc.low %vm590_vm2, %vm589_vm1  ;;  %vm575_vm4 = vcmp.lt.s32.totalorder %v447_v27, 1000  ;;  %v479_v35 = vadd.s32 %v351_v28, %v2118_v3  ;;  %v480_v36 = vadd.s32 %v352_v29, %v2118_v3  ;;  %v304_v37 = vadd.s32 120, %v2121_v4  ;;  %v2413_v29 = vld [vmem:[%s2150_s26 + $0x298] sm:$0xff] }
  0x46   : > { %1914 = vmatpush3.bf16.msk.msra.mxu1 %vm1913_vm3, %v1912_v20  ;;  %vm576_vm5 = vcmp.lt.s32.totalorder %v448_v32, 1000  ;;  %v431_v38 = vadd.s32 %v303_v34, %v2118_v3  ;;  %v1870_v39 = vpack.c.bf16 %v688_v31, %v687_v30  ;;  %v335_v40 = vadd.s32 368, %v2121_v4  ;;  %v2416_v30 = vld [vmem:[%s2150_s26 + $0x390] sm:$0xff]  ;;  %v2419_v31 = vld [vmem:[%s2150_s26 + $0x398] sm:$0xff] }
  0x47   : > { %vm1868_vm6 = vmpackc.low %vm576_vm5, %vm575_vm4  ;;  %vm607_vm7 = vcmp.lt.s32.totalorder %v479_v35, 1000  ;;  %vm608_vm8 = vcmp.lt.s32.totalorder %v480_v36, 1000  ;;  %v432_v43 = vadd.s32 %v304_v37, %v2118_v3  ;;  %v336_v44 = vadd.s32 376, %v2121_v4 }
  0x48   : > { %1869 = vmatprep.subr.msk.bf16.mxu0 %vm1868_vm6, %v1867_v26  ;;  %vm1916_vm9 = vmpackc.low %vm608_vm8, %vm607_vm7  ;;  %vm559_vm10 = vcmp.lt.s32.totalorder %v431_v38, 1000  ;;  %v463_v45 = vadd.s32 %v335_v40, %v2118_v3  ;;  %v1918_v47 = vpack.c.bf16 %v720_v42, %v719_v41  ;;  %v369_v50 = vadd.s32 640, %v2121_v4  ;;  %v2446_v42 = vld [vmem:[%s2150_s26 + $0x210] sm:$0xff] }
  0x49   : > { %1917 = vmatprep.subr.msk.bf16.mxu1 %vm1916_vm9, %v1915_v33  ;;  %vm560_vm11 = vcmp.lt.s32.totalorder %v432_v43, 1000  ;;  %v464_v46 = vadd.s32 %v336_v44, %v2118_v3  ;;  %v370_v51 = vadd.s32 648, %v2121_v4  ;;  %v401_v52 = vadd.s32 896, %v2121_v4  ;;  %v2449_v43 = vld [vmem:[%s2150_s26 + $0x218] sm:$0xff]  ;;  %v2572_v44 = vld [vmem:[%s2150_s26 + $0x230] sm:$0xff] }
  0x4a   : > { %vm1871_vm12 = vmpackc.low %vm560_vm11, %vm559_vm10  ;;  %vm591_vm13 = vcmp.lt.s32.totalorder %v463_v45, 1000  ;;  %v497_v55 = vadd.s32 %v369_v50, %v2118_v3  ;;  %v1921_v57 = vpack.c.bf16 %v754_v49, %v753_v48  ;;  %v402_v58 = vadd.s32 904, %v2121_v4  ;;  %v2464_v48 = vld [vmem:[%s2150_s26 + $0x310] sm:$0xff]  ;;  %v2467_v49 = vld [vmem:[%s2150_s26 + $0x318] sm:$0xff]  ;;  %3255 = vst [vmem:[#allocation14_spill] sm:$0xff] %v2572_v44 }
  0x4b   : > { %1872 = vmatpush3.bf16.msk.msra.mxu0 %vm1871_vm12, %v1870_v39  ;;  %vm592_vm14 = vcmp.lt.s32.totalorder %v464_v46, 1000  ;;  %v498_v56 = vadd.s32 %v370_v51, %v2118_v3  ;;  %v529_v59 = vadd.s32 %v401_v52, %v2118_v3  ;;  %v1969_v61 = vpack.c.bf16 %v786_v54, %v785_v53  ;;  %3244 = vst [vmem:[#allocation3_spill] sm:$0xff] %v2464_v48  ;;  %v2480_v54 = vld [vmem:[%s2150_s26 + $0x2a0] sm:$0xff]  ;;  %v2568_v45 = vld [vmem:[%s2150_s26 + $0x3b8] sm:$0xff]  ;;  %v2638_v48 = vld [vmem:[%s2150_s26 + $0x3c8] sm:$0xff] }
  0x4c   : > { %vm1919_vm15 = vmpackc.low %vm592_vm14, %vm591_vm13  ;;  %vm625_vm0 = vcmp.lt.s32.totalorder %v497_v55, 1000  ;;  %v530_v60 = vadd.s32 %v402_v58, %v2118_v3  ;;  %v2355_v62 = vand.u32 127, %v222_v1  ;;  %v353_v5 = vadd.s32 512, %v2121_v4  ;;  %3245 = vst [vmem:[#allocation4_spill] sm:$0xff] %v2480_v54  ;;  %v2483_v55 = vld [vmem:[%s2150_s26 + $0x2a8] sm:$0xff] }
  0x4d   : > { %1920 = vmatpush3.bf16.msk.msra.mxu1 %vm1919_vm15, %v1918_v47  ;;  %vm626_vm1 = vcmp.lt.s32.totalorder %v498_v56, 1000  ;;  %vm657_vm3 = vcmp.lt.s32.totalorder %v529_v59, 1000  ;;  %v354_v6 = vadd.s32 520, %v2121_v4  ;;  %v385_v1 = vadd.s32 768, %v2121_v4  ;;  %3246 = vst [vmem:[#allocation5_spill] sm:$0xff] %v2483_v55  ;;  %v2565_v56 = vld [vmem:[%s2150_s26 + $0x3b0] sm:$0xff] }
  0x4e   : > { %vm1922_vm2 = vmpackc.low %vm626_vm1, %vm625_vm0  ;;  %vm658_vm4 = vcmp.lt.s32.totalorder %v530_v60, 1000  ;;  %3243 = vst [vmem:[#allocation2_spill] sm:$0xff] %v2355_v62  ;;  %v224_v63 = vadd.s32 128, %v2355_v62  ;;  %v226_v0 = vadd.s32 384, %v2355_v62  ;;  %v225_v2 = vadd.s32 256, %v2355_v62  ;;  %v2496_v60 = vld [vmem:[%s2150_s26 + $0x3a0] sm:$0xff] }
  0x4f   : > { %1923 = vmatprep.subr.msk.bf16.mxu0 %vm1922_vm2, %v1921_v57  ;;  %vm1970_vm5 = vmpackc.low %vm658_vm4, %vm657_vm3  ;;  %v386_v9 = vadd.s32 776, %v2121_v4  ;;  %v2372_v10 = vadd.s32 %v2118_v3, %v2355_v62  ;;  %v371_v14 = vadd.s32 656, %v2121_v4  ;;  %v372_v15 = vadd.s32 664, %v2121_v4  ;;  %3247 = vst [vmem:[#allocation6_spill] sm:$0xff] %v2496_v60  ;;  %v2609_v60 = vld [vmem:[%s2150_s26 + $0x2c8] sm:$0xff] }
  0x50   : > { %1971 = vmatprep.subr.msk.bf16.mxu1 %vm1970_vm5, %v1969_v61  ;;  %v2363_v7 = vadd.s32 %v2118_v3, %v224_v63  ;;  %v2366_v8 = vadd.s32 %v2118_v3, %v226_v0  ;;  %v2375_v11 = vadd.s32 %v2118_v3, %v225_v2  ;;  %v228_v18 = vadd.s32 640, %v2355_v62  ;;  %v2499_v61 = vld [vmem:[%s2150_s26 + $0x3a8] sm:$0xff] }
  0x51   : > { %v230_v19 = vadd.s32 896, %v2355_v62  ;;  %v403_v20 = vadd.s32 912, %v2121_v4  ;;  %v404_v21 = vadd.s32 920, %v2121_v4  ;;  %v2396_v22 = vadd.s32 %v353_v5, %v2118_v3  ;;  %3248 = vst [vmem:[#allocation7_spill] sm:$0xff] %v2499_v61  ;;  %v2508_v5 = vld [vmem:[%s2150_s26 + $0x220] sm:$0xff]  ;;  %v2581_v62 = vld [vmem:[%s2150_s26 + $0x238] sm:$0xff] }
  0x52   : > { %v2399_v23 = vadd.s32 %v354_v6, %v2118_v3  ;;  %v355_v25 = vadd.s32 528, %v2121_v4  ;;  %v356_v26 = vadd.s32 536, %v2121_v4  ;;  %v2407_v27 = vadd.s32 %v385_v1, %v2118_v3  ;;  %3249 = vst [vmem:[#allocation8_spill] sm:$0xff] %v2508_v5  ;;  %v2511_v6 = vld [vmem:[%s2150_s26 + $0x228] sm:$0xff] }
  0x53   : > { %v2410_v28 = vadd.s32 %v386_v9, %v2118_v3  ;;  %v387_v32 = vadd.s32 784, %v2121_v4  ;;  %v388_v33 = vadd.s32 792, %v2121_v4  ;;  %v2428_v36 = vadd.s32 %v371_v14, %v2118_v3  ;;  %3250 = vst [vmem:[#allocation9_spill] sm:$0xff] %v2511_v6 }
  0x54   : > { %v2431_v37 = vadd.s32 %v372_v15, %v2118_v3  ;;  %v2434_v38 = vadd.s32 %v2118_v3, %v228_v18  ;;  %v2437_v39 = vadd.s32 %v2118_v3, %v230_v19  ;;  %v2440_v40 = vadd.s32 %v403_v20, %v2118_v3 }
  0x55   : > { %v2443_v41 = vadd.s32 %v404_v21, %v2118_v3  ;;  %vm609_vm6 = vcmp.lt.s32.totalorder %v2396_v22, 1000  ;;  %vm610_vm7 = vcmp.lt.s32.totalorder %v2399_v23, 1000  ;;  %v2458_v46 = vadd.s32 %v355_v25, %v2118_v3  ;;  %v2532_v21 = vld [vmem:[%s2150_s26 + $0x320] sm:$0xff]  ;;  %v2535_v25 = vld [vmem:[%s2150_s26 + $0x328] sm:$0xff]  ;;  %v2814_v23 = vld [vmem:[%s2150_s26 + $0x2d8] sm:$0xff] }
  0x56   : > { %v2461_v47 = vadd.s32 %v356_v26, %v2118_v3  ;;  %vm641_vm8 = vcmp.lt.s32.totalorder %v2407_v27, 1000  ;;  %vm642_vm9 = vcmp.lt.s32.totalorder %v2410_v28, 1000  ;;  %v2472_v50 = vadd.s32 %v387_v32, %v2118_v3  ;;  %3251 = vst [vmem:[#allocation10_spill] sm:$0xff] %v2532_v21  ;;  %3252 = vst [vmem:[#allocation11_spill] sm:$0xff] %v2535_v25  ;;  %v2585_v21 = vld [vmem:[%s2150_s26 + $0x330] sm:$0xff]  ;;  %v2588_v25 = vld [vmem:[%s2150_s26 + $0x338] sm:$0xff] }
  0x57   : > { %v2475_v51 = vadd.s32 %v388_v33, %v2118_v3  ;;  %v373_v52 = vadd.s32 672, %v2121_v4  ;;  %v374_v53 = vadd.s32 680, %v2121_v4  ;;  %vm627_vm10 = vcmp.lt.s32.totalorder %v2428_v36, 1000  ;;  %vm2597_vm2 = vmpackc.low %vm610_vm7, %vm609_vm6  ;;  %v2635_v28 = vld [vmem:[%s2150_s26 + $0x3c0] sm:$0xff] }
  0x58   : > { %vm628_vm11 = vcmp.lt.s32.totalorder %v2431_v37, 1000  ;;  %v405_v57 = vadd.s32 928, %v2121_v4  ;;  %v406_v58 = vadd.s32 936, %v2121_v4  ;;  %vm659_vm12 = vcmp.lt.s32.totalorder %v2440_v40, 1000  ;;  %vm2617_vm3 = vmpackc.low %vm642_vm9, %vm641_vm8  ;;  %3260 = vst [vmem:[#allocation15_spill] sm:$0xff] %v2635_v28 }
  0x59   : > { %vm660_vm13 = vcmp.lt.s32.totalorder %v2443_v41, 1000  ;;  %v357_v63 = vadd.s32 544, %v2121_v4  ;;  %v358_v0 = vadd.s32 552, %v2121_v4  ;;  %vm611_vm14 = vcmp.lt.s32.totalorder %v2458_v46, 1000  ;;  %vm2644_vm6 = vmpackc.low %vm628_vm11, %vm627_vm10 }
  0x5a   : > { %vm612_vm15 = vcmp.lt.s32.totalorder %v2461_v47, 1000  ;;  %v389_v1 = vadd.s32 800, %v2121_v4  ;;  %vm643_vm0 = vcmp.lt.s32.totalorder %v2472_v50, 1000  ;;  %vm644_vm1 = vcmp.lt.s32.totalorder %v2475_v51, 1000  ;;  %vm2663_vm9 = vmpackc.low %vm660_vm13, %vm659_vm12  ;;  %v2731_v51 = vld [vmem:[%s2150_s26 + $0x240] sm:$0xff] }
  0x5b   : > { %v2517_v9 = vadd.s32 %v373_v52, %v2118_v3  ;;  %v2520_v14 = vadd.s32 %v374_v53, %v2118_v3  ;;  %v390_v15 = vadd.s32 808, %v2121_v4  ;;  %v2524_v18 = vadd.s32 %v405_v57, %v2118_v3  ;;  %v2548_v57 = vld [vmem:[%s2150_s26 + $0x2b0] sm:$0xff]  ;;  %vm2685_vm12 = vmpackc.low %vm612_vm15, %vm611_vm14 }
  0x5c   : > { %v2527_v19 = vadd.s32 %v406_v58, %v2118_v3  ;;  %v375_v26 = vadd.s32 688, %v2121_v4  ;;  %v2539_v32 = vadd.s32 %v357_v63, %v2118_v3  ;;  %v2542_v33 = vadd.s32 %v358_v0, %v2118_v3  ;;  %3253 = vst [vmem:[#allocation12_spill] sm:$0xff] %v2548_v57  ;;  %v2551_v58 = vld [vmem:[%s2150_s26 + $0x2b8] sm:$0xff]  ;;  %vm2714_vm10 = vmpackc.low %vm644_vm1, %vm643_vm0 }
  0x5d   : > { %v376_v53 = vadd.s32 696, %v2121_v4  ;;  %3254 = vst [vmem:[#allocation13_spill] sm:$0xff] %v2551_v58  ;;  %v2554_v20 = vadd.s32 %v389_v1, %v2118_v3  ;;  %v407_v63 = vadd.s32 944, %v2121_v4  ;;  %v408_v0 = vadd.s32 952, %v2121_v4  ;;  %v2606_v58 = vld [vmem:[%s2150_s26 + $0x2c0] sm:$0xff] }
  0x5e   : > { %v359_v2 = vadd.s32 560, %v2121_v4  ;;  %v2560_v52 = vadd.s32 %v390_v15, %v2118_v3  ;;  %v360_v1 = vadd.s32 568, %v2121_v4  ;;  %v391_v35 = vadd.s32 816, %v2121_v4 }
  0x5f   : > { %v2576_v34 = vadd.s32 %v375_v26, %v2118_v3  ;;  %v392_v59 = vadd.s32 824, %v2121_v4  ;;  %v377_v5 = vadd.s32 704, %v2121_v4  ;;  %v2602_v15 = vadd.s32 %v376_v53, %v2118_v3 }
  0x60   : > { %v378_v57 = vadd.s32 712, %v2121_v4  ;;  %v409_v61 = vadd.s32 960, %v2121_v4  ;;  %v410_v22 = vadd.s32 968, %v2121_v4  ;;  %v2624_v53 = vadd.s32 %v407_v63, %v2118_v3 }
  0x61   : > { %v2627_v54 = vadd.s32 %v408_v0, %v2118_v3  ;;  %v2632_v27 = vadd.s32 %v359_v2, %v2118_v3  ;;  %v2651_v0 = vadd.s32 %v360_v1, %v2118_v3  ;;  %v2656_v55 = vadd.s32 %v391_v35, %v2118_v3 }
  0x62   : > { %v361_v36 = vadd.s32 576, %v2121_v4  ;;  %v2670_v1 = vadd.s32 %v392_v59, %v2118_v3  ;;  %v2675_v2 = vadd.s32 %v377_v5, %v2118_v3  ;;  %v3265_v44 = vmov 0 }
  0x63   : > { %v3266_v44 = vsel %vm2685_vm12, 4294967295, %v3265_v44  ;;  %v2692_v59 = vadd.s32 %v378_v57, %v2118_v3  ;;  %v2695_v5 = vadd.s32 %v409_v61, %v2118_v3  ;;  %v2698_v40 = vadd.s32 %v410_v22, %v2118_v3  ;;  %v2734_v61 = vld [vmem:[%s2150_s26 + $0x248] sm:$0xff] }
  0x64   : > { %vm631_vm8 = vcmp.lt.s32.totalorder %v2576_v34, 1000  ;;  %v2728_v50 = vadd.s32 %v361_v36, %v2118_v3  ;;  %v3237_v57 = vmov 1.0   ;;  %v393_v22 = vadd.s32 832, %v2121_v4 }
  0x65   : > { %v394_v36 = vadd.s32 840, %v2121_v4  ;;  %vm648_vm13 = vcmp.lt.s32.totalorder %v2670_v1, 1000  ;;  %v380_v46 = vadd.s32 728, %v2121_v4  ;;  %vm634_vm12 = vcmp.lt.s32.totalorder %v2692_v59, 1000  ;;  %v3330_v59 = vld [vmem:[#allocation14_spill] sm:$0xff] }
  0x66   : > { %v411_v35 = vadd.s32 976, %v2121_v4  ;;  %v3271_v28 = vpack.c.bf16 %v2381_v13, %v2378_v12  ;;  %v412_v12 = vadd.s32 984, %v2121_v4  ;;  %v363_v13 = vadd.s32 592, %v2121_v4 }
  0x67   : > { %v3272_v26 = vpack.c.bf16 %v2389_v17, %v2386_v16  ;;  %v2808_v16 = vadd.s32 %v394_v36, %v2118_v3  ;;  %v2811_v17 = vld [vmem:[%s2150_s26 + $0x2d0] sm:$0xff]  ;;  %v2835_v36 = vadd.s32 %v380_v46, %v2118_v3  ;;  %v382_v47 = vadd.s32 744, %v2121_v4 }
  0x68   : > { %v2854_v63 = vadd.s32 %v411_v35, %v2118_v3  ;;  %v2857_v46 = vld [vmem:[%s2150_s26 + $0x3d0] sm:$0xff]  ;;  %v1951_v35 = vpack.c.bf16 %v2814_v23, %v2811_v17  ;;  %v3331_v34 = vpack.c.bf16 %v2581_v62, %v3330_v59  ;;  %v416_v62 = vadd.s32 1016, %v2121_v4 }
  0x69   : > { %v767_v23 = vld [vmem:[%s2150_s26 + $0x2f0] sm:$0xff] }
  0x8f   : > { %v2591_v6 = vpop.permute.xlu0 %242 }
  0x90   : > { %vm245_vm14 = vcmp.ge.s32.totalorder %v2363_v7, %v2591_v6  ;;  %vm247_vm4 = vcmp.ge.s32.totalorder %v2366_v8, %v2591_v6 }
  0x93   : > { %v2679_v41 = vpop.permute.xlu0 %254 }
  0x94   : > { %vm257_vm15 = vcmp.lt.s32.totalorder %v2363_v7, %v2679_v41  ;;  %vm258_vm11 = vcmp.lt.s32.totalorder %v2375_v11, %v2679_v41  ;;  %v362_v7 = vadd.s32 584, %v2121_v4  ;;  %vm3269_vm0 = vcmp.lt.s32.totalorder %v2366_v8, %v2679_v41 }
  0x95   : > { %vm265_vm5 = vmand %vm245_vm14, %vm257_vm15  ;;  %vm244_vm14 = vcmp.ge.s32.totalorder %v2372_v10, %v2591_v6  ;;  %vm261_vm15 = vcmp.lt.s32.totalorder %v2434_v38, %v2679_v41  ;;  %vm263_vm7 = vcmp.lt.s32.totalorder %v2437_v39, %v2679_v41  ;;  %v379_v8 = vadd.s32 720, %v2121_v4 }
  0x96   : > { %1579 = vmatprep.mubr.msk.f32.mxu0 %vm265_vm5, %v3237_v57  ;;  %vm267_vm1 = vmand %vm247_vm4, %vm3269_vm0  ;;  %vm3270_vm5 = vcmp.lt.s32.totalorder %v2372_v10, %v2679_v41  ;;  %vm246_vm0 = vcmp.ge.s32.totalorder %v2375_v11, %v2591_v6  ;;  %v2783_v11 = vadd.s32 %v362_v7, %v2118_v3  ;;  %v2786_v10 = vld [vmem:[%s2150_s26 + $0x340] sm:$0xff] }
  0x97   : > { %1613 = vmatprep.mubr.msk.f32.mxu1 %vm267_vm1, %v3237_v57  ;;  %vm264_vm4 = vmand %vm244_vm14, %vm3270_vm5  ;;  %vm249_vm14 = vcmp.ge.s32.totalorder %v2434_v38, %v2591_v6  ;;  %vm633_vm5 = vcmp.lt.s32.totalorder %v2675_v2, 1000  ;;  %v3273_v38 = vmov 1.0   ;;  %v3300_v7 = vld [vmem:[#allocation6_spill] sm:$0xff]  ;;  %v384_v2 = vadd.s32 760, %v2121_v4 }
  0x98   : > { %1580 = vmatmul.mubr.msk.f32.vlgmr.msra.gmra.mrb[0].mxu0 %vm264_vm4, %v3237_v57  ;;  %vm266_vm1 = vmand %vm246_vm0, %vm258_vm11  ;;  %vm251_vm4 = vcmp.ge.s32.totalorder %v2437_v39, %v2591_v6  ;;  %vm666_vm0 = vcmp.lt.s32.totalorder %v2698_v40, 1000  ;;  %v3274_v39 = vpack.c.bf16 %v2413_v29, %v2402_v24  ;;  %v364_v24 = vadd.s32 600, %v2121_v4 }
  0x99   : > { %1614 = vmatmul.mubr.msk.f32.vlgmr.msra.gmra.mrb[0].mxu1 %vm266_vm1, %v3237_v57  ;;  %1926 = vmatpush3.bf16.msk.msra.mxu0 %vm2597_vm2, %v3271_v28  ;;  %vm269_vm11 = vmand %vm249_vm14, %vm261_vm15  ;;  %v2789_v57 = vld [vmem:[%s2150_s26 + $0x348] sm:$0xff]  ;;  %vm665_vm15 = vcmp.lt.s32.totalorder %v2695_v5, 1000  ;;  %v2805_v28 = vadd.s32 %v393_v22, %v2118_v3  ;;  %vm617_vm14 = vcmp.lt.s32.totalorder %v2728_v50, 1000  ;;  %v2832_v22 = vadd.s32 %v379_v8, %v2118_v3 }
  0x9a   : > { %1974 = vmatpush3.bf16.msk.msra.mxu1 %vm2617_vm3, %v3272_v26  ;;  %1647 = vmatprep.mubr.msk.f32.mxu0 %vm269_vm11, %v3273_v38  ;;  %vm271_vm2 = vmand %vm251_vm4, %vm263_vm7  ;;  %vm3275_vm3 = vcmp.lt.s32.totalorder %v2517_v9, 1000  ;;  %vm3276_vm7 = vcmp.lt.s32.totalorder %v2520_v14, 1000  ;;  %v3279_v29 = vpack.c.bf16 %v2419_v31, %v2416_v30  ;;  %vm3281_vm11 = vcmp.lt.s32.totalorder %v2527_v19, 1000  ;;  %v2860_v30 = vld [vmem:[%s2150_s26 + $0x3d8] sm:$0xff] }
  0x9b   : > { %1681 = vmatprep.mubr.msk.f32.mxu1 %vm271_vm2, %v3273_v38  ;;  %1929 = vmatprep.subr.msk.bf16.mxu0 %vm2644_vm6, %v3274_v39  ;;  %vm2826_vm1 = vmpackc.low %vm3276_vm7, %vm3275_vm3  ;;  %vm3280_vm6 = vcmp.lt.s32.totalorder %v2524_v18, 1000  ;;  %v1996_v14 = vpack.c.bf16 %v2789_v57, %v2786_v10  ;;  %v395_v31 = vadd.s32 848, %v2121_v4  ;;  %v396_v18 = vadd.s32 856, %v2121_v4  ;;  %v3292_v26 = vld [vmem:[#allocation5_spill] sm:$0xff]  ;;  %v3293_v39 = vld [vmem:[#allocation4_spill] sm:$0xff] }
  0x9c   : > { %1977 = vmatprep.subr.msk.bf16.mxu1 %vm2663_vm9, %v3279_v29  ;;  %vm2847_vm4 = vmpackc.low %vm3281_vm11, %vm3280_vm6  ;;  %v3284_v19 = vpack.c.bf16 %v2449_v43, %v2446_v42  ;;  %vm3285_vm9 = vnez %v3266_v44  ;;  %vm3286_vm2 = vcmp.lt.s32.totalorder %v2539_v32, 1000  ;;  %vm3287_vm3 = vcmp.lt.s32.totalorder %v2542_v33, 1000  ;;  %v2887_v43 = vld [vmem:[%s2150_s26 + $0x250] sm:$0xff]  ;;  %v2890_v44 = vld [vmem:[%s2150_s26 + $0x258] sm:$0xff] }
  0x9d   : > { %vm2873_vm7 = vmpackc.low %vm3287_vm3, %vm3286_vm2  ;;  %v2881_v8 = vadd.s32 %v412_v12, %v2118_v3  ;;  %v2884_v42 = vadd.s32 %v363_v13, %v2118_v3  ;;  %v3290_v32 = vld [vmem:[#allocation3_spill] sm:$0xff]  ;;  %v3294_v29 = vpack.c.bf16 %v3292_v26, %v3293_v39  ;;  %vm3295_vm11 = vcmp.lt.s32.totalorder %v2554_v20, 1000  ;;  %v3310_v26 = vld [vmem:[#allocation8_spill] sm:$0xff] }
  0x9e   : > { %1932 = vmatpush3.bf16.msk.msra.mxu0 %vm3285_vm9, %v3284_v19  ;;  %v3291_v33 = vpack.c.bf16 %v2467_v49, %v3290_v32  ;;  %vm3296_vm9 = vcmp.lt.s32.totalorder %v2560_v52, 1000  ;;  %v381_v49 = vadd.s32 736, %v2121_v4  ;;  %v3299_v13 = vld [vmem:[#allocation7_spill] sm:$0xff]  ;;  %v1999_v52 = vpack.c.bf16 %v2860_v30, %v2857_v46  ;;  %v781_v57 = vld [vmem:[%s2150_s26 + $0x360] sm:$0xff]  ;;  %v799_v30 = vld [vmem:[%s2150_s26 + $0x3f0] sm:$0xff] }
  0x9f   : > { %1935 = vmatprep.subr.msk.bf16.mxu0 %vm2826_vm1, %v3294_v29  ;;  %vm2906_vm2 = vmpackc.low %vm3296_vm9, %vm3295_vm11  ;;  %v3301_v19 = vpack.c.bf16 %v3299_v13, %v3300_v7  ;;  %vm3302_vm1 = vcmp.lt.s32.totalorder %v2602_v15, 1000  ;;  %vm635_vm9 = vcmp.lt.s32.totalorder %v2832_v22, 1000  ;;  %v492_v32 = vadd.s32 %v364_v24, %v2118_v3  ;;  %v2950_v24 = vld [vmem:[%s2150_s26 + $0x350] sm:$0xff]  ;;  %v3316_v13 = vld [vmem:[#allocation11_spill] sm:$0xff] }
  0xa0   : > { %1980 = vmatpush3.bf16.msk.msra.mxu1 %vm2714_vm10, %v3291_v33  ;;  %vm2923_vm11 = vmpackc.low %vm3302_vm1, %vm631_vm8  ;;  %vm3305_vm3 = vcmp.lt.s32.totalorder %v2624_v53, 1000  ;;  %v1954_v15 = vpack.c.bf16 %v2890_v44, %v2887_v43  ;;  %v2944_v9 = vadd.s32 %v395_v31, %v2118_v3  ;;  %v2947_v33 = vadd.s32 %v396_v18, %v2118_v3  ;;  %v2953_v53 = vld [vmem:[%s2150_s26 + $0x358] sm:$0xff]  ;;  %v3317_v7 = vld [vmem:[#allocation10_spill] sm:$0xff] }
  0xa1   : > { %1983 = vmatprep.subr.msk.bf16.mxu1 %vm2847_vm4, %v3301_v19  ;;  %vm3306_vm4 = vcmp.lt.s32.totalorder %v2627_v54, 1000  ;;  %v3309_v54 = vld [vmem:[#allocation9_spill] sm:$0xff]  ;;  %vm3313_vm1 = vcmp.lt.s32.totalorder %v2651_v0, 1000  ;;  %vm668_vm8 = vcmp.lt.s32.totalorder %v2881_v8, 1000  ;;  %vm619_vm10 = vcmp.lt.s32.totalorder %v2884_v42, 1000  ;;  %v3320_v0 = vld [vmem:[#allocation12_spill] sm:$0xff] }
  0xa2   : > { %vm2936_vm6 = vmpackc.low %vm3306_vm4, %vm3305_vm3  ;;  %v3311_v39 = vpack.c.bf16 %v3309_v54, %v3310_v26  ;;  %vm3312_vm3 = vcmp.lt.s32.totalorder %v2632_v27, 1000  ;;  %v413_v18 = vadd.s32 992, %v2121_v4  ;;  %v414_v29 = vadd.s32 1000, %v2121_v4  ;;  %v3319_v27 = vld [vmem:[#allocation13_spill] sm:$0xff]  ;;  %v749_v8 = vld [vmem:[%s2150_s26 + $0x260] sm:$0xff] }
  0xa3   : > { %vm2964_vm4 = vmpackc.low %vm3313_vm1, %vm3312_vm3  ;;  %v3318_v37 = vpack.c.bf16 %v3316_v13, %v3317_v7  ;;  %v3321_v19 = vpack.c.bf16 %v3319_v27, %v3320_v0  ;;  %v509_v26 = vadd.s32 %v381_v49, %v2118_v3  ;;  %v365_v12 = vadd.s32 608, %v2121_v4  ;;  %v798_v27 = vld [vmem:[%s2150_s26 + $0x3e8] sm:$0xff] }
  0xa4   : > { %1938 = vmatpush3.bf16.msk.msra.mxu0 %vm2873_vm7, %v3311_v39  ;;  %vm3322_vm7 = vcmp.lt.s32.totalorder %v2656_v55, 1000  ;;  %v510_v39 = vadd.s32 %v382_v47, %v2118_v3  ;;  %v366_v13 = vadd.s32 616, %v2121_v4  ;;  %v3325_v20 = vpack.c.bf16 %v2568_v45, %v2565_v56  ;;  %v782_v10 = vld [vmem:[%s2150_s26 + $0x368] sm:$0xff]  ;;  %v751_v45 = vld [vmem:[%s2150_s26 + $0x270] sm:$0xff] }
  0xa5   : > { %1986 = vmatpush3.bf16.msk.msra.mxu1 %vm2906_vm2, %v3318_v37  ;;  %1941 = vmatprep.subr.msk.bf16.mxu0 %vm2923_vm11, %v3321_v19  ;;  %vm2986_vm3 = vmpackc.low %vm648_vm13, %vm3322_vm7  ;;  %vm620_vm2 = vcmp.lt.s32.totalorder %v492_v32, 1000  ;;  %v2002_v1 = vpack.c.bf16 %v2953_v53, %v2950_v24  ;;  %v397_v49 = vadd.s32 864, %v2121_v4  ;;  %v398_v47 = vadd.s32 872, %v2121_v4  ;;  %v783_v53 = vld [vmem:[%s2150_s26 + $0x370] sm:$0xff] }
  0xa6   : > { %1989 = vmatprep.subr.msk.bf16.mxu1 %vm2936_vm6, %v3325_v20  ;;  %vm3003_vm13 = vmpackc.low %vm634_vm12, %vm633_vm5  ;;  %vm651_vm12 = vcmp.lt.s32.totalorder %v2944_v9, 1000  ;;  %vm652_vm5 = vcmp.lt.s32.totalorder %v2947_v33, 1000  ;;  %v383_v56 = vadd.s32 752, %v2121_v4  ;;  %v541_v5 = vadd.s32 %v413_v18, %v2118_v3 }
  0xa7   : > { %vm3015_vm6 = vmpackc.low %vm666_vm0, %vm665_vm15  ;;  %vm3332_vm15 = vcmp.lt.s32.totalorder %v2783_v11, 1000  ;;  %v542_v7 = vadd.s32 %v414_v29, %v2118_v3  ;;  %v415_v37 = vadd.s32 1008, %v2121_v4  ;;  %v3335_v31 = vpack.c.bf16 %v2588_v25, %v2585_v21  ;;  %v765_v21 = vld [vmem:[%s2150_s26 + $0x2e0] sm:$0xff]  ;;  %v766_v25 = vld [vmem:[%s2150_s26 + $0x2e8] sm:$0xff] }
  0xa8   : > { %1944 = vmatpush3.bf16.msk.msra.mxu0 %vm2964_vm4, %v3331_v34  ;;  %vm3032_vm0 = vmpackc.low %vm3332_vm15, %vm617_vm14  ;;  %v3336_v50 = vpack.c.bf16 %v2609_v60, %v2606_v58  ;;  %vm3337_vm14 = vcmp.lt.s32.totalorder %v2805_v28, 1000  ;;  %vm3338_vm11 = vcmp.lt.s32.totalorder %v2808_v16, 1000  ;;  %vm637_vm4 = vcmp.lt.s32.totalorder %v509_v26, 1000  ;;  %v3341_v60 = vld [vmem:[#allocation15_spill] sm:$0xff]  ;;  %v797_v16 = vld [vmem:[%s2150_s26 + $0x3e0] sm:$0xff] }
  0xa9   : > { %1992 = vmatpush3.bf16.msk.msra.mxu1 %vm2986_vm3, %v3335_v31  ;;  %vm3054_vm1 = vmpackc.low %vm3338_vm11, %vm3337_vm14  ;;  %vm638_vm7 = vcmp.lt.s32.totalorder %v510_v39, 1000  ;;  %v493_v18 = vadd.s32 %v365_v12, %v2118_v3  ;;  %v494_v29 = vadd.s32 %v366_v13, %v2118_v3  ;;  %v3342_v58 = vpack.c.bf16 %v2638_v48, %v3341_v60 }
  0xaa   : > { %1947 = vmatprep.subr.msk.bf16.mxu0 %vm3003_vm13, %v3336_v50  ;;  %vm3343_vm3 = vcmp.lt.s32.totalorder %v2835_v36, 1000  ;;  %v525_v0 = vadd.s32 %v397_v49, %v2118_v3  ;;  %v526_v19 = vadd.s32 %v398_v47, %v2118_v3  ;;  %v367_v48 = vadd.s32 624, %v2121_v4  ;;  %v750_v49 = vld [vmem:[%s2150_s26 + $0x268] sm:$0xff] }
  0xab   : > { %1995 = vmatprep.subr.msk.bf16.mxu1 %vm3015_vm6, %v3342_v58  ;;  %vm3071_vm13 = vmpackc.low %vm3343_vm3, %vm635_vm9  ;;  %v368_v54 = vadd.s32 632, %v2121_v4  ;;  %vm3346_vm6 = vcmp.lt.s32.totalorder %v2854_v63, 1000  ;;  %v511_v36 = vadd.s32 %v383_v56, %v2118_v3  ;;  %v512_v12 = vadd.s32 %v384_v2, %v2118_v3  ;;  %v752_v56 = vld [vmem:[%s2150_s26 + $0x278] sm:$0xff]  ;;  %v3362_v2 = vld [vmem:[#allocation2_spill] sm:$0xff] }
  0xac   : > { %vm3085_vm9 = vmpackc.low %vm668_vm8, %vm3346_vm6  ;;  %v399_v13 = vadd.s32 880, %v2121_v4  ;;  %v400_v20 = vadd.s32 888, %v2121_v4  ;;  %v3349_v55 = vpack.c.bf16 %v2734_v61, %v2731_v51  ;;  %vm669_vm15 = vcmp.lt.s32.totalorder %v541_v5, 1000 }
  0xad   : > { %vm3101_vm8 = vmpackc.low %vm620_vm2, %vm619_vm10  ;;  %vm670_vm14 = vcmp.lt.s32.totalorder %v542_v7, 1000  ;;  %v543_v4 = vadd.s32 %v415_v37, %v2118_v3  ;;  %v544_v51 = vadd.s32 %v416_v62, %v2118_v3  ;;  %1998 = vmatpush3.bf16.msk.msra.mxu1 %vm3054_vm1, %v1996_v14  ;;  %v1957_v42 = vpack.c.bf16 %v766_v25, %v765_v21  ;;  %v768_v14 = vld [vmem:[%s2150_s26 + $0x2f8] sm:$0xff] }
  0xae   : > { %1950 = vmatpush3.bf16.msk.msra.mxu0 %vm3032_vm0, %v3349_v55  ;;  %vm3123_vm10 = vmpackc.low %vm652_vm5, %vm651_vm12  ;;  %v2005_v32 = vpack.c.bf16 %v798_v27, %v797_v16  ;;  %vm621_vm2 = vcmp.lt.s32.totalorder %v493_v18, 1000  ;;  %vm622_vm0 = vcmp.lt.s32.totalorder %v494_v29, 1000  ;;  %2001 = vmatprep.subr.msk.bf16.mxu1 %vm3085_vm9, %v1999_v52  ;;  %vm653_vm5 = vcmp.lt.s32.totalorder %v525_v0, 1000  ;;  %v800_v52 = vld [vmem:[%s2150_s26 + $0x3f8] sm:$0xff] }
  0xaf   : > { %1953 = vmatprep.subr.msk.bf16.mxu0 %vm3071_vm13, %v1951_v35  ;;  %vm3136_vm12 = vmpackc.low %vm638_vm7, %vm637_vm4  ;;  %vm654_vm11 = vcmp.lt.s32.totalorder %v526_v19, 1000  ;;  %v495_v35 = vadd.s32 %v367_v48, %v2118_v3  ;;  %v496_v9 = vadd.s32 %v368_v54, %v2118_v3  ;;  %vm639_vm3 = vcmp.lt.s32.totalorder %v511_v36, 1000 }
  0xb0   : > { %vm3146_vm1 = vmpackc.low %vm670_vm14, %vm669_vm15  ;;  %vm640_vm4 = vcmp.lt.s32.totalorder %v512_v12, 1000  ;;  %v527_v33 = vadd.s32 %v399_v13, %v2118_v3  ;;  %v528_v26 = vadd.s32 %v400_v20, %v2118_v3  ;;  %v1960_v39 = vpack.c.bf16 %v750_v49, %v749_v8 }
  0xb1   : > { %vm3161_vm7 = vmpackc.low %vm622_vm0, %vm621_vm2  ;;  %vm671_vm13 = vcmp.lt.s32.totalorder %v543_v4, 1000  ;;  %vm672_vm6 = vcmp.lt.s32.totalorder %v544_v51, 1000  ;;  %2004 = vmatpush3.bf16.msk.msra.mxu1 %vm3123_vm10, %v2002_v1  ;;  %v2008_v43 = vpack.c.bf16 %v782_v10, %v781_v57  ;;  %v227_v59 = vadd.s32 512, %v3362_v2  ;;  %v784_v1 = vld [vmem:[%s2150_s26 + $0x378] sm:$0xff] }
  0xb2   : > { %1956 = vmatpush3.bf16.msk.msra.mxu0 %vm3101_vm8, %v1954_v15  ;;  %vm3174_vm9 = vmpackc.low %vm654_vm11, %vm653_vm5  ;;  %v1963_v15 = vpack.c.bf16 %v768_v14, %v767_v23  ;;  %2007 = vmatprep.subr.msk.bf16.mxu1 %vm3146_vm1, %v2005_v32  ;;  %v2011_v24 = vpack.c.bf16 %v800_v52, %v799_v30  ;;  %vm623_vm15 = vcmp.lt.s32.totalorder %v495_v35, 1000  ;;  %vm624_vm14 = vcmp.lt.s32.totalorder %v496_v9, 1000 }
  0xb3   : > { %1959 = vmatprep.subr.msk.bf16.mxu0 %vm3136_vm12, %v1957_v42  ;;  %vm1964_vm8 = vmpackc.low %vm640_vm4, %vm639_vm3  ;;  %v229_v34 = vadd.s32 768, %v3362_v2  ;;  %vm655_vm2 = vcmp.lt.s32.totalorder %v527_v33, 1000  ;;  %vm656_vm0 = vcmp.lt.s32.totalorder %v528_v26, 1000  ;;  %v1966_v40 = vpack.c.bf16 %v752_v56, %v751_v45 }
  0xb4   : > { %vm2012_vm10 = vmpackc.low %vm672_vm6, %vm671_vm13  ;;  %v2014_v5 = vpack.c.bf16 %v784_v1, %v783_v53  ;;  %v236_v7 = vadd.s32 %v2118_v3, %v227_v59  ;;  %vm218_vm6 = vcmask 261120  }
  0xb5   : > { %2010 = vmatpush3.bf16.msk.msra.mxu1 %vm3174_vm9, %v2008_v43  ;;  %vm1967_vm12 = vmpackc.low %vm624_vm14, %vm623_vm15  ;;  %v238_v37 = vadd.s32 %v2118_v3, %v229_v34  ;;  %v2071_v3 = vmov 0.0  }
  0xb6   : > { %1962 = vmatpush3.bf16.msk.msra.mxu0 %vm3161_vm7, %v1960_v39  ;;  %2013 = vmatprep.subr.msk.bf16.mxu1 %vm2012_vm10, %v2011_v24  ;;  %vm2015_vm5 = vmpackc.low %vm656_vm0, %vm655_vm2  ;;  %vm260_vm11 = vcmp.lt.s32.totalorder %v236_v7, %v2679_v41  ;;  %vm248_vm3 = vcmp.ge.s32.totalorder %v236_v7, %v2591_v6  ;;  %219 = vst.msk [vmem:[%s213_s30] sm:$0xff] %vm218_vm6, %v2071_v3 }
  0xb7   : > { %1965 = vmatprep.subr.msk.bf16.mxu0 %vm1964_vm8, %v1963_v15  ;;  %vm262_vm1 = vcmp.lt.s32.totalorder %v238_v37, %v2679_v41  ;;  %vm268_vm4 = vmand %vm248_vm3, %vm260_vm11  ;;  %vm250_vm7 = vcmp.ge.s32.totalorder %v238_v37, %v2591_v6 }
  0xb8   : > { %vm270_vm13 = vmand %vm250_vm7, %vm262_vm1 }
  0xb9   : > { %2016 = vmatpush3.bf16.msk.msra.mxu1 %vm2015_vm5, %v2014_v5 }
  0xba   : > { %1968 = vmatpush3.bf16.msk.msra.mxu0 %vm1967_vm12, %v1966_v40 }
  0xbc   : > { %1682 = vmatmul.mubr.msk.f32.vlgmr.msra.gmra.mrb[2].mxu1 %vm270_vm13, %v3273_v38 }
  0xbd   : > { %1648 = vmatmul.mubr.msk.f32.vlgmr.msra.gmra.mrb[2].mxu0 %vm268_vm4, %v3273_v38  ;;  %v1185_v16 = vld [vmem:[%s213_s30] sm:$0xff] }
 0x16b   : > { %v1717_v41 = vpop.f32.mrb[0].mxu0 }
 0x16c   : > { %v1752_v62 = vpop.f32.mrb[0].mxu1  ;;  %v1718_v31 = vpop.f32.mrb[1].mxu0 }
 0x16d   : > { %v1719_v6 = vadd.f32 %v1718_v31, %v1717_v41  ;;  %v1753_v50 = vpop.f32.mrb[1].mxu1 }
 0x16e   : > { %v1754_v11 = vadd.f32 %v1753_v50, %v1752_v62 }
 0x170   : > { %v1323_v21 = vadd.f32 %v1754_v11, %v1719_v6 }
 0x18f   : > { %v1822_v38 = vpop.f32.mrb[2].mxu1 }
 0x190   : > { %v1787_v25 = vpop.f32.mrb[2].mxu0  ;;  %v1823_v60 = vpop.f32.mrb[3].mxu1 }
 0x191   : > { %v1788_v18 = vpop.f32.mrb[3].mxu0  ;;  %v1824_v58 = vadd.f32 %v1823_v60, %v1822_v38 }
 0x192   : > { %v1789_v29 = vadd.f32 %v1788_v18, %v1787_v25 }
 0x194   : > { %v1393_v28 = vadd.f32 %v1789_v29, %v1323_v21 }
 0x196   : > { %v1463_v27 = vadd.f32 %v1824_v58, %v1393_v28 }
 0x198   : > { %v1466_v0 = vadd.f32 %v1463_v27, %v1185_v16 }
 0x19a   : > { %1468 = vst.msk [vmem:[%s213_s30] sm:$0xff] %vm218_vm6, %v1466_v0 }
 0x19b PF: > { %s13_s14 = sadd.s32 1, %s2067_s14   ;;  %s3363_s12 = smov %s2063_s13 }
 0x19c   : > { %p10_p7 = scmp.ge.s32.totalorder %s13_s14, 4   ;;  %s3364_s13 = smov %s3366_s15 }
 0x19e   :  { %12 = sbr.rel (!%p10_p7) target bundleno = 2 (0x2), region = 66 }

// kernel: transition_up.3
= control target key start
LH: loop header
LB: loop body
LE: loop exit
PB: predicated region body
PF: predicated region fallthrough
CT: control target
= control target key end

     0   :  { %v21_v3 = vlaneseq  ;;  %vm2152_vm0 = vcmask 261120   ;;  %vm930_vm1 = vcmask 64512   ;;  %v5220_v18 = vmov 0.0   ;;  %s7119_s0 = inlined_call_operand.vmem [shape: f32[1000,32], index: 0, kind: input, shape index: {}]   ;;  %s7120_s1 = inlined_call_operand.vmem [shape: s32[1,8], index: 1, kind: input, shape index: {}]   ;;  %s7121_s2 = inlined_call_operand.vmem [shape: s32[1,8], index: 2, kind: input, shape index: {}]   ;;  %s7122_s3 = inlined_call_operand.vmem [shape: f32[8,32], index: 3, kind: input, shape index: {}]   ;;  %s7123_s4 = inlined_call_operand.vmem [shape: f32[32,32], index: 4, kind: input, shape index: {}]   ;;  %s7124_s5 = inlined_call_operand.vmem [shape: f32[1000,32], index: 5, kind: output, shape index: {}]  }
   0x1   :  { %v2148_v0 = vld [vmem:[%s7123_s4] sm:$0xff]  ;;  %v2149_v1 = vld [vmem:[%s7123_s4 + $0x8] sm:$0xff]  ;;  %v2150_v7 = vld [vmem:[%s7123_s4 + $0x10] sm:$0xff] }
   0x2   :  { %v929_v2 = vld [vmem:[%s7122_s3] sm:$0xff]  ;;  %v5075_v4 = vpack.c.bf16 %v2149_v1, %v2148_v0  ;;  %v5273_v8 = vshrl.u32 %v21_v3, 7  ;;  %v2151_v9 = vld [vmem:[%s7123_s4 + $0x18] sm:$0xff]  ;;  %v2022_v10 = vld [vmem:[%s7119_s0 + $0x10] sm:$0xff] }
   0x3   :  { %4681 = vmatprep.subr.mxu0 %v929_v2  ;;  %v5263_v5 = vld [vmem:[%s7120_s1] ss:$0 sm:$0xff]  ;;  %v5079_v11 = vpack.c.bf16 %v2151_v9, %v2150_v7  ;;  %4886 = vmatprep.mubr.msk.f32.mxu1 %vm2152_vm0, %v2022_v10  ;;  %v2023_v21 = vld [vmem:[%s7119_s0 + $0x18] sm:$0xff]  ;;  %v2025_v28 = vld [vmem:[%s7119_s0 + $0x28] sm:$0xff] }
   0x4   :  { %v5268_v6 = vld [vmem:[%s7121_s2] ss:$0 sm:$0xff]  ;;  %4682 = vmatpush3.msra.mxu0 %v929_v2  ;;  %5083 = vmatprep.subr.bf16.mxu1 %v5075_v4  ;;  %vm284_vm2 = vcmp.ge.s32.totalorder %v5273_v8, %v5263_v5  ;;  %v23_v12 = vadd.s32 8, %v5273_v8  ;;  %v24_v13 = vadd.s32 16, %v5273_v8  ;;  %v25_v14 = vadd.s32 24, %v5273_v8  ;;  %v2026_v30 = vld [vmem:[%s7119_s0 + $0x30] sm:$0xff] }
   0x5   :  { %5076 = vmatprep.subr.bf16.mxu0 %v5075_v4  ;;  %5085 = vmatpush3.bf16.msra.mxu1 %v5075_v4  ;;  %vm417_vm3 = vcmp.lt.s32.totalorder %v5273_v8, %v5268_v6  ;;  %v26_v15 = vadd.s32 32, %v5273_v8  ;;  %v27_v16 = vadd.s32 40, %v5273_v8  ;;  %v28_v17 = vadd.s32 48, %v5273_v8  ;;  %v2024_v23 = vld [vmem:[%s7119_s0 + $0x20] sm:$0xff]  ;;  %v2027_v34 = vld [vmem:[%s7119_s0 + $0x38] sm:$0xff]  ;;  %v2029_v40 = vld [vmem:[%s7119_s0 + $0x48] sm:$0xff] }
   0x6   :  { %vm545_vm4 = vmand %vm284_vm2, %vm417_vm3  ;;  %5084 = vmatprep.subr.bf16.mxu1 %v5079_v11  ;;  %vm285_vm5 = vcmp.ge.s32.totalorder %v23_v12, %v5263_v5  ;;  %vm418_vm6 = vcmp.lt.s32.totalorder %v23_v12, %v5268_v6  ;;  %vm286_vm7 = vcmp.ge.s32.totalorder %v24_v13, %v5263_v5  ;;  %vm419_vm9 = vcmp.lt.s32.totalorder %v24_v13, %v5268_v6  ;;  %v2028_v36 = vld [vmem:[%s7119_s0 + $0x40] sm:$0xff]  ;;  %v2030_v42 = vld [vmem:[%s7119_s0 + $0x50] sm:$0xff] }
   0x7   :  { %v4036_v19 = vsel %vm545_vm4, 1.0, %v5220_v18  ;;  %vm546_vm8 = vmand %vm285_vm5, %vm418_vm6  ;;  %vm287_vm10 = vcmp.ge.s32.totalorder %v25_v14, %v5263_v5  ;;  %vm420_vm11 = vcmp.lt.s32.totalorder %v25_v14, %v5268_v6  ;;  %vm288_vm12 = vcmp.ge.s32.totalorder %v26_v15, %v5263_v5  ;;  %v2031_v46 = vld [vmem:[%s7119_s0 + $0x58] sm:$0xff]  ;;  %v2032_v48 = vld [vmem:[%s7119_s0 + $0x60] sm:$0xff] }
   0x8   :  { %4683 = vmatprep.mubr.msk.f32.mxu0 %vm930_vm1, %v4036_v19  ;;  %v4037_v20 = vsel %vm546_vm8, 1.0, %v5220_v18  ;;  %vm547_vm13 = vmand %vm286_vm7, %vm419_vm9  ;;  %vm421_vm14 = vcmp.lt.s32.totalorder %v26_v15, %v5268_v6  ;;  %vm289_vm15 = vcmp.ge.s32.totalorder %v27_v16, %v5263_v5  ;;  %vm422_vm2 = vcmp.lt.s32.totalorder %v27_v16, %v5268_v6  ;;  %v2033_v52 = vld [vmem:[%s7119_s0 + $0x68] sm:$0xff]  ;;  %v2034_v54 = vld [vmem:[%s7119_s0 + $0x70] sm:$0xff] }
   0x9   :  { %5086 = vmatpush3.bf16.msra.mxu1 %v5079_v11  ;;  %4684 = vmatmul.mubr.msk.f32.vlgmr.msra.gmra.mrb[0].mxu0 %vm930_vm1, %v4037_v20  ;;  %v4038_v22 = vsel %vm547_vm13, 1.0, %v5220_v18  ;;  %vm548_vm3 = vmand %vm287_vm10, %vm420_vm11  ;;  %vm290_vm4 = vcmp.ge.s32.totalorder %v28_v17, %v5263_v5  ;;  %vm423_vm5 = vcmp.lt.s32.totalorder %v28_v17, %v5268_v6  ;;  %v29_v24 = vadd.s32 56, %v5273_v8  ;;  %v2035_v58 = vld [vmem:[%s7119_s0 + $0x78] sm:$0xff]  ;;  %v2036_v60 = vld [vmem:[%s7119_s0 + $0x80] sm:$0xff] }
   0xa   :  { %5078 = vmatpush3.bf16.msra.mxu0 %v5075_v4  ;;  %4686 = vmatprep.mubr.msk.f32.mxu0 %vm930_vm1, %v4038_v22  ;;  %v4039_v25 = vsel %vm548_vm3, 1.0, %v5220_v18  ;;  %vm549_vm6 = vmand %vm288_vm12, %vm421_vm14  ;;  %v30_v26 = vadd.s32 64, %v5273_v8  ;;  %v31_v29 = vadd.s32 72, %v5273_v8  ;;  %v32_v31 = vadd.s32 80, %v5273_v8  ;;  %v2037_v0 = vld [vmem:[%s7119_s0 + $0x88] sm:$0xff]  ;;  %v2038_v2 = vld [vmem:[%s7119_s0 + $0x90] sm:$0xff] }
   0xb   :  { %v4040_v27 = vsel %vm549_vm6, 1.0, %v5220_v18  ;;  %vm550_vm7 = vmand %vm289_vm15, %vm422_vm2  ;;  %5080 = vmatprep.subr.bf16.mxu0 %v5079_v11  ;;  %vm291_vm9 = vcmp.ge.s32.totalorder %v29_v24, %v5263_v5  ;;  %vm424_vm10 = vcmp.lt.s32.totalorder %v29_v24, %v5268_v6  ;;  %v33_v35 = vadd.s32 88, %v5273_v8  ;;  %v2039_v9 = vld [vmem:[%s7119_s0 + $0x98] sm:$0xff]  ;;  %v2041_v15 = vld [vmem:[%s7119_s0 + $0xa8] sm:$0xff] }
   0xc   :  { %4887 = vmatmul.mubr.msk.f32.vlgmr.msra.gmra.mrb[0].mxu1 %vm2152_vm0, %v2023_v21  ;;  %vm551_vm8 = vmand %vm290_vm4, %vm423_vm5  ;;  %vm292_vm11 = vcmp.ge.s32.totalorder %v30_v26, %v5263_v5  ;;  %vm425_vm12 = vcmp.lt.s32.totalorder %v30_v26, %v5268_v6  ;;  %v4041_v32 = vsel %vm550_vm7, 1.0, %v5220_v18  ;;  %vm293_vm15 = vcmp.ge.s32.totalorder %v31_v29, %v5263_v5  ;;  %v2042_v17 = vld [vmem:[%s7119_s0 + $0xb0] sm:$0xff]  ;;  %v2043_v22 = vld [vmem:[%s7119_s0 + $0xb8] sm:$0xff] }
   0xd   :  { %4889 = vmatprep.mubr.msk.f32.mxu1 %vm2152_vm0, %v2024_v23  ;;  %4687 = vmatmul.mubr.msk.f32.gmra.mrb[2].mxu0 %vm930_vm1, %v4039_v25  ;;  %v4042_v33 = vsel %vm551_vm8, 1.0, %v5220_v18  ;;  %vm552_vm13 = vmand %vm291_vm9, %vm424_vm10  ;;  %vm426_vm2 = vcmp.lt.s32.totalorder %v31_v29, %v5268_v6  ;;  %vm294_vm3 = vcmp.ge.s32.totalorder %v32_v31, %v5263_v5  ;;  %vm427_vm4 = vcmp.lt.s32.totalorder %v32_v31, %v5268_v6  ;;  %v2044_v24 = vld [vmem:[%s7119_s0 + $0xc0] sm:$0xff] }
   0xe   :  { %4689 = vmatprep.mubr.msk.f32.mxu0 %vm930_vm1, %v4040_v27  ;;  %5082 = vmatpush3.bf16.msra.mxu0 %v5079_v11  ;;  %vm553_vm14 = vmand %vm292_vm11, %vm425_vm12  ;;  %v34_v37 = vadd.s32 96, %v5273_v8  ;;  %v4043_v38 = vsel %vm552_vm13, 1.0, %v5220_v18  ;;  %vm295_vm7 = vcmp.ge.s32.totalorder %v33_v35, %v5263_v5  ;;  %vm428_vm8 = vcmp.lt.s32.totalorder %v33_v35, %v5268_v6  ;;  %v2040_v11 = vld [vmem:[%s7119_s0 + $0xa0] sm:$0xff] }
   0xf   :  { %v4044_v39 = vsel %vm553_vm14, 1.0, %v5220_v18  ;;  %vm554_vm5 = vmand %vm293_vm15, %vm426_vm2  ;;  %v35_v41 = vadd.s32 104, %v5273_v8  ;;  %v36_v43 = vadd.s32 112, %v5273_v8  ;;  %v37_v47 = vadd.s32 120, %v5273_v8 }
  0x10   :  { %4890 = vmatmul.mubr.msk.f32.gmra.mrb[2].mxu1 %vm2152_vm0, %v2025_v28  ;;  %vm555_vm6 = vmand %vm294_vm3, %vm427_vm4  ;;  %vm296_vm9 = vcmp.ge.s32.totalorder %v34_v37, %v5263_v5  ;;  %vm429_vm10 = vcmp.lt.s32.totalorder %v34_v37, %v5268_v6  ;;  %v4045_v44 = vsel %vm554_vm5, 1.0, %v5220_v18  ;;  %v38_v49 = vadd.s32 128, %v5273_v8  ;;  %v2045_v28 = vld [vmem:[%s7119_s0 + $0xc8] sm:$0xff] }
  0x11   :  { %4892 = vmatprep.mubr.msk.f32.mxu1 %vm2152_vm0, %v2026_v30  ;;  %4690 = vmatmul.mubr.msk.f32.gmra.mrb[4].mxu0 %vm930_vm1, %v4041_v32  ;;  %v4046_v45 = vsel %vm555_vm6, 1.0, %v5220_v18  ;;  %vm556_vm11 = vmand %vm295_vm7, %vm428_vm8  ;;  %vm297_vm13 = vcmp.ge.s32.totalorder %v35_v41, %v5263_v5  ;;  %vm430_vm14 = vcmp.lt.s32.totalorder %v35_v41, %v5268_v6  ;;  %vm298_vm15 = vcmp.ge.s32.totalorder %v36_v43, %v5263_v5  ;;  %v2046_v30 = vld [vmem:[%s7119_s0 + $0xd0] sm:$0xff] }
  0x12   :  { %4692 = vmatprep.mubr.msk.f32.mxu0 %vm930_vm1, %v4042_v33  ;;  %vm557_vm12 = vmand %vm296_vm9, %vm429_vm10  ;;  %vm431_vm2 = vcmp.lt.s32.totalorder %v36_v43, %v5268_v6  ;;  %v4047_v50 = vsel %vm556_vm11, 1.0, %v5220_v18  ;;  %vm299_vm5 = vcmp.ge.s32.totalorder %v37_v47, %v5263_v5  ;;  %vm432_vm6 = vcmp.lt.s32.totalorder %v37_v47, %v5268_v6 }
  0x13   :  { %v4048_v51 = vsel %vm557_vm12, 1.0, %v5220_v18  ;;  %vm558_vm3 = vmand %vm297_vm13, %vm430_vm14  ;;  %v39_v53 = vadd.s32 136, %v5273_v8  ;;  %vm300_vm7 = vcmp.ge.s32.totalorder %v38_v49, %v5263_v5  ;;  %vm433_vm8 = vcmp.lt.s32.totalorder %v38_v49, %v5268_v6 }
  0x14   :  { %4893 = vmatmul.mubr.msk.f32.gmra.mrb[4].mxu1 %vm2152_vm0, %v2027_v34  ;;  %vm559_vm4 = vmand %vm298_vm15, %vm431_vm2  ;;  %v40_v55 = vadd.s32 144, %v5273_v8  ;;  %v4049_v56 = vsel %vm558_vm3, 1.0, %v5220_v18  ;;  %v41_v59 = vadd.s32 152, %v5273_v8  ;;  %v42_v61 = vadd.s32 160, %v5273_v8  ;;  %v2047_v34 = vld [vmem:[%s7119_s0 + $0xd8] sm:$0xff] }
  0x15   :  { %4895 = vmatprep.mubr.msk.f32.mxu1 %vm2152_vm0, %v2028_v36  ;;  %4693 = vmatmul.mubr.msk.f32.gmra.mrb[6].mxu0 %vm930_vm1, %v4043_v38  ;;  %v4050_v57 = vsel %vm559_vm4, 1.0, %v5220_v18  ;;  %vm560_vm9 = vmand %vm299_vm5, %vm432_vm6  ;;  %vm301_vm11 = vcmp.ge.s32.totalorder %v39_v53, %v5263_v5  ;;  %vm434_vm12 = vcmp.lt.s32.totalorder %v39_v53, %v5268_v6  ;;  %v43_v1 = vadd.s32 168, %v5273_v8  ;;  %v2048_v36 = vld [vmem:[%s7119_s0 + $0xe0] sm:$0xff] }
  0x16   :  { %4695 = vmatprep.mubr.msk.f32.mxu0 %vm930_vm1, %v4044_v39  ;;  %vm561_vm10 = vmand %vm300_vm7, %vm433_vm8  ;;  %vm302_vm13 = vcmp.ge.s32.totalorder %v40_v55, %v5263_v5  ;;  %vm435_vm14 = vcmp.lt.s32.totalorder %v40_v55, %v5268_v6  ;;  %v4051_v62 = vsel %vm560_vm9, 1.0, %v5220_v18  ;;  %vm303_vm3 = vcmp.ge.s32.totalorder %v41_v59, %v5263_v5 }
  0x17   :  { %v4052_v63 = vsel %vm561_vm10, 1.0, %v5220_v18  ;;  %vm562_vm15 = vmand %vm301_vm11, %vm434_vm12  ;;  %vm436_vm4 = vcmp.lt.s32.totalorder %v41_v59, %v5268_v6  ;;  %vm304_vm5 = vcmp.ge.s32.totalorder %v42_v61, %v5263_v5  ;;  %vm437_vm6 = vcmp.lt.s32.totalorder %v42_v61, %v5268_v6 }
  0x18   :  { %4896 = vmatmul.mubr.msk.f32.gmra.mrb[6].mxu1 %vm2152_vm0, %v2029_v40  ;;  %vm563_vm2 = vmand %vm302_vm13, %vm435_vm14  ;;  %v44_v3 = vadd.s32 176, %v5273_v8  ;;  %v4053_v4 = vsel %vm562_vm15, 1.0, %v5220_v18  ;;  %vm305_vm9 = vcmp.ge.s32.totalorder %v43_v1, %v5263_v5  ;;  %vm438_vm10 = vcmp.lt.s32.totalorder %v43_v1, %v5268_v6  ;;  %v2049_v40 = vld [vmem:[%s7119_s0 + $0xe8] sm:$0xff] }
  0x19   :  { %4898 = vmatprep.mubr.msk.f32.mxu1 %vm2152_vm0, %v2030_v42  ;;  %4696 = vmatmul.mubr.msk.f32.gmra.mrb[8].mxu0 %vm930_vm1, %v4045_v44  ;;  %v4054_v7 = vsel %vm563_vm2, 1.0, %v5220_v18  ;;  %vm564_vm7 = vmand %vm303_vm3, %vm436_vm4  ;;  %v45_v10 = vadd.s32 184, %v5273_v8  ;;  %v46_v12 = vadd.s32 192, %v5273_v8  ;;  %v47_v16 = vadd.s32 200, %v5273_v8  ;;  %v2050_v42 = vld [vmem:[%s7119_s0 + $0xf0] sm:$0xff] }
  0x1a   :  { %4698 = vmatprep.mubr.msk.f32.mxu0 %vm930_vm1, %v4046_v45  ;;  %vm565_vm8 = vmand %vm304_vm5, %vm437_vm6  ;;  %vm306_vm11 = vcmp.ge.s32.totalorder %v44_v3, %v5263_v5  ;;  %vm439_vm12 = vcmp.lt.s32.totalorder %v44_v3, %v5268_v6  ;;  %v4055_v13 = vsel %vm564_vm7, 1.0, %v5220_v18  ;;  %v48_v19 = vadd.s32 208, %v5273_v8 }
  0x1b   :  { %v4056_v14 = vsel %vm565_vm8, 1.0, %v5220_v18  ;;  %vm566_vm13 = vmand %vm305_vm9, %vm438_vm10  ;;  %vm307_vm15 = vcmp.ge.s32.totalorder %v45_v10, %v5263_v5  ;;  %vm440_vm2 = vcmp.lt.s32.totalorder %v45_v10, %v5268_v6  ;;  %vm308_vm3 = vcmp.ge.s32.totalorder %v46_v12, %v5263_v5 }
  0x1c   :  { %4899 = vmatmul.mubr.msk.f32.gmra.mrb[8].mxu1 %vm2152_vm0, %v2031_v46  ;;  %vm567_vm14 = vmand %vm306_vm11, %vm439_vm12  ;;  %vm441_vm4 = vcmp.lt.s32.totalorder %v46_v12, %v5268_v6  ;;  %v4057_v20 = vsel %vm566_vm13, 1.0, %v5220_v18  ;;  %vm309_vm7 = vcmp.ge.s32.totalorder %v47_v16, %v5263_v5  ;;  %vm442_vm8 = vcmp.lt.s32.totalorder %v47_v16, %v5268_v6  ;;  %v2051_v46 = vld [vmem:[%s7119_s0 + $0xf8] sm:$0xff] }
  0x1d   :  { %4901 = vmatprep.mubr.msk.f32.mxu1 %vm2152_vm0, %v2032_v48  ;;  %4699 = vmatmul.mubr.msk.f32.gmra.mrb[10].mxu0 %vm930_vm1, %v4047_v50  ;;  %v4058_v21 = vsel %vm567_vm14, 1.0, %v5220_v18  ;;  %vm568_vm5 = vmand %vm307_vm15, %vm440_vm2  ;;  %v49_v23 = vadd.s32 216, %v5273_v8  ;;  %vm310_vm9 = vcmp.ge.s32.totalorder %v48_v19, %v5263_v5  ;;  %vm443_vm10 = vcmp.lt.s32.totalorder %v48_v19, %v5268_v6  ;;  %v2052_v48 = vld [vmem:[%s7119_s0 + $0x100] sm:$0xff] }
  0x1e   :  { %4701 = vmatprep.mubr.msk.f32.mxu0 %vm930_vm1, %v4048_v51  ;;  %vm569_vm6 = vmand %vm308_vm3, %vm441_vm4  ;;  %v50_v25 = vadd.s32 224, %v5273_v8  ;;  %v4059_v26 = vsel %vm568_vm5, 1.0, %v5220_v18  ;;  %v51_v29 = vadd.s32 232, %v5273_v8  ;;  %v52_v31 = vadd.s32 240, %v5273_v8 }
  0x1f   :  { %v4060_v27 = vsel %vm569_vm6, 1.0, %v5220_v18  ;;  %vm570_vm11 = vmand %vm309_vm7, %vm442_vm8  ;;  %vm311_vm13 = vcmp.ge.s32.totalorder %v49_v23, %v5263_v5  ;;  %vm444_vm14 = vcmp.lt.s32.totalorder %v49_v23, %v5268_v6  ;;  %v53_v35 = vadd.s32 248, %v5273_v8 }
  0x20   :  { %4902 = vmatmul.mubr.msk.f32.gmra.mrb[10].mxu1 %vm2152_vm0, %v2033_v52  ;;  %vm571_vm12 = vmand %vm310_vm9, %vm443_vm10  ;;  %vm312_vm15 = vcmp.ge.s32.totalorder %v50_v25, %v5263_v5  ;;  %vm445_vm2 = vcmp.lt.s32.totalorder %v50_v25, %v5268_v6  ;;  %v4061_v32 = vsel %vm570_vm11, 1.0, %v5220_v18  ;;  %vm313_vm5 = vcmp.ge.s32.totalorder %v51_v29, %v5263_v5  ;;  %v2053_v52 = vld [vmem:[%s7119_s0 + $0x108] sm:$0xff] }
  0x21   :  { %4904 = vmatprep.mubr.msk.f32.mxu1 %vm2152_vm0, %v2034_v54  ;;  %4702 = vmatmul.mubr.msk.f32.gmra.mrb[12].mxu0 %vm930_vm1, %v4049_v56  ;;  %v4062_v33 = vsel %vm571_vm12, 1.0, %v5220_v18  ;;  %vm572_vm3 = vmand %vm311_vm13, %vm444_vm14  ;;  %vm446_vm6 = vcmp.lt.s32.totalorder %v51_v29, %v5268_v6  ;;  %vm314_vm7 = vcmp.ge.s32.totalorder %v52_v31, %v5263_v5  ;;  %vm447_vm8 = vcmp.lt.s32.totalorder %v52_v31, %v5268_v6  ;;  %v2054_v54 = vld [vmem:[%s7119_s0 + $0x110] sm:$0xff] }
  0x22   :  { %4704 = vmatprep.mubr.msk.f32.mxu0 %vm930_vm1, %v4050_v57  ;;  %vm573_vm4 = vmand %vm312_vm15, %vm445_vm2  ;;  %v54_v37 = vadd.s32 256, %v5273_v8  ;;  %v4063_v38 = vsel %vm572_vm3, 1.0, %v5220_v18  ;;  %vm315_vm11 = vcmp.ge.s32.totalorder %v53_v35, %v5263_v5  ;;  %vm448_vm12 = vcmp.lt.s32.totalorder %v53_v35, %v5268_v6 }
  0x23   :  { %v4064_v39 = vsel %vm573_vm4, 1.0, %v5220_v18  ;;  %vm574_vm9 = vmand %vm313_vm5, %vm446_vm6  ;;  %v55_v41 = vadd.s32 264, %v5273_v8  ;;  %v56_v43 = vadd.s32 272, %v5273_v8  ;;  %v57_v47 = vadd.s32 280, %v5273_v8 }
  0x24   :  { %4905 = vmatmul.mubr.msk.f32.gmra.mrb[12].mxu1 %vm2152_vm0, %v2035_v58  ;;  %vm575_vm10 = vmand %vm314_vm7, %vm447_vm8  ;;  %vm316_vm13 = vcmp.ge.s32.totalorder %v54_v37, %v5263_v5  ;;  %vm449_vm14 = vcmp.lt.s32.totalorder %v54_v37, %v5268_v6  ;;  %v4065_v44 = vsel %vm574_vm9, 1.0, %v5220_v18  ;;  %v58_v49 = vadd.s32 288, %v5273_v8  ;;  %v2055_v58 = vld [vmem:[%s7119_s0 + $0x118] sm:$0xff] }
  0x25   :  { %4907 = vmatprep.mubr.msk.f32.mxu1 %vm2152_vm0, %v2036_v60  ;;  %4705 = vmatmul.mubr.msk.f32.gmra.mrb[14].mxu0 %vm930_vm1, %v4051_v62  ;;  %v4066_v45 = vsel %vm575_vm10, 1.0, %v5220_v18  ;;  %vm576_vm15 = vmand %vm315_vm11, %vm448_vm12  ;;  %vm317_vm3 = vcmp.ge.s32.totalorder %v55_v41, %v5263_v5  ;;  %vm450_vm4 = vcmp.lt.s32.totalorder %v55_v41, %v5268_v6  ;;  %vm318_vm5 = vcmp.ge.s32.totalorder %v56_v43, %v5263_v5  ;;  %v2056_v60 = vld [vmem:[%s7119_s0 + $0x120] sm:$0xff] }
  0x26   :  { %4707 = vmatprep.mubr.msk.f32.mxu0 %vm930_vm1, %v4052_v63  ;;  %vm577_vm2 = vmand %vm316_vm13, %vm449_vm14  ;;  %vm451_vm6 = vcmp.lt.s32.totalorder %v56_v43, %v5268_v6  ;;  %v4067_v50 = vsel %vm576_vm15, 1.0, %v5220_v18  ;;  %vm319_vm9 = vcmp.ge.s32.totalorder %v57_v47, %v5263_v5  ;;  %vm452_vm10 = vcmp.lt.s32.totalorder %v57_v47, %v5268_v6 }
  0x27   :  { %v4068_v51 = vsel %vm577_vm2, 1.0, %v5220_v18  ;;  %vm578_vm7 = vmand %vm317_vm3, %vm450_vm4  ;;  %v59_v53 = vadd.s32 296, %v5273_v8  ;;  %vm320_vm11 = vcmp.ge.s32.totalorder %v58_v49, %v5263_v5  ;;  %vm453_vm12 = vcmp.lt.s32.totalorder %v58_v49, %v5268_v6 }
  0x28   :  { %4908 = vmatmul.mubr.msk.f32.gmra.mrb[14].mxu1 %vm2152_vm0, %v2037_v0  ;;  %vm579_vm8 = vmand %vm318_vm5, %vm451_vm6  ;;  %v60_v55 = vadd.s32 304, %v5273_v8  ;;  %v4069_v56 = vsel %vm578_vm7, 1.0, %v5220_v18  ;;  %v61_v59 = vadd.s32 312, %v5273_v8  ;;  %v62_v61 = vadd.s32 320, %v5273_v8  ;;  %v2057_v0 = vld [vmem:[%s7119_s0 + $0x128] sm:$0xff] }
  0x29   :  { %4910 = vmatprep.mubr.msk.f32.mxu1 %vm2152_vm0, %v2038_v2  ;;  %4708 = vmatmul.mubr.msk.f32.gmra.mrb[16].mxu0 %vm930_vm1, %v4053_v4  ;;  %v4070_v57 = vsel %vm579_vm8, 1.0, %v5220_v18  ;;  %vm580_vm13 = vmand %vm319_vm9, %vm452_vm10  ;;  %vm321_vm15 = vcmp.ge.s32.totalorder %v59_v53, %v5263_v5  ;;  %vm454_vm2 = vcmp.lt.s32.totalorder %v59_v53, %v5268_v6  ;;  %v63_v1 = vadd.s32 328, %v5273_v8  ;;  %v2058_v2 = vld [vmem:[%s7119_s0 + $0x130] sm:$0xff] }
  0x2a   :  { %4710 = vmatprep.mubr.msk.f32.mxu0 %vm930_vm1, %v4054_v7  ;;  %vm581_vm14 = vmand %vm320_vm11, %vm453_vm12  ;;  %vm322_vm3 = vcmp.ge.s32.totalorder %v60_v55, %v5263_v5  ;;  %vm455_vm4 = vcmp.lt.s32.totalorder %v60_v55, %v5268_v6  ;;  %v4071_v62 = vsel %vm580_vm13, 1.0, %v5220_v18  ;;  %vm323_vm7 = vcmp.ge.s32.totalorder %v61_v59, %v5263_v5 }
  0x2b   :  { %v4072_v63 = vsel %vm581_vm14, 1.0, %v5220_v18  ;;  %vm582_vm5 = vmand %vm321_vm15, %vm454_vm2  ;;  %vm456_vm8 = vcmp.lt.s32.totalorder %v61_v59, %v5268_v6  ;;  %vm324_vm9 = vcmp.ge.s32.totalorder %v62_v61, %v5263_v5  ;;  %vm457_vm10 = vcmp.lt.s32.totalorder %v62_v61, %v5268_v6 }
  0x2c   :  { %4911 = vmatmul.mubr.msk.f32.gmra.mrb[16].mxu1 %vm2152_vm0, %v2039_v9  ;;  %vm583_vm6 = vmand %vm322_vm3, %vm455_vm4  ;;  %v64_v3 = vadd.s32 336, %v5273_v8  ;;  %v4073_v4 = vsel %vm582_vm5, 1.0, %v5220_v18  ;;  %v2059_v9 = vld [vmem:[%s7119_s0 + $0x138] sm:$0xff]  ;;  %vm325_vm13 = vcmp.ge.s32.totalorder %v63_v1, %v5263_v5  ;;  %vm458_vm14 = vcmp.lt.s32.totalorder %v63_v1, %v5268_v6 }
  0x2d   :  { %4913 = vmatprep.mubr.msk.f32.mxu1 %vm2152_vm0, %v2040_v11  ;;  %4711 = vmatmul.mubr.msk.f32.gmra.mrb[18].mxu0 %vm930_vm1, %v4055_v13  ;;  %v4074_v7 = vsel %vm583_vm6, 1.0, %v5220_v18  ;;  %vm584_vm11 = vmand %vm323_vm7, %vm456_vm8  ;;  %v65_v10 = vadd.s32 344, %v5273_v8  ;;  %v2060_v11 = vld [vmem:[%s7119_s0 + $0x140] sm:$0xff]  ;;  %v66_v12 = vadd.s32 352, %v5273_v8  ;;  %v67_v16 = vadd.s32 360, %v5273_v8 }
  0x2e   :  { %4713 = vmatprep.mubr.msk.f32.mxu0 %vm930_vm1, %v4056_v14  ;;  %vm585_vm12 = vmand %vm324_vm9, %vm457_vm10  ;;  %vm326_vm15 = vcmp.ge.s32.totalorder %v64_v3, %v5263_v5  ;;  %vm459_vm2 = vcmp.lt.s32.totalorder %v64_v3, %v5268_v6  ;;  %v4075_v13 = vsel %vm584_vm11, 1.0, %v5220_v18  ;;  %v68_v19 = vadd.s32 368, %v5273_v8 }
  0x2f   :  { %v4076_v14 = vsel %vm585_vm12, 1.0, %v5220_v18  ;;  %vm586_vm3 = vmand %vm325_vm13, %vm458_vm14  ;;  %vm327_vm5 = vcmp.ge.s32.totalorder %v65_v10, %v5263_v5  ;;  %vm460_vm6 = vcmp.lt.s32.totalorder %v65_v10, %v5268_v6  ;;  %vm328_vm7 = vcmp.ge.s32.totalorder %v66_v12, %v5263_v5 }
  0x30   :  { %4914 = vmatmul.mubr.msk.f32.gmra.mrb[18].mxu1 %vm2152_vm0, %v2041_v15  ;;  %v2061_v15 = vld [vmem:[%s7119_s0 + $0x148] sm:$0xff]  ;;  %vm587_vm4 = vmand %vm326_vm15, %vm459_vm2  ;;  %vm461_vm8 = vcmp.lt.s32.totalorder %v66_v12, %v5268_v6  ;;  %vm329_vm11 = vcmp.ge.s32.totalorder %v67_v16, %v5263_v5  ;;  %vm462_vm12 = vcmp.lt.s32.totalorder %v67_v16, %v5268_v6  ;;  %v69_v23 = vadd.s32 376, %v5273_v8 }
  0x31   :  { %4916 = vmatprep.mubr.msk.f32.mxu1 %vm2152_vm0, %v2042_v17  ;;  %4714 = vmatmul.mubr.msk.f32.gmra.mrb[20].mxu0 %vm930_vm1, %v4057_v20  ;;  %v2062_v17 = vld [vmem:[%s7119_s0 + $0x150] sm:$0xff]  ;;  %v4077_v20 = vsel %vm586_vm3, 1.0, %v5220_v18  ;;  %vm588_vm9 = vmand %vm327_vm5, %vm460_vm6  ;;  %vm330_vm13 = vcmp.ge.s32.totalorder %v68_v19, %v5263_v5  ;;  %vm463_vm14 = vcmp.lt.s32.totalorder %v68_v19, %v5268_v6  ;;  %v70_v25 = vadd.s32 384, %v5273_v8  ;;  %v5845_v19 = vld [vmem:[%s7120_s1] ss:$0 sm:$0xff] }
  0x32   :  { %4716 = vmatprep.mubr.msk.f32.mxu0 %vm930_vm1, %v4058_v21  ;;  %v4078_v21 = vsel %vm587_vm4, 1.0, %v5220_v18  ;;  %vm589_vm10 = vmand %vm328_vm7, %vm461_vm8  ;;  %vm331_vm3 = vcmp.ge.s32.totalorder %v69_v23, %v5263_v5  ;;  %vm464_vm4 = vcmp.lt.s32.totalorder %v69_v23, %v5268_v6  ;;  %v71_v29 = vadd.s32 392, %v5273_v8 }
  0x33   :  { %vm590_vm15 = vmand %vm329_vm11, %vm462_vm12  ;;  %vm332_vm5 = vcmp.ge.s32.totalorder %v70_v25, %v5263_v5  ;;  %vm465_vm6 = vcmp.lt.s32.totalorder %v70_v25, %v5268_v6  ;;  %v72_v31 = vadd.s32 400, %v5273_v8  ;;  %v73_v35 = vadd.s32 408, %v5273_v8 }
  0x34   :  { %4917 = vmatmul.mubr.msk.f32.gmra.mrb[20].mxu1 %vm2152_vm0, %v2043_v22  ;;  %v2063_v22 = vld [vmem:[%s7119_s0 + $0x158] sm:$0xff]  ;;  %vm591_vm2 = vmand %vm330_vm13, %vm463_vm14  ;;  %v74_v37 = vadd.s32 416, %v5273_v8  ;;  %v75_v41 = vadd.s32 424, %v5273_v8  ;;  %v76_v43 = vadd.s32 432, %v5273_v8  ;;  %v77_v47 = vadd.s32 440, %v5273_v8 }
  0x35   :  { %4919 = vmatprep.mubr.msk.f32.mxu1 %vm2152_vm0, %v2044_v24  ;;  %4717 = vmatmul.mubr.msk.f32.gmra.mrb[22].mxu0 %vm930_vm1, %v4059_v26  ;;  %v2064_v24 = vld [vmem:[%s7119_s0 + $0x160] sm:$0xff]  ;;  %v4079_v26 = vsel %vm588_vm9, 1.0, %v5220_v18  ;;  %vm592_vm7 = vmand %vm331_vm3, %vm464_vm4  ;;  %vm333_vm9 = vcmp.ge.s32.totalorder %v71_v29, %v5263_v5  ;;  %vm334_vm11 = vcmp.ge.s32.totalorder %v72_v31, %v5263_v5  ;;  %vm467_vm12 = vcmp.lt.s32.totalorder %v72_v31, %v5268_v6 }
  0x36   :  { %4719 = vmatprep.mubr.msk.f32.mxu0 %vm930_vm1, %v4060_v27  ;;  %v4080_v27 = vsel %vm589_vm10, 1.0, %v5220_v18  ;;  %vm593_vm8 = vmand %vm332_vm5, %vm465_vm6  ;;  %vm466_vm10 = vcmp.lt.s32.totalorder %v71_v29, %v5268_v6  ;;  %vm336_vm3 = vcmp.ge.s32.totalorder %v74_v37, %v5263_v5  ;;  %vm469_vm4 = vcmp.lt.s32.totalorder %v74_v37, %v5268_v6 }
  0x37   :  { %vm594_vm13 = vmand %vm333_vm9, %vm466_vm10  ;;  %vm338_vm9 = vcmp.ge.s32.totalorder %v76_v43, %v5263_v5  ;;  %vm471_vm10 = vcmp.lt.s32.totalorder %v76_v43, %v5268_v6  ;;  %v78_v49 = vadd.s32 448, %v5273_v8  ;;  %v79_v53 = vadd.s32 456, %v5273_v8 }
  0x38   :  { %4920 = vmatmul.mubr.msk.f32.gmra.mrb[22].mxu1 %vm2152_vm0, %v2045_v28  ;;  %v2065_v28 = vld [vmem:[%s7119_s0 + $0x168] sm:$0xff]  ;;  %vm595_vm14 = vmand %vm334_vm11, %vm467_vm12  ;;  %v80_v55 = vadd.s32 464, %v5273_v8  ;;  %v81_v59 = vadd.s32 472, %v5273_v8  ;;  %v82_v61 = vadd.s32 480, %v5273_v8  ;;  %v83_v1 = vadd.s32 488, %v5273_v8 }
  0x39   :  { %4922 = vmatprep.mubr.msk.f32.mxu1 %vm2152_vm0, %v2046_v30  ;;  %4720 = vmatmul.mubr.msk.f32.gmra.mrb[24].mxu0 %vm930_vm1, %v4061_v32  ;;  %v2066_v30 = vld [vmem:[%s7119_s0 + $0x170] sm:$0xff]  ;;  %v4081_v32 = vsel %vm590_vm15, 1.0, %v5220_v18  ;;  %vm335_vm15 = vcmp.ge.s32.totalorder %v73_v35, %v5263_v5  ;;  %vm597_vm6 = vmand %vm336_vm3, %vm469_vm4  ;;  %v84_v3 = vadd.s32 496, %v5273_v8  ;;  %v85_v10 = vadd.s32 504, %v5273_v8 }
  0x3a   :  { %4722 = vmatprep.mubr.msk.f32.mxu0 %vm930_vm1, %v4062_v33  ;;  %v4082_v33 = vsel %vm591_vm2, 1.0, %v5220_v18  ;;  %vm468_vm2 = vcmp.lt.s32.totalorder %v73_v35, %v5268_v6  ;;  %vm599_vm12 = vmand %vm338_vm9, %vm471_vm10  ;;  %v86_v12 = vadd.s32 512, %v5273_v8  ;;  %v87_v16 = vadd.s32 520, %v5273_v8 }
  0x3b   :  { %vm596_vm5 = vmand %vm335_vm15, %vm468_vm2  ;;  %vm340_vm15 = vcmp.ge.s32.totalorder %v78_v49, %v5263_v5  ;;  %vm473_vm2 = vcmp.lt.s32.totalorder %v78_v49, %v5268_v6  ;;  %v89_v23 = vadd.s32 536, %v5273_v8  ;;  %v90_v25 = vadd.s32 544, %v5273_v8 }
  0x3c   :  { %4923 = vmatmul.mubr.msk.f32.gmra.mrb[24].mxu1 %vm2152_vm0, %v2047_v34  ;;  %v2067_v34 = vld [vmem:[%s7119_s0 + $0x178] sm:$0xff]  ;;  %vm601_vm4 = vmand %vm340_vm15, %vm473_vm2  ;;  %v91_v29 = vadd.s32 552, %v5273_v8  ;;  %v92_v31 = vadd.s32 560, %v5273_v8  ;;  %v93_v35 = vadd.s32 568, %v5273_v8  ;;  %v94_v37 = vadd.s32 576, %v5273_v8 }
  0x3d   :  { %4925 = vmatprep.mubr.msk.f32.mxu1 %vm2152_vm0, %v2048_v36  ;;  %4723 = vmatmul.mubr.msk.f32.gmra.mrb[26].mxu0 %vm930_vm1, %v4063_v38  ;;  %v2068_v36 = vld [vmem:[%s7119_s0 + $0x180] sm:$0xff]  ;;  %v4083_v38 = vsel %vm592_vm7, 1.0, %v5220_v18  ;;  %vm337_vm7 = vcmp.ge.s32.totalorder %v75_v41, %v5263_v5  ;;  %v96_v43 = vadd.s32 592, %v5273_v8  ;;  %v98_v49 = vadd.s32 608, %v5273_v8 }
  0x3e   :  { %4725 = vmatprep.mubr.msk.f32.mxu0 %vm930_vm1, %v4064_v39  ;;  %v4084_v39 = vsel %vm593_vm8, 1.0, %v5220_v18  ;;  %vm470_vm8 = vcmp.lt.s32.totalorder %v75_v41, %v5268_v6  ;;  %v95_v41 = vadd.s32 584, %v5273_v8 }
  0x3f   :  { %vm598_vm11 = vmand %vm337_vm7, %vm470_vm8  ;;  %vm342_vm7 = vcmp.ge.s32.totalorder %v80_v55, %v5263_v5  ;;  %vm475_vm8 = vcmp.lt.s32.totalorder %v80_v55, %v5268_v6  ;;  %v100_v55 = vadd.s32 624, %v5273_v8 }
  0x40   :  { %4926 = vmatmul.mubr.msk.f32.gmra.mrb[26].mxu1 %vm2152_vm0, %v2049_v40  ;;  %v2069_v40 = vld [vmem:[%s7119_s0 + $0x188] sm:$0xff]  ;;  %vm603_vm10 = vmand %vm342_vm7, %vm475_vm8 }
  0x41   :  { %4928 = vmatprep.mubr.msk.f32.mxu1 %vm2152_vm0, %v2050_v42  ;;  %4726 = vmatmul.mubr.msk.f32.gmra.mrb[28].mxu0 %vm930_vm1, %v4065_v44  ;;  %v2070_v42 = vld [vmem:[%s7119_s0 + $0x190] sm:$0xff]  ;;  %v4085_v44 = vsel %vm594_vm13, 1.0, %v5220_v18  ;;  %vm339_vm13 = vcmp.ge.s32.totalorder %v77_v47, %v5263_v5 }
  0x42   :  { %4728 = vmatprep.mubr.msk.f32.mxu0 %vm930_vm1, %v4066_v45  ;;  %v4086_v45 = vsel %vm595_vm14, 1.0, %v5220_v18  ;;  %vm472_vm14 = vcmp.lt.s32.totalorder %v77_v47, %v5268_v6  ;;  %v97_v47 = vadd.s32 600, %v5273_v8 }
  0x43   :  { %vm600_vm3 = vmand %vm339_vm13, %vm472_vm14  ;;  %vm344_vm13 = vcmp.ge.s32.totalorder %v82_v61, %v5263_v5  ;;  %vm477_vm14 = vcmp.lt.s32.totalorder %v82_v61, %v5268_v6  ;;  %v102_v61 = vadd.s32 640, %v5273_v8 }
  0x44   :  { %4929 = vmatmul.mubr.msk.f32.gmra.mrb[28].mxu1 %vm2152_vm0, %v2051_v46  ;;  %v2071_v46 = vld [vmem:[%s7119_s0 + $0x198] sm:$0xff]  ;;  %vm605_vm2 = vmand %vm344_vm13, %vm477_vm14 }
  0x45   :  { %4931 = vmatprep.mubr.msk.f32.mxu1 %vm2152_vm0, %v2052_v48  ;;  %4729 = vmatmul.mubr.msk.f32.gmra.mrb[30].mxu0 %vm930_vm1, %v4067_v50  ;;  %v2072_v48 = vld [vmem:[%s7119_s0 + $0x1a0] sm:$0xff]  ;;  %v4087_v50 = vsel %vm596_vm5, 1.0, %v5220_v18  ;;  %vm341_vm5 = vcmp.ge.s32.totalorder %v79_v53, %v5263_v5 }
  0x46   :  { %4731 = vmatprep.mubr.msk.f32.mxu0 %vm930_vm1, %v4068_v51  ;;  %v4088_v51 = vsel %vm597_vm6, 1.0, %v5220_v18  ;;  %vm474_vm6 = vcmp.lt.s32.totalorder %v79_v53, %v5268_v6  ;;  %v99_v53 = vadd.s32 616, %v5273_v8 }
  0x47   :  { %vm602_vm9 = vmand %vm341_vm5, %vm474_vm6  ;;  %vm346_vm5 = vcmp.ge.s32.totalorder %v84_v3, %v5263_v5  ;;  %vm479_vm6 = vcmp.lt.s32.totalorder %v84_v3, %v5268_v6  ;;  %v104_v3 = vadd.s32 656, %v5273_v8 }
  0x48   :  { %4932 = vmatmul.mubr.msk.f32.gmra.mrb[30].mxu1 %vm2152_vm0, %v2053_v52  ;;  %v2073_v52 = vld [vmem:[%s7119_s0 + $0x1a8] sm:$0xff]  ;;  %vm607_vm8 = vmand %vm346_vm5, %vm479_vm6 }
  0x49   :  { %4934 = vmatprep.mubr.msk.f32.mxu1 %vm2152_vm0, %v2054_v54  ;;  %4732 = vmatmul.mubr.msk.f32.gmra.mrb[32].mxu0 %vm930_vm1, %v4069_v56  ;;  %v2074_v54 = vld [vmem:[%s7119_s0 + $0x1b0] sm:$0xff]  ;;  %v4089_v56 = vsel %vm598_vm11, 1.0, %v5220_v18  ;;  %vm343_vm11 = vcmp.ge.s32.totalorder %v81_v59, %v5263_v5 }
  0x4a   :  { %4734 = vmatprep.mubr.msk.f32.mxu0 %vm930_vm1, %v4070_v57  ;;  %v4090_v57 = vsel %vm599_vm12, 1.0, %v5220_v18  ;;  %vm476_vm12 = vcmp.lt.s32.totalorder %v81_v59, %v5268_v6  ;;  %v101_v59 = vadd.s32 632, %v5273_v8 }
  0x4b   :  { %vm604_vm15 = vmand %vm343_vm11, %vm476_vm12  ;;  %vm348_vm11 = vcmp.ge.s32.totalorder %v86_v12, %v5845_v19 }
  0x4c   :  { %4935 = vmatmul.mubr.msk.f32.gmra.mrb[32].mxu1 %vm2152_vm0, %v2055_v58  ;;  %v2075_v58 = vld [vmem:[%s7119_s0 + $0x1b8] sm:$0xff] }
  0x4d   :  { %4937 = vmatprep.mubr.msk.f32.mxu1 %vm2152_vm0, %v2056_v60  ;;  %4735 = vmatmul.mubr.msk.f32.gmra.mrb[34].mxu0 %vm930_vm1, %v4071_v62  ;;  %v2076_v60 = vld [vmem:[%s7119_s0 + $0x1c0] sm:$0xff]  ;;  %v4091_v62 = vsel %vm600_vm3, 1.0, %v5220_v18  ;;  %vm345_vm3 = vcmp.ge.s32.totalorder %v83_v1, %v5263_v5 }
  0x4e   :  { %4737 = vmatprep.mubr.msk.f32.mxu0 %vm930_vm1, %v4072_v63  ;;  %v4092_v63 = vsel %vm601_vm4, 1.0, %v5220_v18  ;;  %vm478_vm4 = vcmp.lt.s32.totalorder %v83_v1, %v5268_v6  ;;  %v103_v1 = vadd.s32 648, %v5273_v8 }
  0x4f   :  { %vm606_vm7 = vmand %vm345_vm3, %vm478_vm4 }
  0x50   :  { %4938 = vmatmul.mubr.msk.f32.gmra.mrb[34].mxu1 %vm2152_vm0, %v2057_v0  ;;  %v2077_v0 = vld [vmem:[%s7119_s0 + $0x1c8] sm:$0xff] }
  0x51   :  { %4940 = vmatprep.mubr.msk.f32.mxu1 %vm2152_vm0, %v2058_v2  ;;  %4738 = vmatmul.mubr.msk.f32.gmra.mrb[36].mxu0 %vm930_vm1, %v4073_v4  ;;  %v2078_v2 = vld [vmem:[%s7119_s0 + $0x1d0] sm:$0xff]  ;;  %v4093_v4 = vsel %vm602_vm9, 1.0, %v5220_v18  ;;  %vm347_vm9 = vcmp.ge.s32.totalorder %v85_v10, %v5263_v5  ;;  %v5851_v5 = vld [vmem:[%s7121_s2] ss:$0 sm:$0xff] }
  0x52   :  { %4740 = vmatprep.mubr.msk.f32.mxu0 %vm930_vm1, %v4074_v7  ;;  %v4094_v7 = vsel %vm603_vm10, 1.0, %v5220_v18  ;;  %vm480_vm10 = vcmp.lt.s32.totalorder %v85_v10, %v5268_v6  ;;  %vm481_vm12 = vcmp.lt.s32.totalorder %v86_v12, %v5851_v5  ;;  %v88_v6 = vadd.s32 528, %v5273_v8 }
  0x53   :  { %vm608_vm13 = vmand %vm347_vm9, %vm480_vm10  ;;  %vm352_vm9 = vcmp.ge.s32.totalorder %v90_v25, %v5845_v19  ;;  %vm485_vm10 = vcmp.lt.s32.totalorder %v90_v25, %v5851_v5  ;;  %v105_v10 = vadd.s32 664, %v5273_v8  ;;  %v106_v12 = vadd.s32 672, %v5273_v8 }
  0x54   :  { %4941 = vmatmul.mubr.msk.f32.gmra.mrb[36].mxu1 %vm2152_vm0, %v2059_v9  ;;  %v2079_v9 = vld [vmem:[%s7119_s0 + $0x1d8] sm:$0xff]  ;;  %vm609_vm14 = vmand %vm348_vm11, %vm481_vm12  ;;  %vm350_vm3 = vcmp.ge.s32.totalorder %v88_v6, %v5845_v19  ;;  %vm483_vm4 = vcmp.lt.s32.totalorder %v88_v6, %v5851_v5  ;;  %v108_v6 = vadd.s32 688, %v5273_v8  ;;  %v110_v25 = vadd.s32 704, %v5273_v8 }
  0x55   :  { %4943 = vmatprep.mubr.msk.f32.mxu1 %vm2152_vm0, %v2060_v11  ;;  %4741 = vmatmul.mubr.msk.f32.gmra.mrb[38].mxu0 %vm930_vm1, %v4075_v13  ;;  %v2080_v11 = vld [vmem:[%s7119_s0 + $0x1e0] sm:$0xff]  ;;  %v4095_v13 = vsel %vm604_vm15, 1.0, %v5220_v18  ;;  %vm349_vm15 = vcmp.ge.s32.totalorder %v87_v16, %v5845_v19  ;;  %vm611_vm6 = vmand %vm350_vm3, %vm483_vm4 }
  0x56   :  { %4743 = vmatprep.mubr.msk.f32.mxu0 %vm930_vm1, %v4076_v14  ;;  %v4096_v14 = vsel %vm605_vm2, 1.0, %v5220_v18  ;;  %vm482_vm2 = vcmp.lt.s32.totalorder %v87_v16, %v5851_v5  ;;  %vm613_vm12 = vmand %vm352_vm9, %vm485_vm10  ;;  %v107_v16 = vadd.s32 680, %v5273_v8 }
  0x57   :  { %vm610_vm5 = vmand %vm349_vm15, %vm482_vm2  ;;  %vm354_vm15 = vcmp.ge.s32.totalorder %v92_v31, %v5845_v19  ;;  %vm487_vm2 = vcmp.lt.s32.totalorder %v92_v31, %v5851_v5  ;;  %v112_v31 = vadd.s32 720, %v5273_v8 }
  0x58   :  { %4944 = vmatmul.mubr.msk.f32.gmra.mrb[38].mxu1 %vm2152_vm0, %v2061_v15  ;;  %v2081_v15 = vld [vmem:[%s7119_s0 + $0x1e8] sm:$0xff]  ;;  %vm615_vm4 = vmand %vm354_vm15, %vm487_vm2 }
  0x59   :  { %4946 = vmatprep.mubr.msk.f32.mxu1 %vm2152_vm0, %v2062_v17  ;;  %4744 = vmatmul.mubr.msk.f32.gmra.mrb[40].mxu0 %vm930_vm1, %v4077_v20  ;;  %v2082_v17 = vld [vmem:[%s7119_s0 + $0x1f0] sm:$0xff]  ;;  %v4097_v20 = vsel %vm606_vm7, 1.0, %v5220_v18  ;;  %vm351_vm7 = vcmp.ge.s32.totalorder %v89_v23, %v5845_v19 }
  0x5a   :  { %4746 = vmatprep.mubr.msk.f32.mxu0 %vm930_vm1, %v4078_v21  ;;  %v4098_v21 = vsel %vm607_vm8, 1.0, %v5220_v18  ;;  %vm484_vm8 = vcmp.lt.s32.totalorder %v89_v23, %v5851_v5  ;;  %v109_v23 = vadd.s32 696, %v5273_v8 }
  0x5b   :  { %vm612_vm11 = vmand %vm351_vm7, %vm484_vm8  ;;  %vm356_vm7 = vcmp.ge.s32.totalorder %v94_v37, %v5845_v19  ;;  %vm489_vm8 = vcmp.lt.s32.totalorder %v94_v37, %v5851_v5  ;;  %v114_v37 = vadd.s32 736, %v5273_v8 }
  0x5c   :  { %4947 = vmatmul.mubr.msk.f32.gmra.mrb[40].mxu1 %vm2152_vm0, %v2063_v22  ;;  %v2083_v22 = vld [vmem:[%s7119_s0 + $0x1f8] sm:$0xff]  ;;  %vm617_vm10 = vmand %vm356_vm7, %vm489_vm8 }
  0x5d   :  { %4949 = vmatprep.mubr.msk.f32.mxu1 %vm2152_vm0, %v2064_v24  ;;  %4747 = vmatmul.mubr.msk.f32.gmra.mrb[42].mxu0 %vm930_vm1, %v4079_v26  ;;  %v2084_v24 = vld [vmem:[%s7119_s0 + $0x200] sm:$0xff]  ;;  %v4099_v26 = vsel %vm608_vm13, 1.0, %v5220_v18  ;;  %vm353_vm13 = vcmp.ge.s32.totalorder %v91_v29, %v5845_v19 }
  0x5e   :  { %4749 = vmatprep.mubr.msk.f32.mxu0 %vm930_vm1, %v4080_v27  ;;  %v4100_v27 = vsel %vm609_vm14, 1.0, %v5220_v18  ;;  %vm486_vm14 = vcmp.lt.s32.totalorder %v91_v29, %v5851_v5  ;;  %v111_v29 = vadd.s32 712, %v5273_v8 }
  0x5f   :  { %vm614_vm3 = vmand %vm353_vm13, %vm486_vm14  ;;  %vm358_vm13 = vcmp.ge.s32.totalorder %v96_v43, %v5845_v19  ;;  %vm491_vm14 = vcmp.lt.s32.totalorder %v96_v43, %v5851_v5  ;;  %v116_v43 = vadd.s32 752, %v5273_v8 }
  0x60   :  { %4950 = vmatmul.mubr.msk.f32.gmra.mrb[42].mxu1 %vm2152_vm0, %v2065_v28  ;;  %v2085_v28 = vld [vmem:[%s7119_s0 + $0x208] sm:$0xff]  ;;  %vm619_vm2 = vmand %vm358_vm13, %vm491_vm14 }
  0x61   :  { %4952 = vmatprep.mubr.msk.f32.mxu1 %vm2152_vm0, %v2066_v30  ;;  %4750 = vmatmul.mubr.msk.f32.gmra.mrb[44].mxu0 %vm930_vm1, %v4081_v32  ;;  %v2086_v30 = vld [vmem:[%s7119_s0 + $0x210] sm:$0xff]  ;;  %v4101_v32 = vsel %vm610_vm5, 1.0, %v5220_v18  ;;  %vm355_vm5 = vcmp.ge.s32.totalorder %v93_v35, %v5845_v19 }
  0x62   :  { %4752 = vmatprep.mubr.msk.f32.mxu0 %vm930_vm1, %v4082_v33  ;;  %v4102_v33 = vsel %vm611_vm6, 1.0, %v5220_v18  ;;  %vm488_vm6 = vcmp.lt.s32.totalorder %v93_v35, %v5851_v5  ;;  %v113_v35 = vadd.s32 728, %v5273_v8 }
  0x63   :  { %vm616_vm9 = vmand %vm355_vm5, %vm488_vm6  ;;  %vm360_vm5 = vcmp.ge.s32.totalorder %v98_v49, %v5845_v19  ;;  %vm493_vm6 = vcmp.lt.s32.totalorder %v98_v49, %v5851_v5  ;;  %v118_v49 = vadd.s32 768, %v5273_v8 }
  0x64   :  { %4953 = vmatmul.mubr.msk.f32.gmra.mrb[44].mxu1 %vm2152_vm0, %v2067_v34  ;;  %v2087_v34 = vld [vmem:[%s7119_s0 + $0x218] sm:$0xff]  ;;  %vm621_vm8 = vmand %vm360_vm5, %vm493_vm6 }
  0x65   :  { %4955 = vmatprep.mubr.msk.f32.mxu1 %vm2152_vm0, %v2068_v36  ;;  %4753 = vmatmul.mubr.msk.f32.gmra.mrb[46].mxu0 %vm930_vm1, %v4083_v38  ;;  %v2088_v36 = vld [vmem:[%s7119_s0 + $0x220] sm:$0xff]  ;;  %v4103_v38 = vsel %vm612_vm11, 1.0, %v5220_v18  ;;  %vm357_vm11 = vcmp.ge.s32.totalorder %v95_v41, %v5845_v19 }
  0x66   :  { %4755 = vmatprep.mubr.msk.f32.mxu0 %vm930_vm1, %v4084_v39  ;;  %v4104_v39 = vsel %vm613_vm12, 1.0, %v5220_v18  ;;  %vm490_vm12 = vcmp.lt.s32.totalorder %v95_v41, %v5851_v5  ;;  %v115_v41 = vadd.s32 744, %v5273_v8 }
  0x67   :  { %vm618_vm15 = vmand %vm357_vm11, %vm490_vm12  ;;  %vm362_vm11 = vcmp.ge.s32.totalorder %v100_v55, %v5845_v19  ;;  %vm495_vm12 = vcmp.lt.s32.totalorder %v100_v55, %v5851_v5  ;;  %v120_v55 = vadd.s32 784, %v5273_v8 }
  0x68   :  { %4956 = vmatmul.mubr.msk.f32.gmra.mrb[46].mxu1 %vm2152_vm0, %v2069_v40  ;;  %v2089_v40 = vld [vmem:[%s7119_s0 + $0x228] sm:$0xff]  ;;  %vm623_vm14 = vmand %vm362_vm11, %vm495_vm12 }
  0x69   :  { %4958 = vmatprep.mubr.msk.f32.mxu1 %vm2152_vm0, %v2070_v42  ;;  %4756 = vmatmul.mubr.msk.f32.gmra.mrb[48].mxu0 %vm930_vm1, %v4085_v44  ;;  %v2090_v42 = vld [vmem:[%s7119_s0 + $0x230] sm:$0xff]  ;;  %v4105_v44 = vsel %vm614_vm3, 1.0, %v5220_v18  ;;  %vm359_vm3 = vcmp.ge.s32.totalorder %v97_v47, %v5845_v19 }
  0x6a   :  { %4758 = vmatprep.mubr.msk.f32.mxu0 %vm930_vm1, %v4086_v45  ;;  %v4106_v45 = vsel %vm615_vm4, 1.0, %v5220_v18  ;;  %vm492_vm4 = vcmp.lt.s32.totalorder %v97_v47, %v5851_v5  ;;  %v117_v47 = vadd.s32 760, %v5273_v8 }
  0x6b   :  { %vm620_vm7 = vmand %vm359_vm3, %vm492_vm4  ;;  %vm364_vm3 = vcmp.ge.s32.totalorder %v102_v61, %v5845_v19  ;;  %vm497_vm4 = vcmp.lt.s32.totalorder %v102_v61, %v5851_v5  ;;  %v122_v61 = vadd.s32 800, %v5273_v8 }
  0x6c   :  { %4959 = vmatmul.mubr.msk.f32.gmra.mrb[48].mxu1 %vm2152_vm0, %v2071_v46  ;;  %v2091_v46 = vld [vmem:[%s7119_s0 + $0x238] sm:$0xff]  ;;  %vm625_vm6 = vmand %vm364_vm3, %vm497_vm4 }
  0x6d   :  { %4961 = vmatprep.mubr.msk.f32.mxu1 %vm2152_vm0, %v2072_v48  ;;  %4759 = vmatmul.mubr.msk.f32.gmra.mrb[50].mxu0 %vm930_vm1, %v4087_v50  ;;  %v2092_v48 = vld [vmem:[%s7119_s0 + $0x240] sm:$0xff]  ;;  %v4107_v50 = vsel %vm616_vm9, 1.0, %v5220_v18  ;;  %vm361_vm9 = vcmp.ge.s32.totalorder %v99_v53, %v5845_v19 }
  0x6e   :  { %4761 = vmatprep.mubr.msk.f32.mxu0 %vm930_vm1, %v4088_v51  ;;  %v4108_v51 = vsel %vm617_vm10, 1.0, %v5220_v18  ;;  %vm494_vm10 = vcmp.lt.s32.totalorder %v99_v53, %v5851_v5  ;;  %v119_v53 = vadd.s32 776, %v5273_v8 }
  0x6f   :  { %vm622_vm13 = vmand %vm361_vm9, %vm494_vm10  ;;  %vm366_vm9 = vcmp.ge.s32.totalorder %v104_v3, %v5845_v19  ;;  %vm499_vm10 = vcmp.lt.s32.totalorder %v104_v3, %v5851_v5  ;;  %v124_v3 = vadd.s32 816, %v5273_v8 }
  0x70   :  { %4962 = vmatmul.mubr.msk.f32.gmra.mrb[50].mxu1 %vm2152_vm0, %v2073_v52  ;;  %v2093_v52 = vld [vmem:[%s7119_s0 + $0x248] sm:$0xff]  ;;  %vm627_vm12 = vmand %vm366_vm9, %vm499_vm10 }
  0x71   :  { %4964 = vmatprep.mubr.msk.f32.mxu1 %vm2152_vm0, %v2074_v54  ;;  %4762 = vmatmul.mubr.msk.f32.gmra.mrb[52].mxu0 %vm930_vm1, %v4089_v56  ;;  %v2094_v54 = vld [vmem:[%s7119_s0 + $0x250] sm:$0xff]  ;;  %v4109_v56 = vsel %vm618_vm15, 1.0, %v5220_v18  ;;  %vm363_vm15 = vcmp.ge.s32.totalorder %v101_v59, %v5845_v19 }
  0x72   :  { %4764 = vmatprep.mubr.msk.f32.mxu0 %vm930_vm1, %v4090_v57  ;;  %v4110_v57 = vsel %vm619_vm2, 1.0, %v5220_v18  ;;  %vm496_vm2 = vcmp.lt.s32.totalorder %v101_v59, %v5851_v5  ;;  %v121_v59 = vadd.s32 792, %v5273_v8 }
  0x73   :  { %vm624_vm5 = vmand %vm363_vm15, %vm496_vm2  ;;  %vm368_vm15 = vcmp.ge.s32.totalorder %v106_v12, %v5845_v19  ;;  %vm501_vm2 = vcmp.lt.s32.totalorder %v106_v12, %v5851_v5  ;;  %v126_v12 = vadd.s32 832, %v5273_v8 }
  0x74   :  { %4965 = vmatmul.mubr.msk.f32.gmra.mrb[52].mxu1 %vm2152_vm0, %v2075_v58  ;;  %v2095_v58 = vld [vmem:[%s7119_s0 + $0x258] sm:$0xff]  ;;  %vm629_vm4 = vmand %vm368_vm15, %vm501_vm2 }
  0x75   :  { %4967 = vmatprep.mubr.msk.f32.mxu1 %vm2152_vm0, %v2076_v60  ;;  %4765 = vmatmul.mubr.msk.f32.gmra.mrb[54].mxu0 %vm930_vm1, %v4091_v62  ;;  %v2096_v60 = vld [vmem:[%s7119_s0 + $0x260] sm:$0xff]  ;;  %v4111_v62 = vsel %vm620_vm7, 1.0, %v5220_v18  ;;  %vm365_vm7 = vcmp.ge.s32.totalorder %v103_v1, %v5845_v19 }
  0x76   :  { %4767 = vmatprep.mubr.msk.f32.mxu0 %vm930_vm1, %v4092_v63  ;;  %v4112_v63 = vsel %vm621_vm8, 1.0, %v5220_v18  ;;  %vm498_vm8 = vcmp.lt.s32.totalorder %v103_v1, %v5851_v5  ;;  %v123_v1 = vadd.s32 808, %v5273_v8 }
  0x77   :  { %vm626_vm11 = vmand %vm365_vm7, %vm498_vm8  ;;  %vm370_vm7 = vcmp.ge.s32.totalorder %v108_v6, %v5845_v19  ;;  %vm503_vm8 = vcmp.lt.s32.totalorder %v108_v6, %v5851_v5  ;;  %v128_v6 = vadd.s32 848, %v5273_v8 }
  0x78   :  { %4968 = vmatmul.mubr.msk.f32.gmra.mrb[54].mxu1 %vm2152_vm0, %v2077_v0  ;;  %v2097_v0 = vld [vmem:[%s7119_s0 + $0x268] sm:$0xff]  ;;  %vm631_vm10 = vmand %vm370_vm7, %vm503_vm8 }
  0x79   :  { %4970 = vmatprep.mubr.msk.f32.mxu1 %vm2152_vm0, %v2078_v2  ;;  %4768 = vmatmul.mubr.msk.f32.gmra.mrb[56].mxu0 %vm930_vm1, %v4093_v4  ;;  %v2098_v2 = vld [vmem:[%s7119_s0 + $0x270] sm:$0xff]  ;;  %v4113_v4 = vsel %vm622_vm13, 1.0, %v5220_v18  ;;  %vm367_vm13 = vcmp.ge.s32.totalorder %v105_v10, %v5845_v19 }
  0x7a   :  { %4770 = vmatprep.mubr.msk.f32.mxu0 %vm930_vm1, %v4094_v7  ;;  %v4114_v7 = vsel %vm623_vm14, 1.0, %v5220_v18  ;;  %vm500_vm14 = vcmp.lt.s32.totalorder %v105_v10, %v5851_v5  ;;  %v125_v10 = vadd.s32 824, %v5273_v8 }
  0x7b   :  { %vm628_vm3 = vmand %vm367_vm13, %vm500_vm14  ;;  %vm372_vm13 = vcmp.ge.s32.totalorder %v110_v25, %v5845_v19  ;;  %vm505_vm14 = vcmp.lt.s32.totalorder %v110_v25, %v5851_v5  ;;  %v130_v25 = vadd.s32 864, %v5273_v8 }
  0x7c   :  { %4971 = vmatmul.mubr.msk.f32.gmra.mrb[56].mxu1 %vm2152_vm0, %v2079_v9  ;;  %v2099_v9 = vld [vmem:[%s7119_s0 + $0x278] sm:$0xff]  ;;  %vm633_vm2 = vmand %vm372_vm13, %vm505_vm14 }
  0x7d   :  { %4973 = vmatprep.mubr.msk.f32.mxu1 %vm2152_vm0, %v2080_v11  ;;  %4771 = vmatmul.mubr.msk.f32.gmra.mrb[58].mxu0 %vm930_vm1, %v4095_v13  ;;  %v2100_v11 = vld [vmem:[%s7119_s0 + $0x280] sm:$0xff]  ;;  %v4115_v13 = vsel %vm624_vm5, 1.0, %v5220_v18  ;;  %vm369_vm5 = vcmp.ge.s32.totalorder %v107_v16, %v5845_v19 }
  0x7e   :  { %4773 = vmatprep.mubr.msk.f32.mxu0 %vm930_vm1, %v4096_v14  ;;  %v4116_v14 = vsel %vm625_vm6, 1.0, %v5220_v18  ;;  %vm502_vm6 = vcmp.lt.s32.totalorder %v107_v16, %v5851_v5  ;;  %v127_v16 = vadd.s32 840, %v5273_v8 }
  0x7f   :  { %vm630_vm9 = vmand %vm369_vm5, %vm502_vm6  ;;  %vm374_vm5 = vcmp.ge.s32.totalorder %v112_v31, %v5845_v19  ;;  %vm507_vm6 = vcmp.lt.s32.totalorder %v112_v31, %v5851_v5  ;;  %v132_v31 = vadd.s32 880, %v5273_v8 }
  0x80   :  { %4974 = vmatmul.mubr.msk.f32.gmra.mrb[58].mxu1 %vm2152_vm0, %v2081_v15  ;;  %v2101_v15 = vld [vmem:[%s7119_s0 + $0x288] sm:$0xff]  ;;  %vm635_vm8 = vmand %vm374_vm5, %vm507_vm6 }
  0x81   :  { %4976 = vmatprep.mubr.msk.f32.mxu1 %vm2152_vm0, %v2082_v17  ;;  %4774 = vmatmul.mubr.msk.f32.gmra.mrb[60].mxu0 %vm930_vm1, %v4097_v20  ;;  %v2102_v17 = vld [vmem:[%s7119_s0 + $0x290] sm:$0xff]  ;;  %v4117_v20 = vsel %vm626_vm11, 1.0, %v5220_v18  ;;  %vm371_vm11 = vcmp.ge.s32.totalorder %v109_v23, %v5845_v19 }
  0x82   :  { %4776 = vmatprep.mubr.msk.f32.mxu0 %vm930_vm1, %v4098_v21  ;;  %v4118_v21 = vsel %vm627_vm12, 1.0, %v5220_v18  ;;  %vm504_vm12 = vcmp.lt.s32.totalorder %v109_v23, %v5851_v5  ;;  %v129_v23 = vadd.s32 856, %v5273_v8 }
  0x83   :  { %vm632_vm15 = vmand %vm371_vm11, %vm504_vm12  ;;  %vm376_vm11 = vcmp.ge.s32.totalorder %v114_v37, %v5845_v19  ;;  %vm509_vm12 = vcmp.lt.s32.totalorder %v114_v37, %v5851_v5  ;;  %v134_v37 = vadd.s32 896, %v5273_v8 }
  0x84   :  { %4977 = vmatmul.mubr.msk.f32.gmra.mrb[60].mxu1 %vm2152_vm0, %v2083_v22  ;;  %v2103_v22 = vld [vmem:[%s7119_s0 + $0x298] sm:$0xff]  ;;  %vm637_vm14 = vmand %vm376_vm11, %vm509_vm12 }
  0x85   :  { %4979 = vmatprep.mubr.msk.f32.mxu1 %vm2152_vm0, %v2084_v24  ;;  %4777 = vmatmul.mubr.msk.f32.gmra.mrb[62].mxu0 %vm930_vm1, %v4099_v26  ;;  %v2104_v24 = vld [vmem:[%s7119_s0 + $0x2a0] sm:$0xff]  ;;  %v4119_v26 = vsel %vm628_vm3, 1.0, %v5220_v18  ;;  %vm373_vm3 = vcmp.ge.s32.totalorder %v111_v29, %v5845_v19 }
  0x86   :  { %4779 = vmatprep.mubr.msk.f32.mxu0 %vm930_vm1, %v4100_v27  ;;  %v4120_v27 = vsel %vm629_vm4, 1.0, %v5220_v18  ;;  %vm506_vm4 = vcmp.lt.s32.totalorder %v111_v29, %v5851_v5  ;;  %v131_v29 = vadd.s32 872, %v5273_v8 }
  0x87   :  { %vm634_vm7 = vmand %vm373_vm3, %vm506_vm4  ;;  %vm378_vm3 = vcmp.ge.s32.totalorder %v116_v43, %v5845_v19  ;;  %vm511_vm4 = vcmp.lt.s32.totalorder %v116_v43, %v5851_v5  ;;  %v136_v43 = vadd.s32 912, %v5273_v8 }
  0x88   :  { %4980 = vmatmul.mubr.msk.f32.gmra.mrb[62].mxu1 %vm2152_vm0, %v2085_v28  ;;  %v2105_v28 = vld [vmem:[%s7119_s0 + $0x2a8] sm:$0xff]  ;;  %vm639_vm6 = vmand %vm378_vm3, %vm511_vm4 }
  0x89   :  { %4982 = vmatprep.mubr.msk.f32.mxu1 %vm2152_vm0, %v2086_v30  ;;  %4780 = vmatmul.mubr.msk.f32.gmra.mrb[64].mxu0 %vm930_vm1, %v4101_v32  ;;  %v2106_v30 = vld [vmem:[%s7119_s0 + $0x2b0] sm:$0xff]  ;;  %v4121_v32 = vsel %vm630_vm9, 1.0, %v5220_v18  ;;  %vm375_vm9 = vcmp.ge.s32.totalorder %v113_v35, %v5845_v19 }
  0x8a   :  { %4782 = vmatprep.mubr.msk.f32.mxu0 %vm930_vm1, %v4102_v33  ;;  %v4122_v33 = vsel %vm631_vm10, 1.0, %v5220_v18  ;;  %vm508_vm10 = vcmp.lt.s32.totalorder %v113_v35, %v5851_v5  ;;  %v133_v35 = vadd.s32 888, %v5273_v8 }
  0x8b   :  { %vm636_vm13 = vmand %vm375_vm9, %vm508_vm10  ;;  %vm380_vm9 = vcmp.ge.s32.totalorder %v118_v49, %v5845_v19  ;;  %vm513_vm10 = vcmp.lt.s32.totalorder %v118_v49, %v5851_v5 }
  0x8c   :  { %4983 = vmatmul.mubr.msk.f32.gmra.mrb[64].mxu1 %vm2152_vm0, %v2087_v34  ;;  %v2107_v34 = vld [vmem:[%s7119_s0 + $0x2b8] sm:$0xff]  ;;  %vm641_vm12 = vmand %vm380_vm9, %vm513_vm10 }
  0x8d   :  { %4985 = vmatprep.mubr.msk.f32.mxu1 %vm2152_vm0, %v2088_v36  ;;  %4783 = vmatmul.mubr.msk.f32.gmra.mrb[66].mxu0 %vm930_vm1, %v4103_v38  ;;  %v2108_v36 = vld [vmem:[%s7119_s0 + $0x2c0] sm:$0xff]  ;;  %v4123_v38 = vsel %vm632_vm15, 1.0, %v5220_v18  ;;  %vm377_vm15 = vcmp.ge.s32.totalorder %v115_v41, %v5845_v19 }
  0x8e   :  { %4785 = vmatprep.mubr.msk.f32.mxu0 %vm930_vm1, %v4104_v39  ;;  %v4124_v39 = vsel %vm633_vm2, 1.0, %v5220_v18  ;;  %vm510_vm2 = vcmp.lt.s32.totalorder %v115_v41, %v5851_v5  ;;  %v135_v41 = vadd.s32 904, %v5273_v8 }
  0x8f   :  { %vm638_vm5 = vmand %vm377_vm15, %vm510_vm2  ;;  %vm382_vm15 = vcmp.ge.s32.totalorder %v120_v55, %v5845_v19  ;;  %vm515_vm2 = vcmp.lt.s32.totalorder %v120_v55, %v5851_v5  ;;  %v2132_v55 = vld [vmem:[%s7119_s0 + $0x380] sm:$0xff] }
  0x90   :  { %4986 = vmatmul.mubr.msk.f32.gmra.mrb[66].mxu1 %vm2152_vm0, %v2089_v40  ;;  %v2109_v40 = vld [vmem:[%s7119_s0 + $0x2c8] sm:$0xff]  ;;  %vm643_vm4 = vmand %vm382_vm15, %vm515_vm2 }
  0x91   :  { %4988 = vmatprep.mubr.msk.f32.mxu1 %vm2152_vm0, %v2090_v42  ;;  %4786 = vmatmul.mubr.msk.f32.gmra.mrb[68].mxu0 %vm930_vm1, %v4105_v44  ;;  %v2110_v42 = vld [vmem:[%s7119_s0 + $0x2d0] sm:$0xff]  ;;  %v4125_v44 = vsel %vm634_vm7, 1.0, %v5220_v18  ;;  %vm379_vm7 = vcmp.ge.s32.totalorder %v117_v47, %v5845_v19 }
  0x92   :  { %4788 = vmatprep.mubr.msk.f32.mxu0 %vm930_vm1, %v4106_v45  ;;  %v4126_v45 = vsel %vm635_vm8, 1.0, %v5220_v18  ;;  %vm512_vm8 = vcmp.lt.s32.totalorder %v117_v47, %v5851_v5 }
  0x93   :  { %vm640_vm11 = vmand %vm379_vm7, %vm512_vm8  ;;  %vm384_vm7 = vcmp.ge.s32.totalorder %v122_v61, %v5845_v19  ;;  %vm517_vm8 = vcmp.lt.s32.totalorder %v122_v61, %v5851_v5 }
  0x94   :  { %4989 = vmatmul.mubr.msk.f32.gmra.mrb[68].mxu1 %vm2152_vm0, %v2091_v46  ;;  %v2111_v46 = vld [vmem:[%s7119_s0 + $0x2d8] sm:$0xff]  ;;  %vm645_vm10 = vmand %vm384_vm7, %vm517_vm8 }
  0x95   :  { %4991 = vmatprep.mubr.msk.f32.mxu1 %vm2152_vm0, %v2092_v48  ;;  %4789 = vmatmul.mubr.msk.f32.gmra.mrb[70].mxu0 %vm930_vm1, %v4107_v50  ;;  %v2112_v48 = vld [vmem:[%s7119_s0 + $0x2e0] sm:$0xff]  ;;  %v4127_v50 = vsel %vm636_vm13, 1.0, %v5220_v18  ;;  %vm381_vm13 = vcmp.ge.s32.totalorder %v119_v53, %v5845_v19 }
  0x96   :  { %4791 = vmatprep.mubr.msk.f32.mxu0 %vm930_vm1, %v4108_v51  ;;  %v4128_v51 = vsel %vm637_vm14, 1.0, %v5220_v18  ;;  %vm514_vm14 = vcmp.lt.s32.totalorder %v119_v53, %v5851_v5 }
  0x97   :  { %vm642_vm3 = vmand %vm381_vm13, %vm514_vm14  ;;  %vm386_vm13 = vcmp.ge.s32.totalorder %v124_v3, %v5845_v19  ;;  %vm519_vm14 = vcmp.lt.s32.totalorder %v124_v3, %v5851_v5 }
  0x98   :  { %4992 = vmatmul.mubr.msk.f32.gmra.mrb[70].mxu1 %vm2152_vm0, %v2093_v52  ;;  %v2113_v52 = vld [vmem:[%s7119_s0 + $0x2e8] sm:$0xff]  ;;  %vm647_vm2 = vmand %vm386_vm13, %vm519_vm14 }
  0x99   :  { %4994 = vmatprep.mubr.msk.f32.mxu1 %vm2152_vm0, %v2094_v54  ;;  %4792 = vmatmul.mubr.msk.f32.gmra.mrb[72].mxu0 %vm930_vm1, %v4109_v56  ;;  %v2114_v54 = vld [vmem:[%s7119_s0 + $0x2f0] sm:$0xff]  ;;  %v4129_v56 = vsel %vm638_vm5, 1.0, %v5220_v18  ;;  %vm383_vm5 = vcmp.ge.s32.totalorder %v121_v59, %v5845_v19 }
  0x9a   :  { %4794 = vmatprep.mubr.msk.f32.mxu0 %vm930_vm1, %v4110_v57  ;;  %v4130_v57 = vsel %vm639_vm6, 1.0, %v5220_v18  ;;  %vm516_vm6 = vcmp.lt.s32.totalorder %v121_v59, %v5851_v5 }
  0x9b   :  { %vm644_vm9 = vmand %vm383_vm5, %vm516_vm6  ;;  %vm388_vm5 = vcmp.ge.s32.totalorder %v126_v12, %v5845_v19  ;;  %vm521_vm6 = vcmp.lt.s32.totalorder %v126_v12, %v5851_v5 }
  0x9c   :  { %4995 = vmatmul.mubr.msk.f32.gmra.mrb[72].mxu1 %vm2152_vm0, %v2095_v58  ;;  %v2115_v58 = vld [vmem:[%s7119_s0 + $0x2f8] sm:$0xff]  ;;  %vm649_vm8 = vmand %vm388_vm5, %vm521_vm6 }
  0x9d   :  { %4997 = vmatprep.mubr.msk.f32.mxu1 %vm2152_vm0, %v2096_v60  ;;  %4795 = vmatmul.mubr.msk.f32.gmra.mrb[74].mxu0 %vm930_vm1, %v4111_v62  ;;  %v2116_v60 = vld [vmem:[%s7119_s0 + $0x300] sm:$0xff]  ;;  %v4131_v62 = vsel %vm640_vm11, 1.0, %v5220_v18  ;;  %vm385_vm11 = vcmp.ge.s32.totalorder %v123_v1, %v5845_v19 }
  0x9e   :  { %4797 = vmatprep.mubr.msk.f32.mxu0 %vm930_vm1, %v4112_v63  ;;  %v4132_v63 = vsel %vm641_vm12, 1.0, %v5220_v18  ;;  %vm518_vm12 = vcmp.lt.s32.totalorder %v123_v1, %v5851_v5 }
  0x9f   :  { %vm646_vm15 = vmand %vm385_vm11, %vm518_vm12  ;;  %vm390_vm11 = vcmp.ge.s32.totalorder %v128_v6, %v5845_v19  ;;  %vm523_vm12 = vcmp.lt.s32.totalorder %v128_v6, %v5851_v5 }
  0xa0   :  { %4998 = vmatmul.mubr.msk.f32.gmra.mrb[74].mxu1 %vm2152_vm0, %v2097_v0  ;;  %v2117_v0 = vld [vmem:[%s7119_s0 + $0x308] sm:$0xff]  ;;  %vm651_vm14 = vmand %vm390_vm11, %vm523_vm12 }
  0xa1   :  { %5000 = vmatprep.mubr.msk.f32.mxu1 %vm2152_vm0, %v2098_v2  ;;  %4798 = vmatmul.mubr.msk.f32.gmra.mrb[76].mxu0 %vm930_vm1, %v4113_v4  ;;  %v2118_v2 = vld [vmem:[%s7119_s0 + $0x310] sm:$0xff]  ;;  %v4133_v4 = vsel %vm642_vm3, 1.0, %v5220_v18  ;;  %vm387_vm3 = vcmp.ge.s32.totalorder %v125_v10, %v5845_v19 }
  0xa2   :  { %4800 = vmatprep.mubr.msk.f32.mxu0 %vm930_vm1, %v4114_v7  ;;  %v4134_v7 = vsel %vm643_vm4, 1.0, %v5220_v18  ;;  %vm520_vm4 = vcmp.lt.s32.totalorder %v125_v10, %v5851_v5  ;;  %v2134_v10 = vld [vmem:[%s7119_s0 + $0x390] sm:$0xff] }
  0xa3   :  { %vm648_vm7 = vmand %vm387_vm3, %vm520_vm4  ;;  %vm392_vm3 = vcmp.ge.s32.totalorder %v130_v25, %v5845_v19  ;;  %vm525_vm4 = vcmp.lt.s32.totalorder %v130_v25, %v5851_v5 }
  0xa4   :  { %5001 = vmatmul.mubr.msk.f32.gmra.mrb[76].mxu1 %vm2152_vm0, %v2099_v9  ;;  %v2119_v9 = vld [vmem:[%s7119_s0 + $0x318] sm:$0xff]  ;;  %vm653_vm6 = vmand %vm392_vm3, %vm525_vm4 }
  0xa5   :  { %5003 = vmatprep.mubr.msk.f32.mxu1 %vm2152_vm0, %v2100_v11  ;;  %4801 = vmatmul.mubr.msk.f32.gmra.mrb[78].mxu0 %vm930_vm1, %v4115_v13  ;;  %v2120_v11 = vld [vmem:[%s7119_s0 + $0x320] sm:$0xff]  ;;  %v4135_v13 = vsel %vm644_vm9, 1.0, %v5220_v18  ;;  %vm389_vm9 = vcmp.ge.s32.totalorder %v127_v16, %v5845_v19 }
  0xa6   :  { %4803 = vmatprep.mubr.msk.f32.mxu0 %vm930_vm1, %v4116_v14  ;;  %v4136_v14 = vsel %vm645_vm10, 1.0, %v5220_v18  ;;  %vm522_vm10 = vcmp.lt.s32.totalorder %v127_v16, %v5851_v5 }
  0xa7   :  { %vm650_vm13 = vmand %vm389_vm9, %vm522_vm10  ;;  %vm394_vm9 = vcmp.ge.s32.totalorder %v132_v31, %v5845_v19  ;;  %vm527_vm10 = vcmp.lt.s32.totalorder %v132_v31, %v5851_v5 }
  0xa8   :  { %5004 = vmatmul.mubr.msk.f32.gmra.mrb[78].mxu1 %vm2152_vm0, %v2101_v15  ;;  %v2121_v15 = vld [vmem:[%s7119_s0 + $0x328] sm:$0xff]  ;;  %vm655_vm12 = vmand %vm394_vm9, %vm527_vm10 }
  0xa9   :  { %5006 = vmatprep.mubr.msk.f32.mxu1 %vm2152_vm0, %v2102_v17  ;;  %4804 = vmatmul.mubr.msk.f32.gmra.mrb[80].mxu0 %vm930_vm1, %v4117_v20  ;;  %v2122_v17 = vld [vmem:[%s7119_s0 + $0x330] sm:$0xff]  ;;  %v4137_v20 = vsel %vm646_vm15, 1.0, %v5220_v18  ;;  %vm391_vm15 = vcmp.ge.s32.totalorder %v129_v23, %v5845_v19  ;;  %v4146_v47 = vsel %vm655_vm12, 1.0, %v5220_v18 }
  0xaa   :  { %4806 = vmatprep.mubr.msk.f32.mxu0 %vm930_vm1, %v4118_v21  ;;  %v4138_v21 = vsel %vm647_vm2, 1.0, %v5220_v18  ;;  %vm524_vm2 = vcmp.lt.s32.totalorder %v129_v23, %v5851_v5 }
  0xab   :  { %vm652_vm5 = vmand %vm391_vm15, %vm524_vm2  ;;  %vm396_vm15 = vcmp.ge.s32.totalorder %v134_v37, %v5845_v19  ;;  %vm529_vm2 = vcmp.lt.s32.totalorder %v134_v37, %v5851_v5 }
  0xac   :  { %5007 = vmatmul.mubr.msk.f32.gmra.mrb[80].mxu1 %vm2152_vm0, %v2103_v22  ;;  %v2123_v22 = vld [vmem:[%s7119_s0 + $0x338] sm:$0xff]  ;;  %vm6299_vm4 = vmand %vm396_vm15, %vm529_vm2 }
  0xad   :  { %5009 = vmatprep.mubr.msk.f32.mxu1 %vm2152_vm0, %v2104_v24  ;;  %4807 = vmatmul.mubr.msk.f32.gmra.mrb[82].mxu0 %vm930_vm1, %v4119_v26  ;;  %v2124_v24 = vld [vmem:[%s7119_s0 + $0x340] sm:$0xff]  ;;  %v4139_v26 = vsel %vm648_vm7, 1.0, %v5220_v18  ;;  %vm393_vm7 = vcmp.ge.s32.totalorder %v131_v29, %v5845_v19 }
  0xae   :  { %4809 = vmatprep.mubr.msk.f32.mxu0 %vm930_vm1, %v4120_v27  ;;  %v4140_v27 = vsel %vm649_vm8, 1.0, %v5220_v18  ;;  %vm526_vm8 = vcmp.lt.s32.totalorder %v131_v29, %v5851_v5 }
  0xaf   :  { %vm654_vm11 = vmand %vm393_vm7, %vm526_vm8  ;;  %vm398_vm7 = vcmp.ge.s32.totalorder %v136_v43, %v5845_v19  ;;  %vm531_vm8 = vcmp.lt.s32.totalorder %v136_v43, %v5851_v5 }
  0xb0   :  { %5010 = vmatmul.mubr.msk.f32.gmra.mrb[82].mxu1 %vm2152_vm0, %v2105_v28  ;;  %v2125_v28 = vld [vmem:[%s7119_s0 + $0x348] sm:$0xff]  ;;  %vm6337_vm10 = vmand %vm398_vm7, %vm531_vm8 }
  0xb1   :  { %5012 = vmatprep.mubr.msk.f32.mxu1 %vm2152_vm0, %v2106_v30  ;;  %4810 = vmatmul.mubr.msk.f32.gmra.mrb[84].mxu0 %vm930_vm1, %v4121_v32  ;;  %v2126_v30 = vld [vmem:[%s7119_s0 + $0x350] sm:$0xff]  ;;  %v4141_v32 = vsel %vm650_vm13, 1.0, %v5220_v18  ;;  %vm395_vm13 = vcmp.ge.s32.totalorder %v133_v35, %v5845_v19 }
  0xb2   :  { %4812 = vmatprep.mubr.msk.f32.mxu0 %vm930_vm1, %v4122_v33  ;;  %v4142_v33 = vsel %vm651_vm14, 1.0, %v5220_v18  ;;  %vm528_vm14 = vcmp.lt.s32.totalorder %v133_v35, %v5851_v5  ;;  %v149_v35 = vadd.s32 1016, %v5273_v8 }
  0xb3   :  { %vm6291_vm3 = vmand %vm395_vm13, %vm528_vm14 }
  0xb4   :  { %5013 = vmatmul.mubr.msk.f32.gmra.mrb[84].mxu1 %vm2152_vm0, %v2107_v34  ;;  %v2127_v34 = vld [vmem:[%s7119_s0 + $0x358] sm:$0xff]  ;;  %v4147_v59 = vsel %vm6291_vm3, 1.0, %v5220_v18 }
  0xb5   :  { %5015 = vmatprep.mubr.msk.f32.mxu1 %vm2152_vm0, %v2108_v36  ;;  %4813 = vmatmul.mubr.msk.f32.gmra.mrb[86].mxu0 %vm930_vm1, %v4123_v38  ;;  %v2128_v36 = vld [vmem:[%s7119_s0 + $0x360] sm:$0xff]  ;;  %v4143_v38 = vsel %vm652_vm5, 1.0, %v5220_v18  ;;  %vm397_vm5 = vcmp.ge.s32.totalorder %v135_v41, %v5845_v19 }
  0xb6   :  { %4815 = vmatprep.mubr.msk.f32.mxu0 %vm930_vm1, %v4124_v39  ;;  %v4144_v39 = vsel %vm653_vm6, 1.0, %v5220_v18  ;;  %vm530_vm6 = vcmp.lt.s32.totalorder %v135_v41, %v5851_v5  ;;  %v143_v41 = vadd.s32 968, %v5273_v8 }
  0xb7   :  { %vm6325_vm9 = vmand %vm397_vm5, %vm530_vm6 }
  0xb8   :  { %5016 = vmatmul.mubr.msk.f32.gmra.mrb[86].mxu1 %vm2152_vm0, %v2109_v40  ;;  %v2129_v40 = vld [vmem:[%s7119_s0 + $0x368] sm:$0xff] }
  0xb9   :  { %5018 = vmatprep.mubr.msk.f32.mxu1 %vm2152_vm0, %v2110_v42  ;;  %4816 = vmatmul.mubr.msk.f32.gmra.mrb[88].mxu0 %vm930_vm1, %v4125_v44  ;;  %v2130_v42 = vld [vmem:[%s7119_s0 + $0x370] sm:$0xff] }
  0xba   :  { %4818 = vmatprep.mubr.msk.f32.mxu0 %vm930_vm1, %v4126_v45  ;;  %v4145_v45 = vsel %vm654_vm11, 1.0, %v5220_v18 }
  0xbc   :  { %5019 = vmatmul.mubr.msk.f32.gmra.mrb[88].mxu1 %vm2152_vm0, %v2111_v46 }
  0xbd   :  { %5021 = vmatprep.mubr.msk.f32.mxu1 %vm2152_vm0, %v2112_v48  ;;  %4819 = vmatmul.mubr.msk.f32.gmra.mrb[90].mxu0 %vm930_vm1, %v4127_v50  ;;  %v2131_v50 = vld [vmem:[%s7119_s0 + $0x378] sm:$0xff] }
  0xbe   :  { %4821 = vmatprep.mubr.msk.f32.mxu0 %vm930_vm1, %v4128_v51 }
  0xc0   :  { %5022 = vmatmul.mubr.msk.f32.gmra.mrb[90].mxu1 %vm2152_vm0, %v2113_v52  ;;  %v137_v52 = vadd.s32 920, %v5273_v8 }
  0xc1   :  { %5024 = vmatprep.mubr.msk.f32.mxu1 %vm2152_vm0, %v2114_v54  ;;  %4822 = vmatmul.mubr.msk.f32.gmra.mrb[92].mxu0 %vm930_vm1, %v4129_v56  ;;  %v138_v56 = vadd.s32 928, %v5273_v8 }
  0xc2   :  { %4824 = vmatprep.mubr.msk.f32.mxu0 %vm930_vm1, %v4130_v57  ;;  %vm399_vm11 = vcmp.ge.s32.totalorder %v137_v52, %v5845_v19  ;;  %vm532_vm12 = vcmp.lt.s32.totalorder %v137_v52, %v5851_v5 }
  0xc3   :  { %vm400_vm13 = vcmp.ge.s32.totalorder %v138_v56, %v5845_v19  ;;  %vm533_vm14 = vcmp.lt.s32.totalorder %v138_v56, %v5851_v5  ;;  %vm6365_vm15 = vmand %vm399_vm11, %vm532_vm12 }
  0xc4   :  { %5025 = vmatmul.mubr.msk.f32.gmra.mrb[92].mxu1 %vm2152_vm0, %v2115_v58  ;;  %vm6377_vm2 = vmand %vm400_vm13, %vm533_vm14  ;;  %v4151_v31 = vsel %vm6365_vm15, 1.0, %v5220_v18  ;;  %vm405_vm15 = vcmp.ge.s32.totalorder %v143_v41, %v5845_v19 }
  0xc5   :  { %5027 = vmatprep.mubr.msk.f32.mxu1 %vm2152_vm0, %v2116_v60  ;;  %4825 = vmatmul.mubr.msk.f32.gmra.mrb[94].mxu0 %vm930_vm1, %v4131_v62  ;;  %v4148_v62 = vsel %vm6299_vm4, 1.0, %v5220_v18 }
  0xc6   :  { %4827 = vmatprep.mubr.msk.f32.mxu0 %vm930_vm1, %v4132_v63  ;;  %v2140_v63 = vld [vmem:[%s7119_s0 + $0x3c0] sm:$0xff] }
  0xc8   :  { %5028 = vmatmul.mubr.msk.f32.gmra.mrb[94].mxu1 %vm2152_vm0, %v2117_v0 }
  0xc9   :  { %5030 = vmatprep.mubr.msk.f32.mxu1 %vm2152_vm0, %v2118_v2  ;;  %4828 = vmatmul.mubr.msk.f32.gmra.mrb[96].mxu0 %vm930_vm1, %v4133_v4  ;;  %v2133_v2 = vld [vmem:[%s7119_s0 + $0x388] sm:$0xff]  ;;  %v139_v4 = vadd.s32 936, %v5273_v8 }
  0xca   :  { %4830 = vmatprep.mubr.msk.f32.mxu0 %vm930_vm1, %v4134_v7 }
  0xcb   :  { %vm401_vm3 = vcmp.ge.s32.totalorder %v139_v4, %v5845_v19  ;;  %vm534_vm4 = vcmp.lt.s32.totalorder %v139_v4, %v5851_v5 }
  0xcc   :  { %5031 = vmatmul.mubr.msk.f32.gmra.mrb[96].mxu1 %vm2152_vm0, %v2119_v9  ;;  %vm6405_vm7 = vmand %vm401_vm3, %vm534_vm4 }
  0xcd   :  { %5033 = vmatprep.mubr.msk.f32.mxu1 %vm2152_vm0, %v2120_v11  ;;  %4831 = vmatmul.mubr.msk.f32.gmra.mrb[98].mxu0 %vm930_vm1, %v4135_v13  ;;  %v140_v11 = vadd.s32 944, %v5273_v8 }
  0xce   :  { %4833 = vmatprep.mubr.msk.f32.mxu0 %vm930_vm1, %v4136_v14  ;;  %v4149_v14 = vsel %vm6325_vm9, 1.0, %v5220_v18 }
  0xcf   :  { %vm402_vm5 = vcmp.ge.s32.totalorder %v140_v11, %v5845_v19  ;;  %vm535_vm6 = vcmp.lt.s32.totalorder %v140_v11, %v5851_v5 }
  0xd0   :  { %5034 = vmatmul.mubr.msk.f32.gmra.mrb[98].mxu1 %vm2152_vm0, %v2121_v15  ;;  %vm6417_vm8 = vmand %vm402_vm5, %vm535_vm6 }
  0xd1   :  { %5036 = vmatprep.mubr.msk.f32.mxu1 %vm2152_vm0, %v2122_v17  ;;  %4834 = vmatmul.mubr.msk.f32.gmra.mrb[100].mxu0 %vm930_vm1, %v4137_v20  ;;  %v4150_v17 = vsel %vm6337_vm10, 1.0, %v5220_v18  ;;  %v4154_v52 = vsel %vm6417_vm8, 1.0, %v5220_v18 }
  0xd2   :  { %4836 = vmatprep.mubr.msk.f32.mxu0 %vm930_vm1, %v4138_v21 }
  0xd4   :  { %5037 = vmatmul.mubr.msk.f32.gmra.mrb[100].mxu1 %vm2152_vm0, %v2123_v22  ;;  %v2135_v22 = vld [vmem:[%s7119_s0 + $0x398] sm:$0xff] }
  0xd5   :  { %5039 = vmatprep.mubr.msk.f32.mxu1 %vm2152_vm0, %v2124_v24  ;;  %4837 = vmatmul.mubr.msk.f32.gmra.mrb[102].mxu0 %vm930_vm1, %v4139_v26  ;;  %v141_v24 = vadd.s32 952, %v5273_v8 }
  0xd6   :  { %4839 = vmatprep.mubr.msk.f32.mxu0 %vm930_vm1, %v4140_v27  ;;  %v2136_v27 = vld [vmem:[%s7119_s0 + $0x3a0] sm:$0xff] }
  0xd7   :  { %vm403_vm9 = vcmp.ge.s32.totalorder %v141_v24, %v5845_v19  ;;  %vm536_vm10 = vcmp.lt.s32.totalorder %v141_v24, %v5851_v5 }
  0xd8   :  { %5040 = vmatmul.mubr.msk.f32.gmra.mrb[102].mxu1 %vm2152_vm0, %v2125_v28  ;;  %v142_v28 = vadd.s32 960, %v5273_v8  ;;  %vm6451_vm13 = vmand %vm403_vm9, %vm536_vm10 }
  0xd9   :  { %5042 = vmatprep.mubr.msk.f32.mxu1 %vm2152_vm0, %v2126_v30  ;;  %4840 = vmatmul.mubr.msk.f32.gmra.mrb[104].mxu0 %vm930_vm1, %v4141_v32 }
  0xda   :  { %4842 = vmatprep.mubr.msk.f32.mxu0 %vm930_vm1, %v4142_v33  ;;  %vm404_vm11 = vcmp.ge.s32.totalorder %v142_v28, %v5845_v19  ;;  %vm537_vm12 = vcmp.lt.s32.totalorder %v142_v28, %v5851_v5  ;;  %v147_v19 = vadd.s32 1000, %v5273_v8 }
  0xdb   :  { %vm6463_vm14 = vmand %vm404_vm11, %vm537_vm12 }
  0xdc   :  { %5043 = vmatmul.mubr.msk.f32.gmra.mrb[104].mxu1 %vm2152_vm0, %v2127_v34  ;;  %v4152_v34 = vsel %vm6377_vm2, 1.0, %v5220_v18  ;;  %vm538_vm2 = vcmp.lt.s32.totalorder %v143_v41, %v5851_v5  ;;  %v4156_v11 = vsel %vm6463_vm14, 1.0, %v5220_v18 }
  0xdd   :  { %5045 = vmatprep.mubr.msk.f32.mxu1 %vm2152_vm0, %v2128_v36  ;;  %4843 = vmatmul.mubr.msk.f32.gmra.mrb[106].mxu0 %vm930_vm1, %v4143_v38  ;;  %vm6507_vm5 = vmand %vm405_vm15, %vm538_vm2 }
  0xde   :  { %4845 = vmatprep.mubr.msk.f32.mxu0 %vm930_vm1, %v4144_v39  ;;  %v2137_v39 = vld [vmem:[%s7119_s0 + $0x3a8] sm:$0xff] }
  0xdf   :  { %v4888_v44 = vpop.f32.mrb[0].mxu1 }
  0xe0   :  { %v2613_v46 = vpop.f32.mrb[1].mxu1  ;;  %5046 = vmatmul.mubr.msk.f32.gmra.mrb[106].mxu1 %vm2152_vm0, %v2129_v40  ;;  %v4688_v49 = vpop.f32.mrb[2].mxu0 }
  0xe1   :  { %5048 = vmatprep.mubr.msk.f32.mxu1 %vm2152_vm0, %v2130_v42  ;;  %v2619_v53 = vadd.f32 %v4888_v44, %v4688_v49  ;;  %v1391_v54 = vpop.f32.mrb[3].mxu0  ;;  %4846 = vmatmul.mubr.msk.f32.gmra.mrb[108].mxu0 %vm930_vm1, %v4145_v45  ;;  %v2138_v45 = vld [vmem:[%s7119_s0 + $0x3b0] sm:$0xff]  ;;  %v4153_v49 = vsel %vm6405_vm7, 1.0, %v5220_v18 }
  0xe2   :  { %v2614_v57 = vadd.f32 %v2613_v46, %v1391_v54  ;;  %4848 = vmatprep.mubr.msk.f32.mxu0 %vm930_vm1, %v4146_v47  ;;  %v144_v46 = vadd.s32 976, %v5273_v8 }
  0xe3   :  { %v4891_v58 = vpop.f32.mrb[2].mxu1  ;;  %v3245_v60 = vmax.f32 %v2619_v53, 0.0 }
  0xe4   :  { %v2623_v61 = vpop.f32.mrb[3].mxu1  ;;  %5049 = vmatmul.mubr.msk.f32.gmra.mrb[108].mxu1 %vm2152_vm0, %v2131_v50  ;;  %v3244_v0 = vmax.f32 %v2614_v57, 0.0  ;;  %v4691_v1 = vpop.f32.mrb[4].mxu0  ;;  %v2139_v57 = vld [vmem:[%s7119_s0 + $0x3b8] sm:$0xff] }
  0xe5   :  { %5051 = vmatprep.mubr.msk.f32.mxu1 %vm2152_vm0, %v2132_v55  ;;  %3373 = vst.msk [vmem:[#allocation2 + $0x18] sm:$0xff] %vm2152_vm0, %v3245_v60  ;;  %v2629_v7 = vadd.f32 %v4891_v58, %v4691_v1  ;;  %v1401_v9 = vpop.f32.mrb[5].mxu0  ;;  %4849 = vmatmul.mubr.msk.f32.gmra.mrb[110].mxu0 %vm930_vm1, %v4147_v59  ;;  %v145_v59 = vadd.s32 984, %v5273_v8  ;;  %v6487_v1 = vld [vmem:[%s7121_s2] ss:$0 sm:$0xff] }
  0xe6   :  { %3372 = vst.msk [vmem:[#allocation2 + $0x10] sm:$0xff] %vm2152_vm0, %v3244_v0  ;;  %v2624_v12 = vadd.f32 %v2623_v61, %v1401_v9  ;;  %4851 = vmatprep.mubr.msk.f32.mxu0 %vm930_vm1, %v4148_v62  ;;  %v6481_v0 = vld [vmem:[%s7120_s1] ss:$0 sm:$0xff]  ;;  %vm539_vm4 = vcmp.lt.s32.totalorder %v144_v46, %v6487_v1  ;;  %vm542_vm14 = vcmp.lt.s32.totalorder %v147_v19, %v6487_v1 }
  0xe7   :  { %v4894_v13 = vpop.f32.mrb[4].mxu1  ;;  %v3247_v15 = vmax.f32 %v2629_v7, 0.0  ;;  %vm406_vm3 = vcmp.ge.s32.totalorder %v144_v46, %v6481_v0  ;;  %v4155_v7 = vsel %vm6451_vm13, 1.0, %v5220_v18  ;;  %vm407_vm7 = vcmp.ge.s32.totalorder %v145_v59, %v6481_v0 }
  0xe8   :  { %v2633_v16 = vpop.f32.mrb[5].mxu1  ;;  %5052 = vmatmul.mubr.msk.f32.gmra.mrb[110].mxu1 %vm2152_vm0, %v2133_v2  ;;  %v3246_v20 = vmax.f32 %v2624_v12, 0.0  ;;  %v4694_v21 = vpop.f32.mrb[6].mxu0  ;;  %v146_v2 = vadd.s32 992, %v5273_v8  ;;  %vm6519_vm6 = vmand %vm406_vm3, %vm539_vm4  ;;  %vm540_vm8 = vcmp.lt.s32.totalorder %v145_v59, %v6487_v1  ;;  %vm409_vm13 = vcmp.ge.s32.totalorder %v147_v19, %v6481_v0 }
  0xe9   :  { %5054 = vmatprep.mubr.msk.f32.mxu1 %vm2152_vm0, %v2134_v10  ;;  %3375 = vst.msk [vmem:[#allocation2 + $0x28] sm:$0xff] %vm2152_vm0, %v3247_v15  ;;  %v2639_v25 = vadd.f32 %v4894_v13, %v4694_v21  ;;  %v1411_v26 = vpop.f32.mrb[7].mxu0  ;;  %4852 = vmatmul.mubr.msk.f32.gmra.mrb[112].mxu0 %vm930_vm1, %v4149_v14  ;;  %v2142_v21 = vld [vmem:[%s7119_s0 + $0x3d0] sm:$0xff]  ;;  %v4158_v28 = vsel %vm6519_vm6, 1.0, %v5220_v18  ;;  %vm6553_vm11 = vmand %vm407_vm7, %vm540_vm8  ;;  %vm544_vm6 = vcmp.lt.s32.totalorder %v149_v35, %v6487_v1 }
  0xea   :  { %3374 = vst.msk [vmem:[#allocation2 + $0x20] sm:$0xff] %vm2152_vm0, %v3246_v20  ;;  %v2634_v29 = vadd.f32 %v2633_v16, %v1411_v26  ;;  %4854 = vmatprep.mubr.msk.f32.mxu0 %vm930_vm1, %v4150_v17  ;;  %v2141_v16 = vld [vmem:[%s7119_s0 + $0x3c8] sm:$0xff]  ;;  %vm408_vm9 = vcmp.ge.s32.totalorder %v146_v2, %v6481_v0  ;;  %vm541_vm10 = vcmp.lt.s32.totalorder %v146_v2, %v6487_v1  ;;  %v4159_v41 = vsel %vm6553_vm11, 1.0, %v5220_v18  ;;  %vm6598_vm3 = vmand %vm409_vm13, %vm542_vm14 }
  0xeb   :  { %v4897_v30 = vpop.f32.mrb[6].mxu1  ;;  %v3249_v32 = vmax.f32 %v2639_v25, 0.0  ;;  %v4157_v25 = vsel %vm6507_vm5, 1.0, %v5220_v18  ;;  %vm6565_vm12 = vmand %vm408_vm9, %vm541_vm10  ;;  %vm411_vm5 = vcmp.ge.s32.totalorder %v149_v35, %v6481_v0 }
  0xec   :  { %v2643_v33 = vpop.f32.mrb[7].mxu1  ;;  %5055 = vmatmul.mubr.msk.f32.gmra.mrb[112].mxu1 %vm2152_vm0, %v2135_v22  ;;  %v3781_v36 = vld [vmem:[#allocation2 + $0x18] sm:$0xff]  ;;  %v3248_v37 = vmax.f32 %v2634_v29, 0.0  ;;  %v4697_v38 = vpop.f32.mrb[8].mxu0  ;;  %v148_v22 = vadd.s32 1008, %v5273_v8  ;;  %vm6640_vm7 = vmand %vm411_vm5, %vm544_vm6 }
  0xed   :  { %5057 = vmatprep.mubr.msk.f32.mxu1 %vm2152_vm0, %v2136_v27  ;;  %3782 = vst [vmem:[%s7124_s5 + $0x18] sm:$0xff] %v3781_v36  ;;  %v3779_v42 = vld [vmem:[#allocation2 + $0x10] sm:$0xff]  ;;  %3377 = vst.msk [vmem:[#allocation2 + $0x38] sm:$0xff] %vm2152_vm0, %v3249_v32  ;;  %v2649_v43 = vadd.f32 %v4897_v30, %v4697_v38  ;;  %v1421_v44 = vpop.f32.mrb[9].mxu0  ;;  %4855 = vmatmul.mubr.msk.f32.gmra.mrb[114].mxu0 %vm930_vm1, %v4151_v31 }
  0xee   :  { %3780 = vst [vmem:[%s7124_s5 + $0x10] sm:$0xff] %v3779_v42  ;;  %3376 = vst.msk [vmem:[#allocation2 + $0x30] sm:$0xff] %vm2152_vm0, %v3248_v37  ;;  %v2644_v47 = vadd.f32 %v2643_v33, %v1421_v44  ;;  %4857 = vmatprep.mubr.msk.f32.mxu0 %vm930_vm1, %v4152_v34  ;;  %v2143_v33 = vld [vmem:[%s7119_s0 + $0x3d8] sm:$0xff]  ;;  %vm410_vm15 = vcmp.ge.s32.totalorder %v148_v22, %v6481_v0  ;;  %vm543_vm2 = vcmp.lt.s32.totalorder %v148_v22, %v6487_v1 }
  0xef   :  { %v4900_v48 = vpop.f32.mrb[8].mxu1  ;;  %v3251_v50 = vmax.f32 %v2649_v43, 0.0  ;;  %v4160_v44 = vsel %vm6565_vm12, 1.0, %v5220_v18  ;;  %vm6610_vm4 = vmand %vm410_vm15, %vm543_vm2 }
  0xf0   :  { %v2653_v51 = vpop.f32.mrb[9].mxu1  ;;  %5058 = vmatmul.mubr.msk.f32.gmra.mrb[114].mxu1 %vm2152_vm0, %v2137_v39  ;;  %v3785_v54 = vld [vmem:[#allocation2 + $0x28] sm:$0xff]  ;;  %v3250_v55 = vmax.f32 %v2644_v47, 0.0  ;;  %v4700_v56 = vpop.f32.mrb[10].mxu0  ;;  %v2144_v39 = vld [vmem:[%s7119_s0 + $0x3e0] sm:$0xff] }
  0xf1   :  { %5060 = vmatprep.mubr.msk.f32.mxu1 %vm2152_vm0, %v2138_v45  ;;  %3786 = vst [vmem:[%s7124_s5 + $0x28] sm:$0xff] %v3785_v54  ;;  %v3783_v60 = vld [vmem:[#allocation2 + $0x20] sm:$0xff]  ;;  %3379 = vst.msk [vmem:[#allocation2 + $0x48] sm:$0xff] %vm2152_vm0, %v3251_v50  ;;  %v2659_v61 = vadd.f32 %v4900_v48, %v4700_v56  ;;  %v1431_v62 = vpop.f32.mrb[11].mxu0  ;;  %4858 = vmatmul.mubr.msk.f32.gmra.mrb[116].mxu0 %vm930_vm1, %v4153_v49  ;;  %v2145_v49 = vld [vmem:[%s7119_s0 + $0x3e8] sm:$0xff] }
  0xf2   :  { %3784 = vst [vmem:[%s7124_s5 + $0x20] sm:$0xff] %v3783_v60  ;;  %3378 = vst.msk [vmem:[#allocation2 + $0x40] sm:$0xff] %vm2152_vm0, %v3250_v55  ;;  %v2654_v3 = vadd.f32 %v2653_v51, %v1431_v62  ;;  %4860 = vmatprep.mubr.msk.f32.mxu0 %vm930_vm1, %v4154_v52  ;;  %v2146_v54 = vld [vmem:[%s7119_s0 + $0x3f0] sm:$0xff]  ;;  %v4162_v60 = vsel %vm6610_vm4, 1.0, %v5220_v18 }
  0xf3   :  { %v4903_v4 = vpop.f32.mrb[10].mxu1  ;;  %v3253_v9 = vmax.f32 %v2659_v61, 0.0 }
  0xf4   :  { %v2663_v10 = vpop.f32.mrb[11].mxu1  ;;  %5061 = vmatmul.mubr.msk.f32.gmra.mrb[116].mxu1 %vm2152_vm0, %v2139_v57  ;;  %v3789_v13 = vld [vmem:[#allocation2 + $0x38] sm:$0xff]  ;;  %v3252_v14 = vmax.f32 %v2654_v3, 0.0  ;;  %v4703_v15 = vpop.f32.mrb[12].mxu0  ;;  %v4161_v57 = vsel %vm6598_vm3, 1.0, %v5220_v18 }
  0xf5   :  { %5063 = vmatprep.mubr.msk.f32.mxu1 %vm2152_vm0, %v2140_v63  ;;  %3790 = vst [vmem:[%s7124_s5 + $0x38] sm:$0xff] %v3789_v13  ;;  %v3787_v17 = vld [vmem:[#allocation2 + $0x30] sm:$0xff]  ;;  %3381 = vst.msk [vmem:[#allocation2 + $0x58] sm:$0xff] %vm2152_vm0, %v3253_v9  ;;  %v2669_v6 = vadd.f32 %v4903_v4, %v4703_v15  ;;  %v1441_v20 = vpop.f32.mrb[13].mxu0  ;;  %4861 = vmatmul.mubr.msk.f32.gmra.mrb[118].mxu0 %vm930_vm1, %v4155_v7  ;;  %v2147_v3 = vld [vmem:[%s7119_s0 + $0x3f8] sm:$0xff] }
  0xf6   :  { %3788 = vst [vmem:[%s7124_s5 + $0x30] sm:$0xff] %v3787_v17  ;;  %3380 = vst.msk [vmem:[#allocation2 + $0x50] sm:$0xff] %vm2152_vm0, %v3252_v14  ;;  %v2664_v23 = vadd.f32 %v2663_v10, %v1441_v20  ;;  %4863 = vmatprep.mubr.msk.f32.mxu0 %vm930_vm1, %v4156_v11  ;;  %v4163_v10 = vsel %vm6640_vm7, 1.0, %v5220_v18  ;;  %v2020_v13 = vld [vmem:[%s7119_s0] sm:$0xff]  ;;  %v2021_v20 = vld [vmem:[%s7119_s0 + $0x8] sm:$0xff] }
  0xf7   :  { %v4906_v24 = vpop.f32.mrb[12].mxu1  ;;  %v3255_v26 = vmax.f32 %v2669_v6, 0.0 }
  0xf8   :  { %v2673_v27 = vpop.f32.mrb[13].mxu1  ;;  %5064 = vmatmul.mubr.msk.f32.gmra.mrb[118].mxu1 %vm2152_vm0, %v2141_v16  ;;  %v3793_v30 = vld [vmem:[#allocation2 + $0x48] sm:$0xff]  ;;  %v3254_v31 = vmax.f32 %v2664_v23, 0.0  ;;  %v4706_v32 = vpop.f32.mrb[14].mxu0 }
  0xf9   :  { %5066 = vmatprep.mubr.msk.f32.mxu1 %vm2152_vm0, %v2142_v21  ;;  %3794 = vst [vmem:[%s7124_s5 + $0x48] sm:$0xff] %v3793_v30  ;;  %v3791_v36 = vld [vmem:[#allocation2 + $0x40] sm:$0xff]  ;;  %3383 = vst.msk [vmem:[#allocation2 + $0x68] sm:$0xff] %vm2152_vm0, %v3255_v26  ;;  %v2679_v37 = vadd.f32 %v4906_v24, %v4706_v32  ;;  %v1451_v38 = vpop.f32.mrb[15].mxu0  ;;  %4864 = vmatmul.mubr.msk.f32.gmra.mrb[120].mxu0 %vm930_vm1, %v4157_v25 }
  0xfa   :  { %3792 = vst [vmem:[%s7124_s5 + $0x40] sm:$0xff] %v3791_v36  ;;  %3382 = vst.msk [vmem:[#allocation2 + $0x60] sm:$0xff] %vm2152_vm0, %v3254_v31  ;;  %v2674_v8 = vadd.f32 %v2673_v27, %v1451_v38  ;;  %4866 = vmatprep.mubr.msk.f32.mxu0 %vm930_vm1, %v4158_v28 }
  0xfb   :  { %v4909_v40 = vpop.f32.mrb[14].mxu1  ;;  %v3257_v42 = vmax.f32 %v2679_v37, 0.0 }
  0xfc   :  { %v2683_v43 = vpop.f32.mrb[15].mxu1  ;;  %5067 = vmatmul.mubr.msk.f32.gmra.mrb[120].mxu1 %vm2152_vm0, %v2143_v33  ;;  %v3797_v46 = vld [vmem:[#allocation2 + $0x58] sm:$0xff]  ;;  %v3256_v47 = vmax.f32 %v2674_v8, 0.0  ;;  %v4709_v48 = vpop.f32.mrb[16].mxu0 }
  0xfd   :  { %5069 = vmatprep.mubr.msk.f32.mxu1 %vm2152_vm0, %v2144_v39  ;;  %3798 = vst [vmem:[%s7124_s5 + $0x58] sm:$0xff] %v3797_v46  ;;  %v3795_v51 = vld [vmem:[#allocation2 + $0x50] sm:$0xff]  ;;  %3385 = vst.msk [vmem:[#allocation2 + $0x78] sm:$0xff] %vm2152_vm0, %v3257_v42  ;;  %v2689_v52 = vadd.f32 %v4909_v40, %v4709_v48  ;;  %v1461_v53 = vpop.f32.mrb[17].mxu0  ;;  %4867 = vmatmul.mubr.msk.f32.gmra.mrb[122].mxu0 %vm930_vm1, %v4159_v41 }
  0xfe   :  { %3796 = vst [vmem:[%s7124_s5 + $0x50] sm:$0xff] %v3795_v51  ;;  %3384 = vst.msk [vmem:[#allocation2 + $0x70] sm:$0xff] %vm2152_vm0, %v3256_v47  ;;  %v2684_v55 = vadd.f32 %v2683_v43, %v1461_v53  ;;  %4869 = vmatprep.mubr.msk.f32.mxu0 %vm930_vm1, %v4160_v44 }
  0xff   :  { %v4912_v56 = vpop.f32.mrb[16].mxu1  ;;  %v3259_v58 = vmax.f32 %v2689_v52, 0.0 }
 0x100   :  { %v2693_v59 = vpop.f32.mrb[17].mxu1  ;;  %5070 = vmatmul.mubr.msk.f32.gmra.mrb[122].mxu1 %vm2152_vm0, %v2145_v49  ;;  %v3801_v62 = vld [vmem:[#allocation2 + $0x68] sm:$0xff]  ;;  %v3258_v63 = vmax.f32 %v2684_v55, 0.0  ;;  %v4712_v2 = vpop.f32.mrb[18].mxu0 }
 0x101   :  { %5072 = vmatprep.mubr.msk.f32.mxu1 %vm2152_vm0, %v2146_v54  ;;  %3802 = vst [vmem:[%s7124_s5 + $0x68] sm:$0xff] %v3801_v62  ;;  %v3799_v1 = vld [vmem:[#allocation2 + $0x60] sm:$0xff]  ;;  %3387 = vst.msk [vmem:[#allocation2 + $0x88] sm:$0xff] %vm2152_vm0, %v3259_v58  ;;  %v2699_v0 = vadd.f32 %v4912_v56, %v4712_v2  ;;  %v1471_v4 = vpop.f32.mrb[19].mxu0  ;;  %4870 = vmatmul.mubr.msk.f32.gmra.mrb[124].mxu0 %vm930_vm1, %v4161_v57 }
 0x102   :  { %3800 = vst [vmem:[%s7124_s5 + $0x60] sm:$0xff] %v3799_v1  ;;  %3386 = vst.msk [vmem:[#allocation2 + $0x80] sm:$0xff] %vm2152_vm0, %v3258_v63  ;;  %v2694_v7 = vadd.f32 %v2693_v59, %v1471_v4  ;;  %4872 = vmatprep.mubr.msk.f32.mxu0 %vm930_vm1, %v4162_v60 }
 0x103   :  { %v4915_v9 = vpop.f32.mrb[18].mxu1  ;;  %v3261_v11 = vmax.f32 %v2699_v0, 0.0 }
 0x104   :  { %v2703_v12 = vpop.f32.mrb[19].mxu1  ;;  %5073 = vmatmul.mubr.msk.f32.gmra.mrb[124].mxu1 %vm2152_vm0, %v2147_v3  ;;  %v3805_v14 = vld [vmem:[#allocation2 + $0x78] sm:$0xff]  ;;  %v3260_v15 = vmax.f32 %v2694_v7, 0.0  ;;  %v4715_v16 = vpop.f32.mrb[20].mxu0 }
 0x105   :  { %3806 = vst [vmem:[%s7124_s5 + $0x78] sm:$0xff] %v3805_v14  ;;  %v3803_v5 = vld [vmem:[#allocation2 + $0x70] sm:$0xff]  ;;  %3389 = vst.msk [vmem:[#allocation2 + $0x98] sm:$0xff] %vm2152_vm0, %v3261_v11  ;;  %v2709_v19 = vadd.f32 %v4915_v9, %v4715_v16  ;;  %v1481_v18 = vpop.f32.mrb[21].mxu0  ;;  %4873 = vmatmul.mubr.msk.f32.gmra.mrb[126].mxu0 %vm930_vm1, %v4163_v10 }
 0x106   :  { %3804 = vst [vmem:[%s7124_s5 + $0x70] sm:$0xff] %v3803_v5  ;;  %3388 = vst.msk [vmem:[#allocation2 + $0x90] sm:$0xff] %vm2152_vm0, %v3260_v15  ;;  %v2704_v17 = vadd.f32 %v2703_v12, %v1481_v18  ;;  %4883 = vmatprep.mubr.msk.f32.mxu0 %vm2152_vm0, %v2020_v13 }
 0x107   :  { %v4918_v6 = vpop.f32.mrb[20].mxu1  ;;  %v3263_v21 = vmax.f32 %v2709_v19, 0.0 }
 0x108   :  { %v2713_v22 = vpop.f32.mrb[21].mxu1  ;;  %v3809_v23 = vld [vmem:[#allocation2 + $0x88] sm:$0xff]  ;;  %v3262_v24 = vmax.f32 %v2704_v17, 0.0  ;;  %v4718_v25 = vpop.f32.mrb[22].mxu0 }
 0x109   :  { %3810 = vst [vmem:[%s7124_s5 + $0x88] sm:$0xff] %v3809_v23  ;;  %v3807_v26 = vld [vmem:[#allocation2 + $0x80] sm:$0xff]  ;;  %3391 = vst.msk [vmem:[#allocation2 + $0xa8] sm:$0xff] %vm2152_vm0, %v3263_v21  ;;  %v2719_v27 = vadd.f32 %v4918_v6, %v4718_v25  ;;  %v1491_v28 = vpop.f32.mrb[23].mxu0  ;;  %4884 = vmatmul.mubr.msk.f32.vlgmr.msra.gmra.mrb[0].mxu0 %vm2152_vm0, %v2021_v20 }
 0x10a   :  { %3808 = vst [vmem:[%s7124_s5 + $0x80] sm:$0xff] %v3807_v26  ;;  %3390 = vst.msk [vmem:[#allocation2 + $0xa0] sm:$0xff] %vm2152_vm0, %v3262_v24  ;;  %v2714_v29 = vadd.f32 %v2713_v22, %v1491_v28 }
 0x10b   :  { %v4921_v30 = vpop.f32.mrb[22].mxu1  ;;  %v3265_v31 = vmax.f32 %v2719_v27, 0.0 }
 0x10c   :  { %v2723_v32 = vpop.f32.mrb[23].mxu1  ;;  %v3813_v33 = vld [vmem:[#allocation2 + $0x98] sm:$0xff]  ;;  %v3264_v34 = vmax.f32 %v2714_v29, 0.0  ;;  %v4721_v35 = vpop.f32.mrb[24].mxu0 }
 0x10d   :  { %3814 = vst [vmem:[%s7124_s5 + $0x98] sm:$0xff] %v3813_v33  ;;  %v3811_v36 = vld [vmem:[#allocation2 + $0x90] sm:$0xff]  ;;  %3393 = vst.msk [vmem:[#allocation2 + $0xb8] sm:$0xff] %vm2152_vm0, %v3265_v31  ;;  %v2729_v37 = vadd.f32 %v4921_v30, %v4721_v35  ;;  %v1501_v38 = vpop.f32.mrb[25].mxu0 }
 0x10e   :  { %3812 = vst [vmem:[%s7124_s5 + $0x90] sm:$0xff] %v3811_v36  ;;  %3392 = vst.msk [vmem:[#allocation2 + $0xb0] sm:$0xff] %vm2152_vm0, %v3264_v34  ;;  %v2724_v39 = vadd.f32 %v2723_v32, %v1501_v38 }
 0x10f   :  { %v4924_v8 = vpop.f32.mrb[24].mxu1  ;;  %v3267_v40 = vmax.f32 %v2729_v37, 0.0 }
 0x110   :  { %v2733_v41 = vpop.f32.mrb[25].mxu1  ;;  %v3817_v42 = vld [vmem:[#allocation2 + $0xa8] sm:$0xff]  ;;  %v3266_v43 = vmax.f32 %v2724_v39, 0.0  ;;  %v4724_v44 = vpop.f32.mrb[26].mxu0 }
 0x111   :  { %3818 = vst [vmem:[%s7124_s5 + $0xa8] sm:$0xff] %v3817_v42  ;;  %v3815_v45 = vld [vmem:[#allocation2 + $0xa0] sm:$0xff]  ;;  %3395 = vst.msk [vmem:[#allocation2 + $0xc8] sm:$0xff] %vm2152_vm0, %v3267_v40  ;;  %v2739_v46 = vadd.f32 %v4924_v8, %v4724_v44  ;;  %v1511_v47 = vpop.f32.mrb[27].mxu0 }
 0x112   :  { %3816 = vst [vmem:[%s7124_s5 + $0xa0] sm:$0xff] %v3815_v45  ;;  %3394 = vst.msk [vmem:[#allocation2 + $0xc0] sm:$0xff] %vm2152_vm0, %v3266_v43  ;;  %v2734_v48 = vadd.f32 %v2733_v41, %v1511_v47 }
 0x113   :  { %v4927_v49 = vpop.f32.mrb[26].mxu1  ;;  %v3269_v50 = vmax.f32 %v2739_v46, 0.0 }
 0x114   :  { %v2743_v51 = vpop.f32.mrb[27].mxu1  ;;  %v3821_v52 = vld [vmem:[#allocation2 + $0xb8] sm:$0xff]  ;;  %v3268_v53 = vmax.f32 %v2734_v48, 0.0  ;;  %v4727_v54 = vpop.f32.mrb[28].mxu0 }
 0x115   :  { %3822 = vst [vmem:[%s7124_s5 + $0xb8] sm:$0xff] %v3821_v52  ;;  %v3819_v55 = vld [vmem:[#allocation2 + $0xb0] sm:$0xff]  ;;  %3397 = vst.msk [vmem:[#allocation2 + $0xd8] sm:$0xff] %vm2152_vm0, %v3269_v50  ;;  %v2749_v56 = vadd.f32 %v4927_v49, %v4727_v54  ;;  %v1521_v57 = vpop.f32.mrb[29].mxu0 }
 0x116   :  { %3820 = vst [vmem:[%s7124_s5 + $0xb0] sm:$0xff] %v3819_v55  ;;  %3396 = vst.msk [vmem:[#allocation2 + $0xd0] sm:$0xff] %vm2152_vm0, %v3268_v53  ;;  %v2744_v58 = vadd.f32 %v2743_v51, %v1521_v57 }
 0x117   :  { %v4930_v59 = vpop.f32.mrb[28].mxu1  ;;  %v3271_v60 = vmax.f32 %v2749_v56, 0.0 }
 0x118   :  { %v2753_v61 = vpop.f32.mrb[29].mxu1  ;;  %v3825_v62 = vld [vmem:[#allocation2 + $0xc8] sm:$0xff]  ;;  %v3270_v63 = vmax.f32 %v2744_v58, 0.0  ;;  %v4730_v2 = vpop.f32.mrb[30].mxu0 }
 0x119   :  { %3826 = vst [vmem:[%s7124_s5 + $0xc8] sm:$0xff] %v3825_v62  ;;  %v3823_v3 = vld [vmem:[#allocation2 + $0xc0] sm:$0xff]  ;;  %3399 = vst.msk [vmem:[#allocation2 + $0xe8] sm:$0xff] %vm2152_vm0, %v3271_v60  ;;  %v2759_v1 = vadd.f32 %v4930_v59, %v4730_v2  ;;  %v1531_v0 = vpop.f32.mrb[31].mxu0 }
 0x11a   :  { %3824 = vst [vmem:[%s7124_s5 + $0xc0] sm:$0xff] %v3823_v3  ;;  %3398 = vst.msk [vmem:[#allocation2 + $0xe0] sm:$0xff] %vm2152_vm0, %v3270_v63  ;;  %v2754_v4 = vadd.f32 %v2753_v61, %v1531_v0 }
 0x11b   :  { %v4933_v7 = vpop.f32.mrb[30].mxu1  ;;  %v3273_v9 = vmax.f32 %v2759_v1, 0.0 }
 0x11c   :  { %v2763_v10 = vpop.f32.mrb[31].mxu1  ;;  %v3829_v11 = vld [vmem:[#allocation2 + $0xd8] sm:$0xff]  ;;  %v3272_v12 = vmax.f32 %v2754_v4, 0.0  ;;  %v4733_v13 = vpop.f32.mrb[32].mxu0 }
 0x11d   :  { %3830 = vst [vmem:[%s7124_s5 + $0xd8] sm:$0xff] %v3829_v11  ;;  %v3827_v14 = vld [vmem:[#allocation2 + $0xd0] sm:$0xff]  ;;  %3401 = vst.msk [vmem:[#allocation2 + $0xf8] sm:$0xff] %vm2152_vm0, %v3273_v9  ;;  %v2769_v15 = vadd.f32 %v4933_v7, %v4733_v13  ;;  %v1541_v16 = vpop.f32.mrb[33].mxu0 }
 0x11e   :  { %3828 = vst [vmem:[%s7124_s5 + $0xd0] sm:$0xff] %v3827_v14  ;;  %3400 = vst.msk [vmem:[#allocation2 + $0xf0] sm:$0xff] %vm2152_vm0, %v3272_v12  ;;  %v2764_v5 = vadd.f32 %v2763_v10, %v1541_v16 }
 0x11f   :  { %v4936_v19 = vpop.f32.mrb[32].mxu1  ;;  %v3275_v18 = vmax.f32 %v2769_v15, 0.0 }
 0x120   :  { %v2773_v17 = vpop.f32.mrb[33].mxu1  ;;  %v3833_v6 = vld [vmem:[#allocation2 + $0xe8] sm:$0xff]  ;;  %v3274_v20 = vmax.f32 %v2764_v5, 0.0  ;;  %v4736_v21 = vpop.f32.mrb[34].mxu0 }
 0x121   :  { %3834 = vst [vmem:[%s7124_s5 + $0xe8] sm:$0xff] %v3833_v6  ;;  %v3831_v22 = vld [vmem:[#allocation2 + $0xe0] sm:$0xff]  ;;  %3403 = vst.msk [vmem:[#allocation2 + $0x108] sm:$0xff] %vm2152_vm0, %v3275_v18  ;;  %v2779_v23 = vadd.f32 %v4936_v19, %v4736_v21  ;;  %v1551_v24 = vpop.f32.mrb[35].mxu0 }
 0x122   :  { %3832 = vst [vmem:[%s7124_s5 + $0xe0] sm:$0xff] %v3831_v22  ;;  %3402 = vst.msk [vmem:[#allocation2 + $0x100] sm:$0xff] %vm2152_vm0, %v3274_v20  ;;  %v2774_v25 = vadd.f32 %v2773_v17, %v1551_v24 }
 0x123   :  { %v4939_v26 = vpop.f32.mrb[34].mxu1  ;;  %v3277_v27 = vmax.f32 %v2779_v23, 0.0 }
 0x124   :  { %v2783_v28 = vpop.f32.mrb[35].mxu1  ;;  %v3837_v29 = vld [vmem:[#allocation2 + $0xf8] sm:$0xff]  ;;  %v3276_v30 = vmax.f32 %v2774_v25, 0.0  ;;  %v4739_v31 = vpop.f32.mrb[36].mxu0 }
 0x125   :  { %3838 = vst [vmem:[%s7124_s5 + $0xf8] sm:$0xff] %v3837_v29  ;;  %v3835_v32 = vld [vmem:[#allocation2 + $0xf0] sm:$0xff]  ;;  %3405 = vst.msk [vmem:[#allocation2 + $0x118] sm:$0xff] %vm2152_vm0, %v3277_v27  ;;  %v2789_v33 = vadd.f32 %v4939_v26, %v4739_v31  ;;  %v1561_v34 = vpop.f32.mrb[37].mxu0 }
 0x126   :  { %3836 = vst [vmem:[%s7124_s5 + $0xf0] sm:$0xff] %v3835_v32  ;;  %3404 = vst.msk [vmem:[#allocation2 + $0x110] sm:$0xff] %vm2152_vm0, %v3276_v30  ;;  %v2784_v35 = vadd.f32 %v2783_v28, %v1561_v34 }
 0x127   :  { %v4942_v36 = vpop.f32.mrb[36].mxu1  ;;  %v3279_v37 = vmax.f32 %v2789_v33, 0.0 }
 0x128   :  { %v2793_v38 = vpop.f32.mrb[37].mxu1  ;;  %v3841_v39 = vld [vmem:[#allocation2 + $0x108] sm:$0xff]  ;;  %v3278_v8 = vmax.f32 %v2784_v35, 0.0  ;;  %v4742_v40 = vpop.f32.mrb[38].mxu0 }
 0x129   :  { %3842 = vst [vmem:[%s7124_s5 + $0x108] sm:$0xff] %v3841_v39  ;;  %v3839_v41 = vld [vmem:[#allocation2 + $0x100] sm:$0xff]  ;;  %3407 = vst.msk [vmem:[#allocation2 + $0x128] sm:$0xff] %vm2152_vm0, %v3279_v37  ;;  %v2799_v42 = vadd.f32 %v4942_v36, %v4742_v40  ;;  %v1571_v43 = vpop.f32.mrb[39].mxu0 }
 0x12a   :  { %3840 = vst [vmem:[%s7124_s5 + $0x100] sm:$0xff] %v3839_v41  ;;  %3406 = vst.msk [vmem:[#allocation2 + $0x120] sm:$0xff] %vm2152_vm0, %v3278_v8  ;;  %v2794_v44 = vadd.f32 %v2793_v38, %v1571_v43 }
 0x12b   :  { %v4945_v45 = vpop.f32.mrb[38].mxu1  ;;  %v3281_v46 = vmax.f32 %v2799_v42, 0.0 }
 0x12c   :  { %v2803_v47 = vpop.f32.mrb[39].mxu1  ;;  %v3845_v48 = vld [vmem:[#allocation2 + $0x118] sm:$0xff]  ;;  %v3280_v49 = vmax.f32 %v2794_v44, 0.0  ;;  %v4745_v50 = vpop.f32.mrb[40].mxu0 }
 0x12d   :  { %3846 = vst [vmem:[%s7124_s5 + $0x118] sm:$0xff] %v3845_v48  ;;  %v3843_v51 = vld [vmem:[#allocation2 + $0x110] sm:$0xff]  ;;  %3409 = vst.msk [vmem:[#allocation2 + $0x138] sm:$0xff] %vm2152_vm0, %v3281_v46  ;;  %v2809_v52 = vadd.f32 %v4945_v45, %v4745_v50  ;;  %v1581_v53 = vpop.f32.mrb[41].mxu0 }
 0x12e   :  { %3844 = vst [vmem:[%s7124_s5 + $0x110] sm:$0xff] %v3843_v51  ;;  %3408 = vst.msk [vmem:[#allocation2 + $0x130] sm:$0xff] %vm2152_vm0, %v3280_v49  ;;  %v2804_v54 = vadd.f32 %v2803_v47, %v1581_v53 }
 0x12f   :  { %v4948_v55 = vpop.f32.mrb[40].mxu1  ;;  %v3283_v56 = vmax.f32 %v2809_v52, 0.0 }
 0x130   :  { %v2813_v57 = vpop.f32.mrb[41].mxu1  ;;  %v3849_v58 = vld [vmem:[#allocation2 + $0x128] sm:$0xff]  ;;  %v3282_v59 = vmax.f32 %v2804_v54, 0.0  ;;  %v4748_v60 = vpop.f32.mrb[42].mxu0 }
 0x131   :  { %3850 = vst [vmem:[%s7124_s5 + $0x128] sm:$0xff] %v3849_v58  ;;  %v3847_v61 = vld [vmem:[#allocation2 + $0x120] sm:$0xff]  ;;  %3411 = vst.msk [vmem:[#allocation2 + $0x148] sm:$0xff] %vm2152_vm0, %v3283_v56  ;;  %v2819_v62 = vadd.f32 %v4948_v55, %v4748_v60  ;;  %v1591_v63 = vpop.f32.mrb[43].mxu0 }
 0x132   :  { %3848 = vst [vmem:[%s7124_s5 + $0x120] sm:$0xff] %v3847_v61  ;;  %3410 = vst.msk [vmem:[#allocation2 + $0x140] sm:$0xff] %vm2152_vm0, %v3282_v59  ;;  %v2814_v2 = vadd.f32 %v2813_v57, %v1591_v63 }
 0x133   :  { %v4951_v3 = vpop.f32.mrb[42].mxu1  ;;  %v3285_v1 = vmax.f32 %v2819_v62, 0.0 }
 0x134   :  { %v2823_v0 = vpop.f32.mrb[43].mxu1  ;;  %v3853_v4 = vld [vmem:[#allocation2 + $0x138] sm:$0xff]  ;;  %v3284_v7 = vmax.f32 %v2814_v2, 0.0  ;;  %v4751_v9 = vpop.f32.mrb[44].mxu0 }
 0x135   :  { %3854 = vst [vmem:[%s7124_s5 + $0x138] sm:$0xff] %v3853_v4  ;;  %v3851_v10 = vld [vmem:[#allocation2 + $0x130] sm:$0xff]  ;;  %3413 = vst.msk [vmem:[#allocation2 + $0x158] sm:$0xff] %vm2152_vm0, %v3285_v1  ;;  %v2829_v11 = vadd.f32 %v4951_v3, %v4751_v9  ;;  %v1601_v12 = vpop.f32.mrb[45].mxu0 }
 0x136   :  { %3852 = vst [vmem:[%s7124_s5 + $0x130] sm:$0xff] %v3851_v10  ;;  %3412 = vst.msk [vmem:[#allocation2 + $0x150] sm:$0xff] %vm2152_vm0, %v3284_v7  ;;  %v2824_v13 = vadd.f32 %v2823_v0, %v1601_v12 }
 0x137   :  { %v4954_v14 = vpop.f32.mrb[44].mxu1  ;;  %v3287_v15 = vmax.f32 %v2829_v11, 0.0 }
 0x138   :  { %v2833_v16 = vpop.f32.mrb[45].mxu1  ;;  %v3857_v5 = vld [vmem:[#allocation2 + $0x148] sm:$0xff]  ;;  %v3286_v19 = vmax.f32 %v2824_v13, 0.0  ;;  %v4754_v18 = vpop.f32.mrb[46].mxu0 }
 0x139   :  { %3858 = vst [vmem:[%s7124_s5 + $0x148] sm:$0xff] %v3857_v5  ;;  %v3855_v17 = vld [vmem:[#allocation2 + $0x140] sm:$0xff]  ;;  %3415 = vst.msk [vmem:[#allocation2 + $0x168] sm:$0xff] %vm2152_vm0, %v3287_v15  ;;  %v2839_v6 = vadd.f32 %v4954_v14, %v4754_v18  ;;  %v1611_v20 = vpop.f32.mrb[47].mxu0 }
 0x13a   :  { %3856 = vst [vmem:[%s7124_s5 + $0x140] sm:$0xff] %v3855_v17  ;;  %3414 = vst.msk [vmem:[#allocation2 + $0x160] sm:$0xff] %vm2152_vm0, %v3286_v19  ;;  %v2834_v21 = vadd.f32 %v2833_v16, %v1611_v20 }
 0x13b   :  { %v4957_v22 = vpop.f32.mrb[46].mxu1  ;;  %v3289_v23 = vmax.f32 %v2839_v6, 0.0 }
 0x13c   :  { %v2843_v24 = vpop.f32.mrb[47].mxu1  ;;  %v3861_v25 = vld [vmem:[#allocation2 + $0x158] sm:$0xff]  ;;  %v3288_v26 = vmax.f32 %v2834_v21, 0.0  ;;  %v4757_v27 = vpop.f32.mrb[48].mxu0 }
 0x13d   :  { %3862 = vst [vmem:[%s7124_s5 + $0x158] sm:$0xff] %v3861_v25  ;;  %v3859_v28 = vld [vmem:[#allocation2 + $0x150] sm:$0xff]  ;;  %3417 = vst.msk [vmem:[#allocation2 + $0x178] sm:$0xff] %vm2152_vm0, %v3289_v23  ;;  %v2849_v29 = vadd.f32 %v4957_v22, %v4757_v27  ;;  %v1621_v30 = vpop.f32.mrb[49].mxu0 }
 0x13e   :  { %3860 = vst [vmem:[%s7124_s5 + $0x150] sm:$0xff] %v3859_v28  ;;  %3416 = vst.msk [vmem:[#allocation2 + $0x170] sm:$0xff] %vm2152_vm0, %v3288_v26  ;;  %v2844_v31 = vadd.f32 %v2843_v24, %v1621_v30 }
 0x13f   :  { %v4960_v32 = vpop.f32.mrb[48].mxu1  ;;  %v3291_v33 = vmax.f32 %v2849_v29, 0.0 }
 0x140   :  { %v2853_v34 = vpop.f32.mrb[49].mxu1  ;;  %v3865_v35 = vld [vmem:[#allocation2 + $0x168] sm:$0xff]  ;;  %v3290_v36 = vmax.f32 %v2844_v31, 0.0  ;;  %v4760_v37 = vpop.f32.mrb[50].mxu0 }
 0x141   :  { %3866 = vst [vmem:[%s7124_s5 + $0x168] sm:$0xff] %v3865_v35  ;;  %v3863_v38 = vld [vmem:[#allocation2 + $0x160] sm:$0xff]  ;;  %3419 = vst.msk [vmem:[#allocation2 + $0x188] sm:$0xff] %vm2152_vm0, %v3291_v33  ;;  %v2859_v39 = vadd.f32 %v4960_v32, %v4760_v37  ;;  %v1631_v8 = vpop.f32.mrb[51].mxu0 }
 0x142   :  { %3864 = vst [vmem:[%s7124_s5 + $0x160] sm:$0xff] %v3863_v38  ;;  %3418 = vst.msk [vmem:[#allocation2 + $0x180] sm:$0xff] %vm2152_vm0, %v3290_v36  ;;  %v2854_v40 = vadd.f32 %v2853_v34, %v1631_v8 }
 0x143   :  { %v4963_v41 = vpop.f32.mrb[50].mxu1  ;;  %v3293_v42 = vmax.f32 %v2859_v39, 0.0 }
 0x144   :  { %v2863_v43 = vpop.f32.mrb[51].mxu1  ;;  %v3869_v44 = vld [vmem:[#allocation2 + $0x178] sm:$0xff]  ;;  %v3292_v45 = vmax.f32 %v2854_v40, 0.0  ;;  %v4763_v46 = vpop.f32.mrb[52].mxu0 }
 0x145   :  { %3870 = vst [vmem:[%s7124_s5 + $0x178] sm:$0xff] %v3869_v44  ;;  %v3867_v47 = vld [vmem:[#allocation2 + $0x170] sm:$0xff]  ;;  %3421 = vst.msk [vmem:[#allocation2 + $0x198] sm:$0xff] %vm2152_vm0, %v3293_v42  ;;  %v2869_v48 = vadd.f32 %v4963_v41, %v4763_v46  ;;  %v1641_v49 = vpop.f32.mrb[53].mxu0 }
 0x146   :  { %3868 = vst [vmem:[%s7124_s5 + $0x170] sm:$0xff] %v3867_v47  ;;  %3420 = vst.msk [vmem:[#allocation2 + $0x190] sm:$0xff] %vm2152_vm0, %v3292_v45  ;;  %v2864_v50 = vadd.f32 %v2863_v43, %v1641_v49 }
 0x147   :  { %v4966_v51 = vpop.f32.mrb[52].mxu1  ;;  %v3295_v52 = vmax.f32 %v2869_v48, 0.0 }
 0x148   :  { %v2873_v53 = vpop.f32.mrb[53].mxu1  ;;  %v3873_v54 = vld [vmem:[#allocation2 + $0x188] sm:$0xff]  ;;  %v3294_v55 = vmax.f32 %v2864_v50, 0.0  ;;  %v4766_v56 = vpop.f32.mrb[54].mxu0 }
 0x149   :  { %3874 = vst [vmem:[%s7124_s5 + $0x188] sm:$0xff] %v3873_v54  ;;  %v3871_v57 = vld [vmem:[#allocation2 + $0x180] sm:$0xff]  ;;  %3423 = vst.msk [vmem:[#allocation2 + $0x1a8] sm:$0xff] %vm2152_vm0, %v3295_v52  ;;  %v2879_v58 = vadd.f32 %v4966_v51, %v4766_v56  ;;  %v1651_v59 = vpop.f32.mrb[55].mxu0 }
 0x14a   :  { %3872 = vst [vmem:[%s7124_s5 + $0x180] sm:$0xff] %v3871_v57  ;;  %3422 = vst.msk [vmem:[#allocation2 + $0x1a0] sm:$0xff] %vm2152_vm0, %v3294_v55  ;;  %v2874_v60 = vadd.f32 %v2873_v53, %v1651_v59 }
 0x14b   :  { %v4969_v61 = vpop.f32.mrb[54].mxu1  ;;  %v3297_v62 = vmax.f32 %v2879_v58, 0.0 }
 0x14c   :  { %v2883_v63 = vpop.f32.mrb[55].mxu1  ;;  %v3877_v2 = vld [vmem:[#allocation2 + $0x198] sm:$0xff]  ;;  %v3296_v3 = vmax.f32 %v2874_v60, 0.0  ;;  %v4769_v1 = vpop.f32.mrb[56].mxu0 }
 0x14d   :  { %3878 = vst [vmem:[%s7124_s5 + $0x198] sm:$0xff] %v3877_v2  ;;  %v3875_v0 = vld [vmem:[#allocation2 + $0x190] sm:$0xff]  ;;  %3425 = vst.msk [vmem:[#allocation2 + $0x1b8] sm:$0xff] %vm2152_vm0, %v3297_v62  ;;  %v2889_v4 = vadd.f32 %v4969_v61, %v4769_v1  ;;  %v1661_v7 = vpop.f32.mrb[57].mxu0 }
 0x14e   :  { %3876 = vst [vmem:[%s7124_s5 + $0x190] sm:$0xff] %v3875_v0  ;;  %3424 = vst.msk [vmem:[#allocation2 + $0x1b0] sm:$0xff] %vm2152_vm0, %v3296_v3  ;;  %v2884_v9 = vadd.f32 %v2883_v63, %v1661_v7 }
 0x14f   :  { %v4972_v10 = vpop.f32.mrb[56].mxu1  ;;  %v3299_v11 = vmax.f32 %v2889_v4, 0.0 }
 0x150   :  { %v2893_v12 = vpop.f32.mrb[57].mxu1  ;;  %v3881_v13 = vld [vmem:[#allocation2 + $0x1a8] sm:$0xff]  ;;  %v3298_v14 = vmax.f32 %v2884_v9, 0.0  ;;  %v4772_v15 = vpop.f32.mrb[58].mxu0 }
 0x151   :  { %3882 = vst [vmem:[%s7124_s5 + $0x1a8] sm:$0xff] %v3881_v13  ;;  %v3879_v16 = vld [vmem:[#allocation2 + $0x1a0] sm:$0xff]  ;;  %3427 = vst.msk [vmem:[#allocation2 + $0x1c8] sm:$0xff] %vm2152_vm0, %v3299_v11  ;;  %v2899_v5 = vadd.f32 %v4972_v10, %v4772_v15  ;;  %v1671_v19 = vpop.f32.mrb[59].mxu0 }
 0x152   :  { %3880 = vst [vmem:[%s7124_s5 + $0x1a0] sm:$0xff] %v3879_v16  ;;  %3426 = vst.msk [vmem:[#allocation2 + $0x1c0] sm:$0xff] %vm2152_vm0, %v3298_v14  ;;  %v2894_v18 = vadd.f32 %v2893_v12, %v1671_v19 }
 0x153   :  { %v4975_v17 = vpop.f32.mrb[58].mxu1  ;;  %v3301_v6 = vmax.f32 %v2899_v5, 0.0 }
 0x154   :  { %v2903_v20 = vpop.f32.mrb[59].mxu1  ;;  %v3885_v21 = vld [vmem:[#allocation2 + $0x1b8] sm:$0xff]  ;;  %v3300_v22 = vmax.f32 %v2894_v18, 0.0  ;;  %v4775_v23 = vpop.f32.mrb[60].mxu0 }
 0x155   :  { %3886 = vst [vmem:[%s7124_s5 + $0x1b8] sm:$0xff] %v3885_v21  ;;  %v3883_v24 = vld [vmem:[#allocation2 + $0x1b0] sm:$0xff]  ;;  %3429 = vst.msk [vmem:[#allocation2 + $0x1d8] sm:$0xff] %vm2152_vm0, %v3301_v6  ;;  %v2909_v25 = vadd.f32 %v4975_v17, %v4775_v23  ;;  %v1681_v26 = vpop.f32.mrb[61].mxu0 }
 0x156   :  { %3884 = vst [vmem:[%s7124_s5 + $0x1b0] sm:$0xff] %v3883_v24  ;;  %3428 = vst.msk [vmem:[#allocation2 + $0x1d0] sm:$0xff] %vm2152_vm0, %v3300_v22  ;;  %v2904_v27 = vadd.f32 %v2903_v20, %v1681_v26 }
 0x157   :  { %v4978_v28 = vpop.f32.mrb[60].mxu1  ;;  %v3303_v29 = vmax.f32 %v2909_v25, 0.0 }
 0x158   :  { %v2913_v30 = vpop.f32.mrb[61].mxu1  ;;  %v3889_v31 = vld [vmem:[#allocation2 + $0x1c8] sm:$0xff]  ;;  %v3302_v32 = vmax.f32 %v2904_v27, 0.0  ;;  %v4778_v33 = vpop.f32.mrb[62].mxu0 }
 0x159   :  { %3890 = vst [vmem:[%s7124_s5 + $0x1c8] sm:$0xff] %v3889_v31  ;;  %v3887_v34 = vld [vmem:[#allocation2 + $0x1c0] sm:$0xff]  ;;  %3431 = vst.msk [vmem:[#allocation2 + $0x1e8] sm:$0xff] %vm2152_vm0, %v3303_v29  ;;  %v2919_v35 = vadd.f32 %v4978_v28, %v4778_v33  ;;  %v1691_v36 = vpop.f32.mrb[63].mxu0 }
 0x15a   :  { %3888 = vst [vmem:[%s7124_s5 + $0x1c0] sm:$0xff] %v3887_v34  ;;  %3430 = vst.msk [vmem:[#allocation2 + $0x1e0] sm:$0xff] %vm2152_vm0, %v3302_v32  ;;  %v2914_v37 = vadd.f32 %v2913_v30, %v1691_v36 }
 0x15b   :  { %v4981_v38 = vpop.f32.mrb[62].mxu1  ;;  %v3305_v39 = vmax.f32 %v2919_v35, 0.0 }
 0x15c   :  { %v2923_v8 = vpop.f32.mrb[63].mxu1  ;;  %v3893_v40 = vld [vmem:[#allocation2 + $0x1d8] sm:$0xff]  ;;  %v3304_v41 = vmax.f32 %v2914_v37, 0.0  ;;  %v4781_v42 = vpop.f32.mrb[64].mxu0 }
 0x15d   :  { %3894 = vst [vmem:[%s7124_s5 + $0x1d8] sm:$0xff] %v3893_v40  ;;  %v3891_v43 = vld [vmem:[#allocation2 + $0x1d0] sm:$0xff]  ;;  %3433 = vst.msk [vmem:[#allocation2 + $0x1f8] sm:$0xff] %vm2152_vm0, %v3305_v39  ;;  %v2929_v44 = vadd.f32 %v4981_v38, %v4781_v42  ;;  %v1701_v45 = vpop.f32.mrb[65].mxu0 }
 0x15e   :  { %3892 = vst [vmem:[%s7124_s5 + $0x1d0] sm:$0xff] %v3891_v43  ;;  %3432 = vst.msk [vmem:[#allocation2 + $0x1f0] sm:$0xff] %vm2152_vm0, %v3304_v41  ;;  %v2924_v46 = vadd.f32 %v2923_v8, %v1701_v45 }
 0x15f   :  { %v4984_v47 = vpop.f32.mrb[64].mxu1  ;;  %v3307_v48 = vmax.f32 %v2929_v44, 0.0 }
 0x160   :  { %v2933_v49 = vpop.f32.mrb[65].mxu1  ;;  %v3897_v50 = vld [vmem:[#allocation2 + $0x1e8] sm:$0xff]  ;;  %v3306_v51 = vmax.f32 %v2924_v46, 0.0  ;;  %v4784_v52 = vpop.f32.mrb[66].mxu0 }
 0x161   :  { %3898 = vst [vmem:[%s7124_s5 + $0x1e8] sm:$0xff] %v3897_v50  ;;  %v3895_v53 = vld [vmem:[#allocation2 + $0x1e0] sm:$0xff]  ;;  %3435 = vst.msk [vmem:[#allocation2 + $0x208] sm:$0xff] %vm2152_vm0, %v3307_v48  ;;  %v2939_v54 = vadd.f32 %v4984_v47, %v4784_v52  ;;  %v1711_v55 = vpop.f32.mrb[67].mxu0 }
 0x162   :  { %3896 = vst [vmem:[%s7124_s5 + $0x1e0] sm:$0xff] %v3895_v53  ;;  %3434 = vst.msk [vmem:[#allocation2 + $0x200] sm:$0xff] %vm2152_vm0, %v3306_v51  ;;  %v2934_v56 = vadd.f32 %v2933_v49, %v1711_v55 }
 0x163   :  { %v4987_v57 = vpop.f32.mrb[66].mxu1  ;;  %v3309_v58 = vmax.f32 %v2939_v54, 0.0 }
 0x164   :  { %v2943_v59 = vpop.f32.mrb[67].mxu1  ;;  %v3901_v60 = vld [vmem:[#allocation2 + $0x1f8] sm:$0xff]  ;;  %v3308_v61 = vmax.f32 %v2934_v56, 0.0  ;;  %v4787_v62 = vpop.f32.mrb[68].mxu0 }
 0x165   :  { %3902 = vst [vmem:[%s7124_s5 + $0x1f8] sm:$0xff] %v3901_v60  ;;  %v3899_v63 = vld [vmem:[#allocation2 + $0x1f0] sm:$0xff]  ;;  %3437 = vst.msk [vmem:[#allocation2 + $0x218] sm:$0xff] %vm2152_vm0, %v3309_v58  ;;  %v2949_v2 = vadd.f32 %v4987_v57, %v4787_v62  ;;  %v1721_v3 = vpop.f32.mrb[69].mxu0 }
 0x166   :  { %3900 = vst [vmem:[%s7124_s5 + $0x1f0] sm:$0xff] %v3899_v63  ;;  %3436 = vst.msk [vmem:[#allocation2 + $0x210] sm:$0xff] %vm2152_vm0, %v3308_v61  ;;  %v2944_v1 = vadd.f32 %v2943_v59, %v1721_v3 }
 0x167   :  { %v4990_v0 = vpop.f32.mrb[68].mxu1  ;;  %v3311_v4 = vmax.f32 %v2949_v2, 0.0 }
 0x168   :  { %v2953_v7 = vpop.f32.mrb[69].mxu1  ;;  %v3905_v9 = vld [vmem:[#allocation2 + $0x208] sm:$0xff]  ;;  %v3310_v10 = vmax.f32 %v2944_v1, 0.0  ;;  %v4790_v11 = vpop.f32.mrb[70].mxu0 }
 0x169   :  { %3906 = vst [vmem:[%s7124_s5 + $0x208] sm:$0xff] %v3905_v9  ;;  %v3903_v12 = vld [vmem:[#allocation2 + $0x200] sm:$0xff]  ;;  %3439 = vst.msk [vmem:[#allocation2 + $0x228] sm:$0xff] %vm2152_vm0, %v3311_v4  ;;  %v2959_v13 = vadd.f32 %v4990_v0, %v4790_v11  ;;  %v1731_v14 = vpop.f32.mrb[71].mxu0 }
 0x16a   :  { %3904 = vst [vmem:[%s7124_s5 + $0x200] sm:$0xff] %v3903_v12  ;;  %3438 = vst.msk [vmem:[#allocation2 + $0x220] sm:$0xff] %vm2152_vm0, %v3310_v10  ;;  %v2954_v15 = vadd.f32 %v2953_v7, %v1731_v14 }
 0x16b   :  { %v4993_v16 = vpop.f32.mrb[70].mxu1  ;;  %v3313_v5 = vmax.f32 %v2959_v13, 0.0 }
 0x16c   :  { %v2963_v19 = vpop.f32.mrb[71].mxu1  ;;  %v3909_v18 = vld [vmem:[#allocation2 + $0x218] sm:$0xff]  ;;  %v3312_v17 = vmax.f32 %v2954_v15, 0.0  ;;  %v4793_v6 = vpop.f32.mrb[72].mxu0 }
 0x16d   :  { %3910 = vst [vmem:[%s7124_s5 + $0x218] sm:$0xff] %v3909_v18  ;;  %v3907_v20 = vld [vmem:[#allocation2 + $0x210] sm:$0xff]  ;;  %3441 = vst.msk [vmem:[#allocation2 + $0x238] sm:$0xff] %vm2152_vm0, %v3313_v5  ;;  %v2969_v21 = vadd.f32 %v4993_v16, %v4793_v6  ;;  %v1741_v22 = vpop.f32.mrb[73].mxu0 }
 0x16e   :  { %3908 = vst [vmem:[%s7124_s5 + $0x210] sm:$0xff] %v3907_v20  ;;  %3440 = vst.msk [vmem:[#allocation2 + $0x230] sm:$0xff] %vm2152_vm0, %v3312_v17  ;;  %v2964_v23 = vadd.f32 %v2963_v19, %v1741_v22 }
 0x16f   :  { %v4996_v24 = vpop.f32.mrb[72].mxu1  ;;  %v3315_v25 = vmax.f32 %v2969_v21, 0.0 }
 0x170   :  { %v2973_v26 = vpop.f32.mrb[73].mxu1  ;;  %v3913_v27 = vld [vmem:[#allocation2 + $0x228] sm:$0xff]  ;;  %v3314_v28 = vmax.f32 %v2964_v23, 0.0  ;;  %v4796_v29 = vpop.f32.mrb[74].mxu0 }
 0x171   :  { %3914 = vst [vmem:[%s7124_s5 + $0x228] sm:$0xff] %v3913_v27  ;;  %v3911_v30 = vld [vmem:[#allocation2 + $0x220] sm:$0xff]  ;;  %3443 = vst.msk [vmem:[#allocation2 + $0x248] sm:$0xff] %vm2152_vm0, %v3315_v25  ;;  %v2979_v31 = vadd.f32 %v4996_v24, %v4796_v29  ;;  %v1751_v32 = vpop.f32.mrb[75].mxu0 }
 0x172   :  { %3912 = vst [vmem:[%s7124_s5 + $0x220] sm:$0xff] %v3911_v30  ;;  %3442 = vst.msk [vmem:[#allocation2 + $0x240] sm:$0xff] %vm2152_vm0, %v3314_v28  ;;  %v2974_v33 = vadd.f32 %v2973_v26, %v1751_v32 }
 0x173   :  { %v4999_v34 = vpop.f32.mrb[74].mxu1  ;;  %v3317_v35 = vmax.f32 %v2979_v31, 0.0 }
 0x174   :  { %v2983_v36 = vpop.f32.mrb[75].mxu1  ;;  %v3917_v37 = vld [vmem:[#allocation2 + $0x238] sm:$0xff]  ;;  %v3316_v38 = vmax.f32 %v2974_v33, 0.0  ;;  %v4799_v39 = vpop.f32.mrb[76].mxu0 }
 0x175   :  { %3918 = vst [vmem:[%s7124_s5 + $0x238] sm:$0xff] %v3917_v37  ;;  %v3915_v8 = vld [vmem:[#allocation2 + $0x230] sm:$0xff]  ;;  %3445 = vst.msk [vmem:[#allocation2 + $0x258] sm:$0xff] %vm2152_vm0, %v3317_v35  ;;  %v2989_v40 = vadd.f32 %v4999_v34, %v4799_v39  ;;  %v1761_v41 = vpop.f32.mrb[77].mxu0 }
 0x176   :  { %3916 = vst [vmem:[%s7124_s5 + $0x230] sm:$0xff] %v3915_v8  ;;  %3444 = vst.msk [vmem:[#allocation2 + $0x250] sm:$0xff] %vm2152_vm0, %v3316_v38  ;;  %v2984_v42 = vadd.f32 %v2983_v36, %v1761_v41 }
 0x177   :  { %v5002_v43 = vpop.f32.mrb[76].mxu1  ;;  %v3319_v44 = vmax.f32 %v2989_v40, 0.0 }
 0x178   :  { %v2993_v45 = vpop.f32.mrb[77].mxu1  ;;  %v3921_v46 = vld [vmem:[#allocation2 + $0x248] sm:$0xff]  ;;  %v3318_v47 = vmax.f32 %v2984_v42, 0.0  ;;  %v4802_v48 = vpop.f32.mrb[78].mxu0 }
 0x179   :  { %3922 = vst [vmem:[%s7124_s5 + $0x248] sm:$0xff] %v3921_v46  ;;  %v3919_v49 = vld [vmem:[#allocation2 + $0x240] sm:$0xff]  ;;  %3447 = vst.msk [vmem:[#allocation2 + $0x268] sm:$0xff] %vm2152_vm0, %v3319_v44  ;;  %v2999_v50 = vadd.f32 %v5002_v43, %v4802_v48  ;;  %v1771_v51 = vpop.f32.mrb[79].mxu0 }
 0x17a   :  { %3920 = vst [vmem:[%s7124_s5 + $0x240] sm:$0xff] %v3919_v49  ;;  %3446 = vst.msk [vmem:[#allocation2 + $0x260] sm:$0xff] %vm2152_vm0, %v3318_v47  ;;  %v2994_v52 = vadd.f32 %v2993_v45, %v1771_v51 }
 0x17b   :  { %v5005_v53 = vpop.f32.mrb[78].mxu1  ;;  %v3321_v54 = vmax.f32 %v2999_v50, 0.0 }
 0x17c   :  { %v3003_v55 = vpop.f32.mrb[79].mxu1  ;;  %v3925_v56 = vld [vmem:[#allocation2 + $0x258] sm:$0xff]  ;;  %v3320_v57 = vmax.f32 %v2994_v52, 0.0  ;;  %v4805_v58 = vpop.f32.mrb[80].mxu0 }
 0x17d   :  { %3926 = vst [vmem:[%s7124_s5 + $0x258] sm:$0xff] %v3925_v56  ;;  %v3923_v59 = vld [vmem:[#allocation2 + $0x250] sm:$0xff]  ;;  %3449 = vst.msk [vmem:[#allocation2 + $0x278] sm:$0xff] %vm2152_vm0, %v3321_v54  ;;  %v3009_v60 = vadd.f32 %v5005_v53, %v4805_v58  ;;  %v1781_v61 = vpop.f32.mrb[81].mxu0 }
 0x17e   :  { %3924 = vst [vmem:[%s7124_s5 + $0x250] sm:$0xff] %v3923_v59  ;;  %3448 = vst.msk [vmem:[#allocation2 + $0x270] sm:$0xff] %vm2152_vm0, %v3320_v57  ;;  %v3004_v62 = vadd.f32 %v3003_v55, %v1781_v61 }
 0x17f   :  { %v5008_v63 = vpop.f32.mrb[80].mxu1  ;;  %v3323_v2 = vmax.f32 %v3009_v60, 0.0 }
 0x180   :  { %v3013_v3 = vpop.f32.mrb[81].mxu1  ;;  %v3929_v1 = vld [vmem:[#allocation2 + $0x268] sm:$0xff]  ;;  %v3322_v0 = vmax.f32 %v3004_v62, 0.0  ;;  %v4808_v4 = vpop.f32.mrb[82].mxu0 }
 0x181   :  { %3930 = vst [vmem:[%s7124_s5 + $0x268] sm:$0xff] %v3929_v1  ;;  %v3927_v7 = vld [vmem:[#allocation2 + $0x260] sm:$0xff]  ;;  %3451 = vst.msk [vmem:[#allocation2 + $0x288] sm:$0xff] %vm2152_vm0, %v3323_v2  ;;  %v3019_v9 = vadd.f32 %v5008_v63, %v4808_v4  ;;  %v1791_v10 = vpop.f32.mrb[83].mxu0 }
 0x182   :  { %3928 = vst [vmem:[%s7124_s5 + $0x260] sm:$0xff] %v3927_v7  ;;  %3450 = vst.msk [vmem:[#allocation2 + $0x280] sm:$0xff] %vm2152_vm0, %v3322_v0  ;;  %v3014_v11 = vadd.f32 %v3013_v3, %v1791_v10 }
 0x183   :  { %v5011_v12 = vpop.f32.mrb[82].mxu1  ;;  %v3325_v13 = vmax.f32 %v3019_v9, 0.0 }
 0x184   :  { %v3023_v14 = vpop.f32.mrb[83].mxu1  ;;  %v3933_v15 = vld [vmem:[#allocation2 + $0x278] sm:$0xff]  ;;  %v3324_v16 = vmax.f32 %v3014_v11, 0.0  ;;  %v4811_v5 = vpop.f32.mrb[84].mxu0 }
 0x185   :  { %3934 = vst [vmem:[%s7124_s5 + $0x278] sm:$0xff] %v3933_v15  ;;  %v3931_v19 = vld [vmem:[#allocation2 + $0x270] sm:$0xff]  ;;  %3453 = vst.msk [vmem:[#allocation2 + $0x298] sm:$0xff] %vm2152_vm0, %v3325_v13  ;;  %v3029_v18 = vadd.f32 %v5011_v12, %v4811_v5  ;;  %v1801_v17 = vpop.f32.mrb[85].mxu0 }
 0x186   :  { %3932 = vst [vmem:[%s7124_s5 + $0x270] sm:$0xff] %v3931_v19  ;;  %3452 = vst.msk [vmem:[#allocation2 + $0x290] sm:$0xff] %vm2152_vm0, %v3324_v16  ;;  %v3024_v6 = vadd.f32 %v3023_v14, %v1801_v17 }
 0x187   :  { %v5014_v20 = vpop.f32.mrb[84].mxu1  ;;  %v3327_v21 = vmax.f32 %v3029_v18, 0.0 }
 0x188   :  { %v3033_v22 = vpop.f32.mrb[85].mxu1  ;;  %v3937_v23 = vld [vmem:[#allocation2 + $0x288] sm:$0xff]  ;;  %v3326_v24 = vmax.f32 %v3024_v6, 0.0  ;;  %v4814_v25 = vpop.f32.mrb[86].mxu0 }
 0x189   :  { %3938 = vst [vmem:[%s7124_s5 + $0x288] sm:$0xff] %v3937_v23  ;;  %v3935_v26 = vld [vmem:[#allocation2 + $0x280] sm:$0xff]  ;;  %3455 = vst.msk [vmem:[#allocation2 + $0x2a8] sm:$0xff] %vm2152_vm0, %v3327_v21  ;;  %v3039_v27 = vadd.f32 %v5014_v20, %v4814_v25  ;;  %v1811_v28 = vpop.f32.mrb[87].mxu0 }
 0x18a   :  { %3936 = vst [vmem:[%s7124_s5 + $0x280] sm:$0xff] %v3935_v26  ;;  %3454 = vst.msk [vmem:[#allocation2 + $0x2a0] sm:$0xff] %vm2152_vm0, %v3326_v24  ;;  %v3034_v29 = vadd.f32 %v3033_v22, %v1811_v28 }
 0x18b   :  { %v5017_v30 = vpop.f32.mrb[86].mxu1  ;;  %v3329_v31 = vmax.f32 %v3039_v27, 0.0 }
 0x18c   :  { %v3043_v32 = vpop.f32.mrb[87].mxu1  ;;  %v3941_v33 = vld [vmem:[#allocation2 + $0x298] sm:$0xff]  ;;  %v3328_v34 = vmax.f32 %v3034_v29, 0.0  ;;  %v4817_v35 = vpop.f32.mrb[88].mxu0 }
 0x18d   :  { %3942 = vst [vmem:[%s7124_s5 + $0x298] sm:$0xff] %v3941_v33  ;;  %v3939_v36 = vld [vmem:[#allocation2 + $0x290] sm:$0xff]  ;;  %3457 = vst.msk [vmem:[#allocation2 + $0x2b8] sm:$0xff] %vm2152_vm0, %v3329_v31  ;;  %v3049_v37 = vadd.f32 %v5017_v30, %v4817_v35  ;;  %v1821_v38 = vpop.f32.mrb[89].mxu0 }
 0x18e   :  { %3940 = vst [vmem:[%s7124_s5 + $0x290] sm:$0xff] %v3939_v36  ;;  %3456 = vst.msk [vmem:[#allocation2 + $0x2b0] sm:$0xff] %vm2152_vm0, %v3328_v34  ;;  %v3044_v39 = vadd.f32 %v3043_v32, %v1821_v38 }
 0x18f   :  { %v5020_v8 = vpop.f32.mrb[88].mxu1  ;;  %v3331_v40 = vmax.f32 %v3049_v37, 0.0 }
 0x190   :  { %v3053_v41 = vpop.f32.mrb[89].mxu1  ;;  %v3945_v42 = vld [vmem:[#allocation2 + $0x2a8] sm:$0xff]  ;;  %v3330_v43 = vmax.f32 %v3044_v39, 0.0  ;;  %v4820_v44 = vpop.f32.mrb[90].mxu0 }
 0x191   :  { %3946 = vst [vmem:[%s7124_s5 + $0x2a8] sm:$0xff] %v3945_v42  ;;  %v3943_v45 = vld [vmem:[#allocation2 + $0x2a0] sm:$0xff]  ;;  %3459 = vst.msk [vmem:[#allocation2 + $0x2c8] sm:$0xff] %vm2152_vm0, %v3331_v40  ;;  %v3059_v46 = vadd.f32 %v5020_v8, %v4820_v44  ;;  %v1831_v47 = vpop.f32.mrb[91].mxu0 }
 0x192   :  { %3944 = vst [vmem:[%s7124_s5 + $0x2a0] sm:$0xff] %v3943_v45  ;;  %3458 = vst.msk [vmem:[#allocation2 + $0x2c0] sm:$0xff] %vm2152_vm0, %v3330_v43  ;;  %v3054_v48 = vadd.f32 %v3053_v41, %v1831_v47 }
 0x193   :  { %v5023_v49 = vpop.f32.mrb[90].mxu1  ;;  %v3333_v50 = vmax.f32 %v3059_v46, 0.0 }
 0x194   :  { %v3063_v51 = vpop.f32.mrb[91].mxu1  ;;  %v3949_v52 = vld [vmem:[#allocation2 + $0x2b8] sm:$0xff]  ;;  %v3332_v53 = vmax.f32 %v3054_v48, 0.0  ;;  %v4823_v54 = vpop.f32.mrb[92].mxu0 }
 0x195   :  { %3950 = vst [vmem:[%s7124_s5 + $0x2b8] sm:$0xff] %v3949_v52  ;;  %v3947_v55 = vld [vmem:[#allocation2 + $0x2b0] sm:$0xff]  ;;  %3461 = vst.msk [vmem:[#allocation2 + $0x2d8] sm:$0xff] %vm2152_vm0, %v3333_v50  ;;  %v3069_v56 = vadd.f32 %v5023_v49, %v4823_v54  ;;  %v1841_v57 = vpop.f32.mrb[93].mxu0 }
 0x196   :  { %3948 = vst [vmem:[%s7124_s5 + $0x2b0] sm:$0xff] %v3947_v55  ;;  %3460 = vst.msk [vmem:[#allocation2 + $0x2d0] sm:$0xff] %vm2152_vm0, %v3332_v53  ;;  %v3064_v58 = vadd.f32 %v3063_v51, %v1841_v57 }
 0x197   :  { %v5026_v59 = vpop.f32.mrb[92].mxu1  ;;  %v3335_v60 = vmax.f32 %v3069_v56, 0.0 }
 0x198   :  { %v3073_v61 = vpop.f32.mrb[93].mxu1  ;;  %v3953_v62 = vld [vmem:[#allocation2 + $0x2c8] sm:$0xff]  ;;  %v3334_v63 = vmax.f32 %v3064_v58, 0.0  ;;  %v4826_v2 = vpop.f32.mrb[94].mxu0 }
 0x199   :  { %3954 = vst [vmem:[%s7124_s5 + $0x2c8] sm:$0xff] %v3953_v62  ;;  %v3951_v3 = vld [vmem:[#allocation2 + $0x2c0] sm:$0xff]  ;;  %3463 = vst.msk [vmem:[#allocation2 + $0x2e8] sm:$0xff] %vm2152_vm0, %v3335_v60  ;;  %v3079_v1 = vadd.f32 %v5026_v59, %v4826_v2  ;;  %v1851_v0 = vpop.f32.mrb[95].mxu0 }
 0x19a   :  { %3952 = vst [vmem:[%s7124_s5 + $0x2c0] sm:$0xff] %v3951_v3  ;;  %3462 = vst.msk [vmem:[#allocation2 + $0x2e0] sm:$0xff] %vm2152_vm0, %v3334_v63  ;;  %v3074_v4 = vadd.f32 %v3073_v61, %v1851_v0 }
 0x19b   :  { %v5029_v7 = vpop.f32.mrb[94].mxu1  ;;  %v3337_v9 = vmax.f32 %v3079_v1, 0.0 }
 0x19c   :  { %v3083_v10 = vpop.f32.mrb[95].mxu1  ;;  %v3957_v11 = vld [vmem:[#allocation2 + $0x2d8] sm:$0xff]  ;;  %v3336_v12 = vmax.f32 %v3074_v4, 0.0  ;;  %v4829_v13 = vpop.f32.mrb[96].mxu0 }
 0x19d   :  { %3958 = vst [vmem:[%s7124_s5 + $0x2d8] sm:$0xff] %v3957_v11  ;;  %v3955_v14 = vld [vmem:[#allocation2 + $0x2d0] sm:$0xff]  ;;  %3465 = vst.msk [vmem:[#allocation2 + $0x2f8] sm:$0xff] %vm2152_vm0, %v3337_v9  ;;  %v3089_v15 = vadd.f32 %v5029_v7, %v4829_v13  ;;  %v1861_v16 = vpop.f32.mrb[97].mxu0 }
 0x19e   :  { %3956 = vst [vmem:[%s7124_s5 + $0x2d0] sm:$0xff] %v3955_v14  ;;  %3464 = vst.msk [vmem:[#allocation2 + $0x2f0] sm:$0xff] %vm2152_vm0, %v3336_v12  ;;  %v3084_v5 = vadd.f32 %v3083_v10, %v1861_v16 }
 0x19f   :  { %v5032_v19 = vpop.f32.mrb[96].mxu1  ;;  %v3339_v18 = vmax.f32 %v3089_v15, 0.0 }
 0x1a0   :  { %v3093_v17 = vpop.f32.mrb[97].mxu1  ;;  %v3961_v6 = vld [vmem:[#allocation2 + $0x2e8] sm:$0xff]  ;;  %v3338_v20 = vmax.f32 %v3084_v5, 0.0  ;;  %v4832_v21 = vpop.f32.mrb[98].mxu0 }
 0x1a1   :  { %3962 = vst [vmem:[%s7124_s5 + $0x2e8] sm:$0xff] %v3961_v6  ;;  %v3959_v22 = vld [vmem:[#allocation2 + $0x2e0] sm:$0xff]  ;;  %3467 = vst.msk [vmem:[#allocation2 + $0x308] sm:$0xff] %vm2152_vm0, %v3339_v18  ;;  %v3099_v23 = vadd.f32 %v5032_v19, %v4832_v21  ;;  %v1871_v24 = vpop.f32.mrb[99].mxu0 }
 0x1a2   :  { %3960 = vst [vmem:[%s7124_s5 + $0x2e0] sm:$0xff] %v3959_v22  ;;  %3466 = vst.msk [vmem:[#allocation2 + $0x300] sm:$0xff] %vm2152_vm0, %v3338_v20  ;;  %v3094_v25 = vadd.f32 %v3093_v17, %v1871_v24 }
 0x1a3   :  { %v5035_v26 = vpop.f32.mrb[98].mxu1  ;;  %v3341_v27 = vmax.f32 %v3099_v23, 0.0 }
 0x1a4   :  { %v3103_v28 = vpop.f32.mrb[99].mxu1  ;;  %v3965_v29 = vld [vmem:[#allocation2 + $0x2f8] sm:$0xff]  ;;  %v3340_v30 = vmax.f32 %v3094_v25, 0.0  ;;  %v4835_v31 = vpop.f32.mrb[100].mxu0 }
 0x1a5   :  { %3966 = vst [vmem:[%s7124_s5 + $0x2f8] sm:$0xff] %v3965_v29  ;;  %v3963_v32 = vld [vmem:[#allocation2 + $0x2f0] sm:$0xff]  ;;  %3469 = vst.msk [vmem:[#allocation2 + $0x318] sm:$0xff] %vm2152_vm0, %v3341_v27  ;;  %v3109_v33 = vadd.f32 %v5035_v26, %v4835_v31  ;;  %v1881_v34 = vpop.f32.mrb[101].mxu0 }
 0x1a6   :  { %3964 = vst [vmem:[%s7124_s5 + $0x2f0] sm:$0xff] %v3963_v32  ;;  %3468 = vst.msk [vmem:[#allocation2 + $0x310] sm:$0xff] %vm2152_vm0, %v3340_v30  ;;  %v3104_v35 = vadd.f32 %v3103_v28, %v1881_v34 }
 0x1a7   :  { %v5038_v36 = vpop.f32.mrb[100].mxu1  ;;  %v3343_v37 = vmax.f32 %v3109_v33, 0.0 }
 0x1a8   :  { %v3113_v38 = vpop.f32.mrb[101].mxu1  ;;  %v3969_v39 = vld [vmem:[#allocation2 + $0x308] sm:$0xff]  ;;  %v3342_v8 = vmax.f32 %v3104_v35, 0.0  ;;  %v4838_v40 = vpop.f32.mrb[102].mxu0 }
 0x1a9   :  { %3970 = vst [vmem:[%s7124_s5 + $0x308] sm:$0xff] %v3969_v39  ;;  %v3967_v41 = vld [vmem:[#allocation2 + $0x300] sm:$0xff]  ;;  %3471 = vst.msk [vmem:[#allocation2 + $0x328] sm:$0xff] %vm2152_vm0, %v3343_v37  ;;  %v3119_v42 = vadd.f32 %v5038_v36, %v4838_v40  ;;  %v1891_v43 = vpop.f32.mrb[103].mxu0 }
 0x1aa   :  { %3968 = vst [vmem:[%s7124_s5 + $0x300] sm:$0xff] %v3967_v41  ;;  %3470 = vst.msk [vmem:[#allocation2 + $0x320] sm:$0xff] %vm2152_vm0, %v3342_v8  ;;  %v3114_v44 = vadd.f32 %v3113_v38, %v1891_v43 }
 0x1ab   :  { %v5041_v45 = vpop.f32.mrb[102].mxu1  ;;  %v3345_v46 = vmax.f32 %v3119_v42, 0.0 }
 0x1ac   :  { %v3123_v47 = vpop.f32.mrb[103].mxu1  ;;  %v3973_v48 = vld [vmem:[#allocation2 + $0x318] sm:$0xff]  ;;  %v3344_v49 = vmax.f32 %v3114_v44, 0.0  ;;  %v4841_v50 = vpop.f32.mrb[104].mxu0 }
 0x1ad   :  { %3974 = vst [vmem:[%s7124_s5 + $0x318] sm:$0xff] %v3973_v48  ;;  %v3971_v51 = vld [vmem:[#allocation2 + $0x310] sm:$0xff]  ;;  %3473 = vst.msk [vmem:[#allocation2 + $0x338] sm:$0xff] %vm2152_vm0, %v3345_v46  ;;  %v3129_v52 = vadd.f32 %v5041_v45, %v4841_v50  ;;  %v1901_v53 = vpop.f32.mrb[105].mxu0 }
 0x1ae   :  { %3972 = vst [vmem:[%s7124_s5 + $0x310] sm:$0xff] %v3971_v51  ;;  %3472 = vst.msk [vmem:[#allocation2 + $0x330] sm:$0xff] %vm2152_vm0, %v3344_v49  ;;  %v3124_v54 = vadd.f32 %v3123_v47, %v1901_v53 }
 0x1af   :  { %v5044_v55 = vpop.f32.mrb[104].mxu1  ;;  %v3347_v56 = vmax.f32 %v3129_v52, 0.0 }
 0x1b0   :  { %v3133_v57 = vpop.f32.mrb[105].mxu1  ;;  %v3977_v58 = vld [vmem:[#allocation2 + $0x328] sm:$0xff]  ;;  %v3346_v59 = vmax.f32 %v3124_v54, 0.0  ;;  %v4844_v60 = vpop.f32.mrb[106].mxu0 }
 0x1b1   :  { %3978 = vst [vmem:[%s7124_s5 + $0x328] sm:$0xff] %v3977_v58  ;;  %v3975_v61 = vld [vmem:[#allocation2 + $0x320] sm:$0xff]  ;;  %3475 = vst.msk [vmem:[#allocation2 + $0x348] sm:$0xff] %vm2152_vm0, %v3347_v56  ;;  %v3139_v62 = vadd.f32 %v5044_v55, %v4844_v60  ;;  %v1911_v63 = vpop.f32.mrb[107].mxu0 }
 0x1b2   :  { %3976 = vst [vmem:[%s7124_s5 + $0x320] sm:$0xff] %v3975_v61  ;;  %3474 = vst.msk [vmem:[#allocation2 + $0x340] sm:$0xff] %vm2152_vm0, %v3346_v59  ;;  %v3134_v2 = vadd.f32 %v3133_v57, %v1911_v63 }
 0x1b3   :  { %v5047_v3 = vpop.f32.mrb[106].mxu1  ;;  %v3349_v1 = vmax.f32 %v3139_v62, 0.0 }
 0x1b4   :  { %v3143_v0 = vpop.f32.mrb[107].mxu1  ;;  %v3981_v4 = vld [vmem:[#allocation2 + $0x338] sm:$0xff]  ;;  %v3348_v7 = vmax.f32 %v3134_v2, 0.0  ;;  %v4847_v9 = vpop.f32.mrb[108].mxu0 }
 0x1b5   :  { %3982 = vst [vmem:[%s7124_s5 + $0x338] sm:$0xff] %v3981_v4  ;;  %v3979_v10 = vld [vmem:[#allocation2 + $0x330] sm:$0xff]  ;;  %3477 = vst.msk [vmem:[#allocation2 + $0x358] sm:$0xff] %vm2152_vm0, %v3349_v1  ;;  %v3149_v11 = vadd.f32 %v5047_v3, %v4847_v9  ;;  %v1921_v12 = vpop.f32.mrb[109].mxu0 }
 0x1b6   :  { %3980 = vst [vmem:[%s7124_s5 + $0x330] sm:$0xff] %v3979_v10  ;;  %3476 = vst.msk [vmem:[#allocation2 + $0x350] sm:$0xff] %vm2152_vm0, %v3348_v7  ;;  %v3144_v13 = vadd.f32 %v3143_v0, %v1921_v12 }
 0x1b7   :  { %v5050_v14 = vpop.f32.mrb[108].mxu1  ;;  %v3351_v15 = vmax.f32 %v3149_v11, 0.0 }
 0x1b8   :  { %v3153_v16 = vpop.f32.mrb[109].mxu1  ;;  %v3985_v5 = vld [vmem:[#allocation2 + $0x348] sm:$0xff]  ;;  %v3350_v19 = vmax.f32 %v3144_v13, 0.0  ;;  %v4850_v18 = vpop.f32.mrb[110].mxu0 }
 0x1b9   :  { %3986 = vst [vmem:[%s7124_s5 + $0x348] sm:$0xff] %v3985_v5  ;;  %v3983_v17 = vld [vmem:[#allocation2 + $0x340] sm:$0xff]  ;;  %3479 = vst.msk [vmem:[#allocation2 + $0x368] sm:$0xff] %vm2152_vm0, %v3351_v15  ;;  %v3159_v6 = vadd.f32 %v5050_v14, %v4850_v18  ;;  %v1931_v20 = vpop.f32.mrb[111].mxu0 }
 0x1ba   :  { %3984 = vst [vmem:[%s7124_s5 + $0x340] sm:$0xff] %v3983_v17  ;;  %3478 = vst.msk [vmem:[#allocation2 + $0x360] sm:$0xff] %vm2152_vm0, %v3350_v19  ;;  %v3154_v21 = vadd.f32 %v3153_v16, %v1931_v20 }
 0x1bb   :  { %v5053_v22 = vpop.f32.mrb[110].mxu1  ;;  %v3353_v23 = vmax.f32 %v3159_v6, 0.0 }
 0x1bc   :  { %v3163_v24 = vpop.f32.mrb[111].mxu1  ;;  %v3989_v25 = vld [vmem:[#allocation2 + $0x358] sm:$0xff]  ;;  %v3352_v26 = vmax.f32 %v3154_v21, 0.0  ;;  %v4853_v27 = vpop.f32.mrb[112].mxu0 }
 0x1bd   :  { %3990 = vst [vmem:[%s7124_s5 + $0x358] sm:$0xff] %v3989_v25  ;;  %v3987_v28 = vld [vmem:[#allocation2 + $0x350] sm:$0xff]  ;;  %3481 = vst.msk [vmem:[#allocation2 + $0x378] sm:$0xff] %vm2152_vm0, %v3353_v23  ;;  %v3169_v29 = vadd.f32 %v5053_v22, %v4853_v27  ;;  %v1941_v30 = vpop.f32.mrb[113].mxu0 }
 0x1be   :  { %3988 = vst [vmem:[%s7124_s5 + $0x350] sm:$0xff] %v3987_v28  ;;  %3480 = vst.msk [vmem:[#allocation2 + $0x370] sm:$0xff] %vm2152_vm0, %v3352_v26  ;;  %v3164_v31 = vadd.f32 %v3163_v24, %v1941_v30 }
 0x1bf   :  { %v5056_v32 = vpop.f32.mrb[112].mxu1  ;;  %v3355_v33 = vmax.f32 %v3169_v29, 0.0 }
 0x1c0   :  { %v3173_v34 = vpop.f32.mrb[113].mxu1  ;;  %v3993_v35 = vld [vmem:[#allocation2 + $0x368] sm:$0xff]  ;;  %v3354_v36 = vmax.f32 %v3164_v31, 0.0  ;;  %v4856_v37 = vpop.f32.mrb[114].mxu0 }
 0x1c1   :  { %3994 = vst [vmem:[%s7124_s5 + $0x368] sm:$0xff] %v3993_v35  ;;  %v3991_v38 = vld [vmem:[#allocation2 + $0x360] sm:$0xff]  ;;  %3483 = vst.msk [vmem:[#allocation2 + $0x388] sm:$0xff] %vm2152_vm0, %v3355_v33  ;;  %v3179_v39 = vadd.f32 %v5056_v32, %v4856_v37  ;;  %v1951_v8 = vpop.f32.mrb[115].mxu0 }
 0x1c2   :  { %3992 = vst [vmem:[%s7124_s5 + $0x360] sm:$0xff] %v3991_v38  ;;  %3482 = vst.msk [vmem:[#allocation2 + $0x380] sm:$0xff] %vm2152_vm0, %v3354_v36  ;;  %v3174_v40 = vadd.f32 %v3173_v34, %v1951_v8 }
 0x1c3   :  { %v5059_v41 = vpop.f32.mrb[114].mxu1  ;;  %v3357_v42 = vmax.f32 %v3179_v39, 0.0 }
 0x1c4   :  { %v3183_v43 = vpop.f32.mrb[115].mxu1  ;;  %v3997_v44 = vld [vmem:[#allocation2 + $0x378] sm:$0xff]  ;;  %v3356_v45 = vmax.f32 %v3174_v40, 0.0  ;;  %v4859_v46 = vpop.f32.mrb[116].mxu0 }
 0x1c5   :  { %3998 = vst [vmem:[%s7124_s5 + $0x378] sm:$0xff] %v3997_v44  ;;  %v3995_v47 = vld [vmem:[#allocation2 + $0x370] sm:$0xff]  ;;  %3485 = vst.msk [vmem:[#allocation2 + $0x398] sm:$0xff] %vm2152_vm0, %v3357_v42  ;;  %v3189_v48 = vadd.f32 %v5059_v41, %v4859_v46  ;;  %v1961_v49 = vpop.f32.mrb[117].mxu0 }
 0x1c6   :  { %3996 = vst [vmem:[%s7124_s5 + $0x370] sm:$0xff] %v3995_v47  ;;  %3484 = vst.msk [vmem:[#allocation2 + $0x390] sm:$0xff] %vm2152_vm0, %v3356_v45  ;;  %v3184_v50 = vadd.f32 %v3183_v43, %v1961_v49 }
 0x1c7   :  { %v5062_v51 = vpop.f32.mrb[116].mxu1  ;;  %v3359_v52 = vmax.f32 %v3189_v48, 0.0 }
 0x1c8   :  { %v3193_v53 = vpop.f32.mrb[117].mxu1  ;;  %v4001_v54 = vld [vmem:[#allocation2 + $0x388] sm:$0xff]  ;;  %v3358_v55 = vmax.f32 %v3184_v50, 0.0  ;;  %v4862_v56 = vpop.f32.mrb[118].mxu0 }
 0x1c9   :  { %4002 = vst [vmem:[%s7124_s5 + $0x388] sm:$0xff] %v4001_v54  ;;  %v3999_v57 = vld [vmem:[#allocation2 + $0x380] sm:$0xff]  ;;  %3487 = vst.msk [vmem:[#allocation2 + $0x3a8] sm:$0xff] %vm2152_vm0, %v3359_v52  ;;  %v3199_v58 = vadd.f32 %v5062_v51, %v4862_v56  ;;  %v1971_v59 = vpop.f32.mrb[119].mxu0 }
 0x1ca   :  { %4000 = vst [vmem:[%s7124_s5 + $0x380] sm:$0xff] %v3999_v57  ;;  %3486 = vst.msk [vmem:[#allocation2 + $0x3a0] sm:$0xff] %vm2152_vm0, %v3358_v55  ;;  %v3194_v60 = vadd.f32 %v3193_v53, %v1971_v59 }
 0x1cb   :  { %v5065_v61 = vpop.f32.mrb[118].mxu1  ;;  %v3361_v62 = vmax.f32 %v3199_v58, 0.0 }
 0x1cc   :  { %v3203_v63 = vpop.f32.mrb[119].mxu1  ;;  %v4005_v2 = vld [vmem:[#allocation2 + $0x398] sm:$0xff]  ;;  %v3360_v3 = vmax.f32 %v3194_v60, 0.0  ;;  %v4865_v1 = vpop.f32.mrb[120].mxu0 }
 0x1cd   :  { %4006 = vst [vmem:[%s7124_s5 + $0x398] sm:$0xff] %v4005_v2  ;;  %v4003_v0 = vld [vmem:[#allocation2 + $0x390] sm:$0xff]  ;;  %3489 = vst.msk [vmem:[#allocation2 + $0x3b8] sm:$0xff] %vm2152_vm0, %v3361_v62  ;;  %v3209_v4 = vadd.f32 %v5065_v61, %v4865_v1  ;;  %v1981_v7 = vpop.f32.mrb[121].mxu0 }
 0x1ce   :  { %4004 = vst [vmem:[%s7124_s5 + $0x390] sm:$0xff] %v4003_v0  ;;  %3488 = vst.msk [vmem:[#allocation2 + $0x3b0] sm:$0xff] %vm2152_vm0, %v3360_v3  ;;  %v3204_v9 = vadd.f32 %v3203_v63, %v1981_v7 }
 0x1cf   :  { %v5068_v10 = vpop.f32.mrb[120].mxu1  ;;  %v3363_v11 = vmax.f32 %v3209_v4, 0.0 }
 0x1d0   :  { %v3213_v12 = vpop.f32.mrb[121].mxu1  ;;  %v4009_v13 = vld [vmem:[#allocation2 + $0x3a8] sm:$0xff]  ;;  %v3362_v14 = vmax.f32 %v3204_v9, 0.0  ;;  %v4868_v15 = vpop.f32.mrb[122].mxu0 }
 0x1d1   :  { %4010 = vst [vmem:[%s7124_s5 + $0x3a8] sm:$0xff] %v4009_v13  ;;  %v4007_v16 = vld [vmem:[#allocation2 + $0x3a0] sm:$0xff]  ;;  %3491 = vst.msk [vmem:[#allocation2 + $0x3c8] sm:$0xff] %vm2152_vm0, %v3363_v11  ;;  %v3219_v5 = vadd.f32 %v5068_v10, %v4868_v15  ;;  %v1991_v19 = vpop.f32.mrb[123].mxu0 }
 0x1d2   :  { %4008 = vst [vmem:[%s7124_s5 + $0x3a0] sm:$0xff] %v4007_v16  ;;  %3490 = vst.msk [vmem:[#allocation2 + $0x3c0] sm:$0xff] %vm2152_vm0, %v3362_v14  ;;  %v3214_v18 = vadd.f32 %v3213_v12, %v1991_v19 }
 0x1d3   :  { %v5071_v17 = vpop.f32.mrb[122].mxu1  ;;  %v3365_v6 = vmax.f32 %v3219_v5, 0.0 }
 0x1d4   :  { %v3223_v20 = vpop.f32.mrb[123].mxu1  ;;  %v4013_v21 = vld [vmem:[#allocation2 + $0x3b8] sm:$0xff]  ;;  %v3364_v22 = vmax.f32 %v3214_v18, 0.0  ;;  %v4871_v23 = vpop.f32.mrb[124].mxu0 }
 0x1d5   :  { %4014 = vst [vmem:[%s7124_s5 + $0x3b8] sm:$0xff] %v4013_v21  ;;  %v4011_v24 = vld [vmem:[#allocation2 + $0x3b0] sm:$0xff]  ;;  %3493 = vst.msk [vmem:[#allocation2 + $0x3d8] sm:$0xff] %vm2152_vm0, %v3365_v6  ;;  %v2001_v25 = vpop.f32.mrb[125].mxu0 }
 0x1d6   :  { %4012 = vst [vmem:[%s7124_s5 + $0x3b0] sm:$0xff] %v4011_v24  ;;  %3492 = vst.msk [vmem:[#allocation2 + $0x3d0] sm:$0xff] %vm2152_vm0, %v3364_v22  ;;  %v3224_v26 = vadd.f32 %v3223_v20, %v2001_v25 }
 0x1d7   :  { %v5074_v27 = vpop.f32.mrb[124].mxu1 }
 0x1d8   :  { %v3233_v28 = vpop.f32.mrb[125].mxu1  ;;  %v4017_v29 = vld [vmem:[#allocation2 + $0x3c8] sm:$0xff]  ;;  %v3366_v30 = vmax.f32 %v3224_v26, 0.0  ;;  %v4874_v31 = vpop.f32.mrb[126].mxu0 }
 0x1d9   :  { %4018 = vst [vmem:[%s7124_s5 + $0x3c8] sm:$0xff] %v4017_v29  ;;  %v4015_v32 = vld [vmem:[#allocation2 + $0x3c0] sm:$0xff]  ;;  %v2011_v33 = vpop.f32.mrb[127].mxu0 }
 0x1da   :  { %4016 = vst [vmem:[%s7124_s5 + $0x3c0] sm:$0xff] %v4015_v32  ;;  %3494 = vst.msk [vmem:[#allocation2 + $0x3e0] sm:$0xff] %vm2152_vm0, %v3366_v30 }
 0x1dc   :  { %v4021_v34 = vld [vmem:[#allocation2 + $0x3d8] sm:$0xff]  ;;  %v4885_v35 = vpop.f32.mrb[0].mxu0 }
 0x1dd   :  { %4022 = vst [vmem:[%s7124_s5 + $0x3d8] sm:$0xff] %v4021_v34  ;;  %v4019_v36 = vld [vmem:[#allocation2 + $0x3d0] sm:$0xff]  ;;  %v3243_v37 = vmax.f32 %v4885_v35, 0.0  ;;  %v2603_v38 = vpop.f32.mrb[1].mxu0 }
 0x1de   :  { %4020 = vst [vmem:[%s7124_s5 + $0x3d0] sm:$0xff] %v4019_v36  ;;  %v3242_v39 = vmax.f32 %v2603_v38, 0.0 }
 0x1df   :  { %3371 = vst.msk [vmem:[#allocation2 + $0x8] sm:$0xff] %vm2152_vm0, %v3243_v37 }
 0x1e0   :  { %3370 = vst.msk [vmem:[#allocation2] sm:$0xff] %vm2152_vm0, %v3242_v39 }
 0x1e1   :  { %v4023_v8 = vld [vmem:[#allocation2 + $0x3e0] sm:$0xff] }
 0x1e2   :  { %4024 = vst [vmem:[%s7124_s5 + $0x3e0] sm:$0xff] %v4023_v8 }
 0x1e6   :  { %v3777_v40 = vld [vmem:[#allocation2 + $0x8] sm:$0xff] }
 0x1e7   :  { %3778 = vst [vmem:[%s7124_s5 + $0x8] sm:$0xff] %v3777_v40  ;;  %v3775_v41 = vld [vmem:[#allocation2] sm:$0xff] }
 0x1e8   :  { %3776 = vst [vmem:[%s7124_s5] sm:$0xff] %v3775_v41 }

</bundles_post_ra>
